<compile_context>
chip_gen: v5e
topology: v5e:2x2
jax: 0.10.0
libtpu: 0.0.40
codegen_flags: <defaults>
</compile_context>

<pallas_src>
import functools
import math

import jax
import jax.numpy as jnp
import numpy as np
from jax.experimental import pallas as pl
from jax.experimental.pallas import tpu as pltpu


# ----------------------------- config (small) -------------------------------
B = 2            # batch
SEQ = 8          # window_size == sequence length fed to the module
C_IN = 4         # n_channel
DIM = 32         # embedding dim
DEPTH = 2        # transformer depth
HEADS = 4
MLP_DIM = 64
N_TOK = SEQ + 1  # +1 for the class token


def _layernorm(x, w, b, eps=1e-5):
    # var = E[x^2] - mu^2: the two reductions are independent (can overlap on XLU).
    mu = jnp.mean(x, axis=-1, keepdims=True)
    ms = jnp.mean(x * x, axis=-1, keepdims=True)
    var = ms - mu * mu
    return (x - mu) * jax.lax.rsqrt(var + eps) * w + b


# ------------------------------ Pallas kernel --------------------------------
def seq_transformer_kernel(seq_ref, we_ref, be_ref, pe_ref, ctok_ref,
                           ln1w_ref, ln1b_ref, wq_ref, wk_ref, wv_ref,
                           wo_ref, bo_ref, ln2w_ref, ln2b_ref,
                           w1_ref, b1_ref, w2_ref, b2_ref,
                           out_ref, *, depth, heads, dim, batch, seq_len):
    ntok = seq_len + 1
    # NOTE: the module scales attention logits by the FULL embedding dim
    # (dim ** -0.5), not the per-head dim.  Intentional — mirrors the PyTorch code.
    scale = dim ** (-0.5)

    # patch_to_embedding + positional encoding for all batches at once
    # (dropout == identity, eval mode).  pe_ref is pre-tiled to (batch*seq, dim).
    emb = (jnp.dot(seq_ref[...], we_ref[...],
                   preferred_element_type=jnp.float32)
           + be_ref[...] + pe_ref[...])                          # (batch*seq, dim)

    for b in range(batch):
        # Assemble [class_token ; embedded sequence] directly in out_ref rows —
        # no sublane-axis concatenate.
        out_ref[b, pl.ds(0, 1), :] = ctok_ref[...]
        out_ref[b, pl.ds(1, seq_len), :] = emb[b * seq_len:(b + 1) * seq_len, :]
        x = out_ref[b]                                           # (ntok, dim)

        for d in range(depth):
            # ---- Residual(PreNorm(Attention)), heads batched ----
            h = _layernorm(x, ln1w_ref[d], ln1b_ref[d])
            hb = jnp.broadcast_to(h, (heads, ntok, dim))
            q = jnp.einsum("hnd,hdk->hnk", hb, wq_ref[d],
                           preferred_element_type=jnp.float32)   # (h, n, hd)
            k = jnp.einsum("hnd,hdk->hnk", hb, wk_ref[d],
                           preferred_element_type=jnp.float32)
            v = jnp.einsum("hnd,hdk->hnk", hb, wv_ref[d],
                           preferred_element_type=jnp.float32)

            dots = jnp.einsum("hqd,hkd->hqk", q, k,
                              preferred_element_type=jnp.float32) * scale
            dots = dots - jnp.max(dots, axis=-1, keepdims=True)
            e = jnp.exp(dots)
            attn = e * pl.reciprocal(jnp.sum(e, axis=-1, keepdims=True),
                                     approx=True)
            ov = jnp.einsum("hqk,hkd->hqd", attn, v,
                            preferred_element_type=jnp.float32)  # (h, n, hd)
            proj = jnp.einsum("hnd,hdk->hnk", ov, wo_ref[d],
                              preferred_element_type=jnp.float32)  # (h, n, dim)
            o = proj[0]
            for hh in range(1, heads):
                o = o + proj[hh]
            x = x + o + bo_ref[d]

            # ---- Residual(PreNorm(FeedForward)):
            #      Linear -> ReLU -> Dropout(id) -> Linear -> Dropout(id) ----
            h = _layernorm(x, ln2w_ref[d], ln2b_ref[d])
            h1 = jnp.maximum(
                jnp.dot(h, w1_ref[d], preferred_element_type=jnp.float32)
                + b1_ref[d], 0.0)
            h2 = jnp.dot(h1, w2_ref[d],
                         preferred_element_type=jnp.float32) + b2_ref[d]
            x = x + h2

        out_ref[b] = x


# ------------------------------ wrapper ---------------------------------------
def seq_transformer_forward(forward_seq, params, *, depth, heads, dim):
    b, n, c = forward_seq.shape
    ntok = n + 1
    hd = dim // heads

    # Pre-split the attention weights per head in the wrapper (free, XLA side),
    # so the kernel never needs in-kernel transposes/relayouts.
    wqkv = params["wqkv"]                                # (depth, dim, 3*dim)

    def split_heads(w):                                  # -> (depth, heads, dim, hd)
        return w.reshape(depth, dim, heads, hd).transpose(0, 2, 1, 3)

    wq = split_heads(wqkv[:, :, 0:dim])
    wk = split_heads(wqkv[:, :, dim:2 * dim])
    wv = split_heads(wqkv[:, :, 2 * dim:3 * dim])
    wo = params["wo"].reshape(depth, heads, hd, dim)     # per-head output proj

    seq_flat = forward_seq.reshape(b * n, c)
    pe_flat = jnp.tile(params["pe"], (b, 1))             # (b*n, dim)

    inputs = [seq_flat, params["we"], params["be"], pe_flat, params["ctok"],
              params["ln1w"], params["ln1b"], wq, wk, wv, wo, params["bo"],
              params["ln2w"], params["ln2b"], params["w1"], params["b1"],
              params["w2"], params["b2"]]

    def full_spec(p):
        nd = p.ndim
        return pl.BlockSpec(p.shape, lambda i, _nd=nd: (0,) * _nd)

    kernel = functools.partial(seq_transformer_kernel, depth=depth,
                               heads=heads, dim=dim, batch=b, seq_len=n)

    # Single grid step: the whole problem (all batches) fits trivially in VMEM.
    # For large batch on v7x, make batch a leading "parallel" grid axis instead
    # so both TensorCores are used.
    out = pl.pallas_call(
        kernel,
        out_shape=jax.ShapeDtypeStruct((b, ntok, dim), jnp.float32),
        grid=(1,),
        in_specs=[full_spec(p) for p in inputs],
        out_specs=pl.BlockSpec((b, ntok, dim), lambda i: (0, 0, 0)),
        compiler_params=pltpu.CompilerParams(
            dimension_semantics=("arbitrary",)),
    )(*inputs)

    c_t = out[:, 0]     # class token output  (to_c_token == Identity)
    x_ = out[:, 1:]     # remaining sequence
    return c_t, x_


# ------------------------- pure-JAX reference ---------------------------------
def ref_forward(forward_seq, p, *, depth, heads, dim):
    hd = dim // heads
    scale = dim ** (-0.5)
    x = forward_seq @ p["we"] + p["be"]
    x = x + p["pe"][None]
    b = x.shape[0]
    ctok = jnp.broadcast_to(p["ctok"][None], (b, 1, dim))
    x = jnp.concatenate([ctok, x], axis=1)
    for d in range(depth):
        h = _layernorm(x, p["ln1w"][d, 0], p["ln1b"][d, 0])
        qkv = h @ p["wqkv"][d]
        q, k, v = jnp.split(qkv, 3, axis=-1)

        def to_heads(t):
            bb, nn, _ = t.shape
            return t.reshape(bb, nn, heads, hd).transpose(0, 2, 1, 3)

        q, k, v = map(to_heads, (q, k, v))
        dots = jnp.einsum("bhid,bhjd->bhij", q, k) * scale
        attn = jax.nn.softmax(dots, axis=-1)
        o = jnp.einsum("bhij,bhjd->bhid", attn, v)
        o = o.transpose(0, 2, 1, 3).reshape(b, -1, dim)
        o = o @ p["wo"][d] + p["bo"][d, 0]
        x = x + o
        h = _layernorm(x, p["ln2w"][d, 0], p["ln2b"][d, 0])
        h1 = jax.nn.relu(h @ p["w1"][d] + p["b1"][d, 0])
        h2 = h1 @ p["w2"][d] + p["b2"][d, 0]
        x = x + h2
    return x[:, 0], x[:, 1:]


# ------------------------------- params ---------------------------------------
def make_params(key):
    ks = jax.random.split(key, 16)

    def normal(k, shape, s=0.05):
        return (jax.random.normal(k, shape, dtype=jnp.float32) * s)

    # positional encoding (exactly as PositionalEncoding.__init__, max_len=SEQ)
    position = np.arange(0, SEQ, dtype=np.float64)[:, None]
    div_term = np.exp(np.arange(0, DIM, 2, dtype=np.float64)
                      * -(math.log(10000.0) / DIM))
    pe = np.zeros((SEQ, DIM), dtype=np.float64)
    pe[:, 0::2] = np.sin(position * div_term)
    pe[:, 1::2] = np.cos(position * div_term)

    # Linear weights are stored pre-transposed: y = x @ W  (+ b)
    params = dict(
        we=normal(ks[0], (C_IN, DIM), 0.2),
        be=normal(ks[1], (1, DIM), 0.1),
        pe=jnp.asarray(pe, dtype=jnp.float32),
        ctok=normal(ks[2], (1, DIM), 1.0),             # c_token ~ randn
        ln1w=jnp.ones((DEPTH, 1, DIM), jnp.float32),
        ln1b=jnp.zeros((DEPTH, 1, DIM), jnp.float32),
        wqkv=normal(ks[3], (DEPTH, DIM, 3 * DIM)),
        wo=normal(ks[4], (DEPTH, DIM, DIM)),
        bo=normal(ks[5], (DEPTH, 1, DIM), 0.02),
        ln2w=jnp.ones((DEPTH, 1, DIM), jnp.float32),
        ln2b=jnp.zeros((DEPTH, 1, DIM), jnp.float32),
        w1=normal(ks[6], (DEPTH, DIM, MLP_DIM)),
        b1=normal(ks[7], (DEPTH, 1, MLP_DIM), 0.02),
        w2=normal(ks[8], (DEPTH, MLP_DIM, DIM)),
        b2=normal(ks[9], (DEPTH, 1, DIM), 0.02),
    )
    return params


# --------------------------------- main ----------------------------------------
if __name__ == "__main__":
    key = jax.random.PRNGKey(0)
    pkey, xkey = jax.random.split(key)
    params = make_params(pkey)
    forward_seq = jax.random.normal(xkey, (B, SEQ, C_IN), dtype=jnp.float32)

    c_t, x_ = seq_transformer_forward(forward_seq, params,
                                      depth=DEPTH, heads=HEADS, dim=DIM)
    c_t = jax.block_until_ready(c_t)
    x_ = jax.block_until_ready(x_)

    c_ref, x_ref = ref_forward(forward_seq, params,
                               depth=DEPTH, heads=HEADS, dim=DIM)

    assert c_t.shape == (B, DIM) and x_.shape == (B, SEQ, DIM)
    assert jnp.allclose(c_t, c_ref, atol=1e-2, rtol=1e-2)
    assert jnp.allclose(x_, x_ref, atol=1e-2, rtol=1e-2)

    print("KERNEL_OK")
</pallas_src>

<mosaic_0001>
module attributes {stable_mosaic.version = 11 : i64} {
  func.func @seq_transformer_kernel(%arg0: i32, %arg1: memref<16x4xf32, #tpu.memory_space<vmem>>, %arg2: memref<4x32xf32, #tpu.memory_space<vmem>>, %arg3: memref<1x32xf32, #tpu.memory_space<vmem>>, %arg4: memref<16x32xf32, #tpu.memory_space<vmem>>, %arg5: memref<1x32xf32, #tpu.memory_space<vmem>>, %arg6: memref<2x1x32xf32, #tpu.memory_space<vmem>>, %arg7: memref<2x1x32xf32, #tpu.memory_space<vmem>>, %arg8: memref<2x4x32x8xf32, #tpu.memory_space<vmem>>, %arg9: memref<2x4x32x8xf32, #tpu.memory_space<vmem>>, %arg10: memref<2x4x32x8xf32, #tpu.memory_space<vmem>>, %arg11: memref<2x4x8x32xf32, #tpu.memory_space<vmem>>, %arg12: memref<2x1x32xf32, #tpu.memory_space<vmem>>, %arg13: memref<2x1x32xf32, #tpu.memory_space<vmem>>, %arg14: memref<2x1x32xf32, #tpu.memory_space<vmem>>, %arg15: memref<2x32x64xf32, #tpu.memory_space<vmem>>, %arg16: memref<2x1x64xf32, #tpu.memory_space<vmem>>, %arg17: memref<2x64x32xf32, #tpu.memory_space<vmem>>, %arg18: memref<2x1x32xf32, #tpu.memory_space<vmem>>, %arg19: memref<2x9x32xf32, #tpu.memory_space<vmem>>) attributes {dimension_semantics = [#tpu.dimension_semantics<arbitrary>], iteration_bounds = array<i64: 1>, scalar_prefetch = 0 : i64, scratch_operands = 0 : i64, tpu.core_type = #tpu.core_type<tc>, window_params = [{pipeline_mode = #tpu.pipeline_mode<synchronous>, transform_indices = @transform_0, window_bounds = array<i64: 16, 4>}, {pipeline_mode = #tpu.pipeline_mode<synchronous>, transform_indices = @transform_1, window_bounds = array<i64: 4, 32>}, {pipeline_mode = #tpu.pipeline_mode<synchronous>, transform_indices = @transform_2, window_bounds = array<i64: 1, 32>}, {pipeline_mode = #tpu.pipeline_mode<synchronous>, transform_indices = @transform_3, window_bounds = array<i64: 16, 32>}, {pipeline_mode = #tpu.pipeline_mode<synchronous>, transform_indices = @transform_4, window_bounds = array<i64: 1, 32>}, {pipeline_mode = #tpu.pipeline_mode<synchronous>, transform_indices = @transform_5, window_bounds = array<i64: 2, 1, 32>}, {pipeline_mode = #tpu.pipeline_mode<synchronous>, transform_indices = @transform_6, window_bounds = array<i64: 2, 1, 32>}, {pipeline_mode = #tpu.pipeline_mode<synchronous>, transform_indices = @transform_7, window_bounds = array<i64: 2, 4, 32, 8>}, {pipeline_mode = #tpu.pipeline_mode<synchronous>, transform_indices = @transform_8, window_bounds = array<i64: 2, 4, 32, 8>}, {pipeline_mode = #tpu.pipeline_mode<synchronous>, transform_indices = @transform_9, window_bounds = array<i64: 2, 4, 32, 8>}, {pipeline_mode = #tpu.pipeline_mode<synchronous>, transform_indices = @transform_10, window_bounds = array<i64: 2, 4, 8, 32>}, {pipeline_mode = #tpu.pipeline_mode<synchronous>, transform_indices = @transform_11, window_bounds = array<i64: 2, 1, 32>}, {pipeline_mode = #tpu.pipeline_mode<synchronous>, transform_indices = @transform_12, window_bounds = array<i64: 2, 1, 32>}, {pipeline_mode = #tpu.pipeline_mode<synchronous>, transform_indices = @transform_13, window_bounds = array<i64: 2, 1, 32>}, {pipeline_mode = #tpu.pipeline_mode<synchronous>, transform_indices = @transform_14, window_bounds = array<i64: 2, 32, 64>}, {pipeline_mode = #tpu.pipeline_mode<synchronous>, transform_indices = @transform_15, window_bounds = array<i64: 2, 1, 64>}, {pipeline_mode = #tpu.pipeline_mode<synchronous>, transform_indices = @transform_16, window_bounds = array<i64: 2, 64, 32>}, {pipeline_mode = #tpu.pipeline_mode<synchronous>, transform_indices = @transform_17, window_bounds = array<i64: 2, 1, 32>}, {pipeline_mode = #tpu.pipeline_mode<synchronous>, transform_indices = @transform_18, window_bounds = array<i64: 2, 9, 32>}]} {
    %c0 = arith.constant 0 : index
    %c0_0 = arith.constant 0 : index
    %0 = vector.load %arg1[%c0, %c0_0] : memref<16x4xf32, #tpu.memory_space<vmem>>, vector<16x4xf32>
    %c0_1 = arith.constant 0 : index
    %c0_2 = arith.constant 0 : index
    %1 = vector.load %arg2[%c0_1, %c0_2] : memref<4x32xf32, #tpu.memory_space<vmem>>, vector<4x32xf32>
    %cst = arith.constant dense<0.000000e+00> : vector<16x32xf32>
    %2 = tpu.matmul %0, %1, %cst {dimension_numbers = #tpu.dot_dimension_numbers<[1], [0], [0], [1], [0, 0, 1, 1], [], []>} : vector<16x4xf32>, vector<4x32xf32>, vector<16x32xf32> -> vector<16x32xf32>
    %c0_3 = arith.constant 0 : index
    %c0_4 = arith.constant 0 : index
    %3 = vector.load %arg3[%c0_3, %c0_4] : memref<1x32xf32, #tpu.memory_space<vmem>>, vector<1x32xf32>
    %4 = vector.broadcast %3 : vector<1x32xf32> to vector<16x32xf32>
    %5 = arith.addf %2, %4 : vector<16x32xf32>
    %c0_5 = arith.constant 0 : index
    %c0_6 = arith.constant 0 : index
    %6 = vector.load %arg4[%c0_5, %c0_6] : memref<16x32xf32, #tpu.memory_space<vmem>>, vector<16x32xf32>
    %7 = arith.addf %5, %6 : vector<16x32xf32>
    %c0_7 = arith.constant 0 : index
    %c0_8 = arith.constant 0 : index
    %8 = vector.load %arg5[%c0_7, %c0_8] : memref<1x32xf32, #tpu.memory_space<vmem>>, vector<1x32xf32>
    %c0_9 = arith.constant 0 : index
    %c0_10 = arith.constant 0 : index
    %c0_11 = arith.constant 0 : index
    %9 = vector.load %arg19[%c0_9, %c0_10, %c0_11] : memref<2x9x32xf32, #tpu.memory_space<vmem>>, vector<1x1x32xf32>
    %10 = vector.shape_cast %9 : vector<1x1x32xf32> to vector<1x32xf32>
    %11 = vector.shape_cast %8 : vector<1x32xf32> to vector<1x1x32xf32>
    tpu.vector_store %arg19[%c0_9, %c0_10, %c0_11], %11 {strides = array<i32>} : memref<2x9x32xf32, #tpu.memory_space<vmem>>, vector<1x1x32xf32>,
    %12 = vector.extract_strided_slice %7 {offsets = [0, 0], sizes = [8, 32], strides = [1, 1]} : vector<16x32xf32> to vector<8x32xf32>
    %c0_12 = arith.constant 0 : index
    %c1 = arith.constant 1 : index
    %c0_13 = arith.constant 0 : index
    %13 = vector.load %arg19[%c0_12, %c1, %c0_13] : memref<2x9x32xf32, #tpu.memory_space<vmem>>, vector<1x8x32xf32>
    %14 = vector.shape_cast %13 : vector<1x8x32xf32> to vector<8x32xf32>
    %15 = vector.shape_cast %12 : vector<8x32xf32> to vector<1x8x32xf32>
    tpu.vector_store %arg19[%c0_12, %c1, %c0_13], %15 {strides = array<i32>} : memref<2x9x32xf32, #tpu.memory_space<vmem>>, vector<1x8x32xf32>,
    %c0_14 = arith.constant 0 : index
    %c0_15 = arith.constant 0 : index
    %c0_16 = arith.constant 0 : index
    %16 = vector.load %arg19[%c0_14, %c0_15, %c0_16] : memref<2x9x32xf32, #tpu.memory_space<vmem>>, vector<1x9x32xf32>
    %17 = vector.shape_cast %16 : vector<1x9x32xf32> to vector<9x32xf32>
    %c0_17 = arith.constant 0 : index
    %c0_18 = arith.constant 0 : index
    %c0_19 = arith.constant 0 : index
    %18 = vector.load %arg6[%c0_17, %c0_18, %c0_19] : memref<2x1x32xf32, #tpu.memory_space<vmem>>, vector<1x1x32xf32>
    %19 = vector.shape_cast %18 : vector<1x1x32xf32> to vector<1x32xf32>
    %c0_20 = arith.constant 0 : index
    %c0_21 = arith.constant 0 : index
    %c0_22 = arith.constant 0 : index
    %20 = vector.load %arg7[%c0_20, %c0_21, %c0_22] : memref<2x1x32xf32, #tpu.memory_space<vmem>>, vector<1x1x32xf32>
    %21 = vector.shape_cast %20 : vector<1x1x32xf32> to vector<1x32xf32>
    %cst_23 = arith.constant dense<0.000000e+00> : vector<9xf32>
    %22 = vector.multi_reduction <add>, %17, %cst_23 [1] : vector<9x32xf32> to vector<9xf32>
    %23 = vector.shape_cast %22 : vector<9xf32> to vector<9x1xf32>
    %cst_24 = arith.constant 3.200000e+01 : f32
    %24 = vector.broadcast %cst_24 : f32 to vector<9x1xf32>
    %25 = arith.divf %23, %24 : vector<9x1xf32>
    %26 = arith.mulf %17, %17 : vector<9x32xf32>
    %cst_25 = arith.constant dense<0.000000e+00> : vector<9xf32>
    %27 = vector.multi_reduction <add>, %26, %cst_25 [1] : vector<9x32xf32> to vector<9xf32>
    %28 = vector.shape_cast %27 : vector<9xf32> to vector<9x1xf32>
    %cst_26 = arith.constant 3.200000e+01 : f32
    %29 = vector.broadcast %cst_26 : f32 to vector<9x1xf32>
    %30 = arith.divf %28, %29 : vector<9x1xf32>
    %31 = arith.mulf %25, %25 : vector<9x1xf32>
    %32 = arith.subf %30, %31 : vector<9x1xf32>
    %33 = vector.broadcast %25 : vector<9x1xf32> to vector<9x32xf32>
    %34 = arith.subf %17, %33 : vector<9x32xf32>
    %cst_27 = arith.constant 9.99999974E-6 : f32
    %35 = vector.broadcast %cst_27 : f32 to vector<9x1xf32>
    %36 = arith.addf %32, %35 : vector<9x1xf32>
    %37 = math.rsqrt %36 : vector<9x1xf32>
    %38 = vector.broadcast %37 : vector<9x1xf32> to vector<9x32xf32>
    %39 = arith.mulf %34, %38 : vector<9x32xf32>
    %40 = vector.broadcast %19 : vector<1x32xf32> to vector<9x32xf32>
    %41 = arith.mulf %39, %40 : vector<9x32xf32>
    %42 = vector.broadcast %21 : vector<1x32xf32> to vector<9x32xf32>
    %43 = arith.addf %41, %42 : vector<9x32xf32>
    %44 = vector.shape_cast %43 : vector<9x32xf32> to vector<1x9x32xf32>
    %45 = vector.broadcast %44 : vector<1x9x32xf32> to vector<4x9x32xf32>
    %c0_28 = arith.constant 0 : index
    %c0_29 = arith.constant 0 : index
    %c0_30 = arith.constant 0 : index
    %c0_31 = arith.constant 0 : index
    %46 = vector.load %arg8[%c0_28, %c0_29, %c0_30, %c0_31] : memref<2x4x32x8xf32, #tpu.memory_space<vmem>>, vector<1x4x32x8xf32>
    %47 = vector.shape_cast %46 : vector<1x4x32x8xf32> to vector<4x32x8xf32>
    "tpu.trace_start"() <{level = 10 : i32, message = "hnd,hdk->hnk"}> : () -> ()
    %cst_32 = arith.constant dense<0.000000e+00> : vector<4x9x8xf32>
    %48 = tpu.matmul %45, %47, %cst_32 {dimension_numbers = #tpu.dot_dimension_numbers<[2], [1], [1], [2], [0, 0, 0, 1, 1, 2], [0], [0]>} : vector<4x9x32xf32>, vector<4x32x8xf32>, vector<4x9x8xf32> -> vector<4x9x8xf32>
    "tpu.trace_stop"() : () -> ()
    %c0_33 = arith.constant 0 : index
    %c0_34 = arith.constant 0 : index
    %c0_35 = arith.constant 0 : index
    %c0_36 = arith.constant 0 : index
    %49 = vector.load %arg9[%c0_33, %c0_34, %c0_35, %c0_36] : memref<2x4x32x8xf32, #tpu.memory_space<vmem>>, vector<1x4x32x8xf32>
    %50 = vector.shape_cast %49 : vector<1x4x32x8xf32> to vector<4x32x8xf32>
    "tpu.trace_start"() <{level = 10 : i32, message = "hnd,hdk->hnk"}> : () -> ()
    %cst_37 = arith.constant dense<0.000000e+00> : vector<4x9x8xf32>
    %51 = tpu.matmul %45, %50, %cst_37 {dimension_numbers = #tpu.dot_dimension_numbers<[2], [1], [1], [2], [0, 0, 0, 1, 1, 2], [0], [0]>} : vector<4x9x32xf32>, vector<4x32x8xf32>, vector<4x9x8xf32> -> vector<4x9x8xf32>
    "tpu.trace_stop"() : () -> ()
    %c0_38 = arith.constant 0 : index
    %c0_39 = arith.constant 0 : index
    %c0_40 = arith.constant 0 : index
    %c0_41 = arith.constant 0 : index
    %52 = vector.load %arg10[%c0_38, %c0_39, %c0_40, %c0_41] : memref<2x4x32x8xf32, #tpu.memory_space<vmem>>, vector<1x4x32x8xf32>
    %53 = vector.shape_cast %52 : vector<1x4x32x8xf32> to vector<4x32x8xf32>
    "tpu.trace_start"() <{level = 10 : i32, message = "hnd,hdk->hnk"}> : () -> ()
    %cst_42 = arith.constant dense<0.000000e+00> : vector<4x9x8xf32>
    %54 = tpu.matmul %45, %53, %cst_42 {dimension_numbers = #tpu.dot_dimension_numbers<[2], [1], [1], [2], [0, 0, 0, 1, 1, 2], [0], [0]>} : vector<4x9x32xf32>, vector<4x32x8xf32>, vector<4x9x8xf32> -> vector<4x9x8xf32>
    "tpu.trace_stop"() : () -> ()
    "tpu.trace_start"() <{level = 10 : i32, message = "hqd,hkd->hqk"}> : () -> ()
    %cst_43 = arith.constant dense<0.000000e+00> : vector<4x9x9xf32>
    %55 = tpu.matmul %48, %51, %cst_43 {dimension_numbers = #tpu.dot_dimension_numbers<[2], [2], [1], [1], [0, 0, 0, 1, 1, 1], [0], [0]>} : vector<4x9x8xf32>, vector<4x9x8xf32>, vector<4x9x9xf32> -> vector<4x9x9xf32>
    "tpu.trace_stop"() : () -> ()
    %cst_44 = arith.constant 0.176776692 : f32
    %56 = vector.broadcast %cst_44 : f32 to vector<4x9x9xf32>
    %57 = arith.mulf %55, %56 : vector<4x9x9xf32>
    %cst_45 = arith.constant dense<0xFF800000> : vector<4x9xf32>
    %58 = vector.multi_reduction <maximumf>, %57, %cst_45 [2] : vector<4x9x9xf32> to vector<4x9xf32>
    %59 = vector.shape_cast %58 : vector<4x9xf32> to vector<4x9x1xf32>
    %60 = vector.broadcast %59 : vector<4x9x1xf32> to vector<4x9x9xf32>
    %61 = arith.subf %57, %60 : vector<4x9x9xf32>
    %62 = math.exp %61 : vector<4x9x9xf32>
    %cst_46 = arith.constant dense<0.000000e+00> : vector<4x9xf32>
    %63 = vector.multi_reduction <add>, %62, %cst_46 [2] : vector<4x9x9xf32> to vector<4x9xf32>
    %64 = vector.shape_cast %63 : vector<4x9xf32> to vector<4x9x1xf32>
    %65 = tpu.reciprocal %64 {approx = true} : vector<4x9x1xf32> -> vector<4x9x1xf32>
    %66 = vector.broadcast %65 : vector<4x9x1xf32> to vector<4x9x9xf32>
    %67 = arith.mulf %62, %66 : vector<4x9x9xf32>
    "tpu.trace_start"() <{level = 10 : i32, message = "hqk,hkd->hqd"}> : () -> ()
    %cst_47 = arith.constant dense<0.000000e+00> : vector<4x9x8xf32>
    %68 = tpu.matmul %67, %54, %cst_47 {dimension_numbers = #tpu.dot_dimension_numbers<[2], [1], [1], [2], [0, 0, 0, 1, 1, 2], [0], [0]>} : vector<4x9x9xf32>, vector<4x9x8xf32>, vector<4x9x8xf32> -> vector<4x9x8xf32>
    "tpu.trace_stop"() : () -> ()
    %c0_48 = arith.constant 0 : index
    %c0_49 = arith.constant 0 : index
    %c0_50 = arith.constant 0 : index
    %c0_51 = arith.constant 0 : index
    %69 = vector.load %arg11[%c0_48, %c0_49, %c0_50, %c0_51] : memref<2x4x8x32xf32, #tpu.memory_space<vmem>>, vector<1x4x8x32xf32>
    %70 = vector.shape_cast %69 : vector<1x4x8x32xf32> to vector<4x8x32xf32>
    "tpu.trace_start"() <{level = 10 : i32, message = "hnd,hdk->hnk"}> : () -> ()
    %cst_52 = arith.constant dense<0.000000e+00> : vector<4x9x32xf32>
    %71 = tpu.matmul %68, %70, %cst_52 {dimension_numbers = #tpu.dot_dimension_numbers<[2], [1], [1], [2], [0, 0, 0, 1, 1, 2], [0], [0]>} : vector<4x9x8xf32>, vector<4x8x32xf32>, vector<4x9x32xf32> -> vector<4x9x32xf32>
    "tpu.trace_stop"() : () -> ()
    %72 = vector.extract_strided_slice %71 {offsets = [0, 0, 0], sizes = [1, 9, 32], strides = [1, 1, 1]} : vector<4x9x32xf32> to vector<1x9x32xf32>
    %73 = vector.shape_cast %72 : vector<1x9x32xf32> to vector<9x32xf32>
    %74 = vector.extract_strided_slice %71 {offsets = [1, 0, 0], sizes = [1, 9, 32], strides = [1, 1, 1]} : vector<4x9x32xf32> to vector<1x9x32xf32>
    %75 = vector.shape_cast %74 : vector<1x9x32xf32> to vector<9x32xf32>
    %76 = arith.addf %73, %75 : vector<9x32xf32>
    %77 = vector.extract_strided_slice %71 {offsets = [2, 0, 0], sizes = [1, 9, 32], strides = [1, 1, 1]} : vector<4x9x32xf32> to vector<1x9x32xf32>
    %78 = vector.shape_cast %77 : vector<1x9x32xf32> to vector<9x32xf32>
    %79 = arith.addf %76, %78 : vector<9x32xf32>
    %80 = vector.extract_strided_slice %71 {offsets = [3, 0, 0], sizes = [1, 9, 32], strides = [1, 1, 1]} : vector<4x9x32xf32> to vector<1x9x32xf32>
    %81 = vector.shape_cast %80 : vector<1x9x32xf32> to vector<9x32xf32>
    %82 = arith.addf %79, %81 : vector<9x32xf32>
    %83 = arith.addf %17, %82 : vector<9x32xf32>
    %c0_53 = arith.constant 0 : index
    %c0_54 = arith.constant 0 : index
    %c0_55 = arith.constant 0 : index
    %84 = vector.load %arg12[%c0_53, %c0_54, %c0_55] : memref<2x1x32xf32, #tpu.memory_space<vmem>>, vector<1x1x32xf32>
    %85 = vector.shape_cast %84 : vector<1x1x32xf32> to vector<1x32xf32>
    %86 = vector.broadcast %85 : vector<1x32xf32> to vector<9x32xf32>
    %87 = arith.addf %83, %86 : vector<9x32xf32>
    %c0_56 = arith.constant 0 : index
    %c0_57 = arith.constant 0 : index
    %c0_58 = arith.constant 0 : index
    %88 = vector.load %arg13[%c0_56, %c0_57, %c0_58] : memref<2x1x32xf32, #tpu.memory_space<vmem>>, vector<1x1x32xf32>
    %89 = vector.shape_cast %88 : vector<1x1x32xf32> to vector<1x32xf32>
    %c0_59 = arith.constant 0 : index
    %c0_60 = arith.constant 0 : index
    %c0_61 = arith.constant 0 : index
    %90 = vector.load %arg14[%c0_59, %c0_60, %c0_61] : memref<2x1x32xf32, #tpu.memory_space<vmem>>, vector<1x1x32xf32>
    %91 = vector.shape_cast %90 : vector<1x1x32xf32> to vector<1x32xf32>
    %cst_62 = arith.constant dense<0.000000e+00> : vector<9xf32>
    %92 = vector.multi_reduction <add>, %87, %cst_62 [1] : vector<9x32xf32> to vector<9xf32>
    %93 = vector.shape_cast %92 : vector<9xf32> to vector<9x1xf32>
    %cst_63 = arith.constant 3.200000e+01 : f32
    %94 = vector.broadcast %cst_63 : f32 to vector<9x1xf32>
    %95 = arith.divf %93, %94 : vector<9x1xf32>
    %96 = arith.mulf %87, %87 : vector<9x32xf32>
    %cst_64 = arith.constant dense<0.000000e+00> : vector<9xf32>
    %97 = vector.multi_reduction <add>, %96, %cst_64 [1] : vector<9x32xf32> to vector<9xf32>
    %98 = vector.shape_cast %97 : vector<9xf32> to vector<9x1xf32>
    %cst_65 = arith.constant 3.200000e+01 : f32
    %99 = vector.broadcast %cst_65 : f32 to vector<9x1xf32>
    %100 = arith.divf %98, %99 : vector<9x1xf32>
    %101 = arith.mulf %95, %95 : vector<9x1xf32>
    %102 = arith.subf %100, %101 : vector<9x1xf32>
    %103 = vector.broadcast %95 : vector<9x1xf32> to vector<9x32xf32>
    %104 = arith.subf %87, %103 : vector<9x32xf32>
    %cst_66 = arith.constant 9.99999974E-6 : f32
    %105 = vector.broadcast %cst_66 : f32 to vector<9x1xf32>
    %106 = arith.addf %102, %105 : vector<9x1xf32>
    %107 = math.rsqrt %106 : vector<9x1xf32>
    %108 = vector.broadcast %107 : vector<9x1xf32> to vector<9x32xf32>
    %109 = arith.mulf %104, %108 : vector<9x32xf32>
    %110 = vector.broadcast %89 : vector<1x32xf32> to vector<9x32xf32>
    %111 = arith.mulf %109, %110 : vector<9x32xf32>
    %112 = vector.broadcast %91 : vector<1x32xf32> to vector<9x32xf32>
    %113 = arith.addf %111, %112 : vector<9x32xf32>
    %c0_67 = arith.constant 0 : index
    %c0_68 = arith.constant 0 : index
    %c0_69 = arith.constant 0 : index
    %114 = vector.load %arg15[%c0_67, %c0_68, %c0_69] : memref<2x32x64xf32, #tpu.memory_space<vmem>>, vector<1x32x64xf32>
    %115 = vector.shape_cast %114 : vector<1x32x64xf32> to vector<32x64xf32>
    %cst_70 = arith.constant dense<0.000000e+00> : vector<9x64xf32>
    %116 = tpu.matmul %113, %115, %cst_70 {dimension_numbers = #tpu.dot_dimension_numbers<[1], [0], [0], [1], [0, 0, 1, 1], [], []>} : vector<9x32xf32>, vector<32x64xf32>, vector<9x64xf32> -> vector<9x64xf32>
    %c0_71 = arith.constant 0 : index
    %c0_72 = arith.constant 0 : index
    %c0_73 = arith.constant 0 : index
    %117 = vector.load %arg16[%c0_71, %c0_72, %c0_73] : memref<2x1x64xf32, #tpu.memory_space<vmem>>, vector<1x1x64xf32>
    %118 = vector.shape_cast %117 : vector<1x1x64xf32> to vector<1x64xf32>
    %119 = vector.broadcast %118 : vector<1x64xf32> to vector<9x64xf32>
    %120 = arith.addf %116, %119 : vector<9x64xf32>
    %cst_74 = arith.constant 0.000000e+00 : f32
    %121 = vector.broadcast %cst_74 : f32 to vector<9x64xf32>
    %122 = arith.maximumf %120, %121 : vector<9x64xf32>
    %c0_75 = arith.constant 0 : index
    %c0_76 = arith.constant 0 : index
    %c0_77 = arith.constant 0 : index
    %123 = vector.load %arg17[%c0_75, %c0_76, %c0_77] : memref<2x64x32xf32, #tpu.memory_space<vmem>>, vector<1x64x32xf32>
    %124 = vector.shape_cast %123 : vector<1x64x32xf32> to vector<64x32xf32>
    %cst_78 = arith.constant dense<0.000000e+00> : vector<9x32xf32>
    %125 = tpu.matmul %122, %124, %cst_78 {dimension_numbers = #tpu.dot_dimension_numbers<[1], [0], [0], [1], [0, 0, 1, 1], [], []>} : vector<9x64xf32>, vector<64x32xf32>, vector<9x32xf32> -> vector<9x32xf32>
    %c0_79 = arith.constant 0 : index
    %c0_80 = arith.constant 0 : index
    %c0_81 = arith.constant 0 : index
    %126 = vector.load %arg18[%c0_79, %c0_80, %c0_81] : memref<2x1x32xf32, #tpu.memory_space<vmem>>, vector<1x1x32xf32>
    %127 = vector.shape_cast %126 : vector<1x1x32xf32> to vector<1x32xf32>
    %128 = vector.broadcast %127 : vector<1x32xf32> to vector<9x32xf32>
    %129 = arith.addf %125, %128 : vector<9x32xf32>
    %130 = arith.addf %87, %129 : vector<9x32xf32>
    %c1_82 = arith.constant 1 : index
    %c0_83 = arith.constant 0 : index
    %c0_84 = arith.constant 0 : index
    %131 = vector.load %arg6[%c1_82, %c0_83, %c0_84] : memref<2x1x32xf32, #tpu.memory_space<vmem>>, vector<1x1x32xf32>
    %132 = vector.shape_cast %131 : vector<1x1x32xf32> to vector<1x32xf32>
    %c1_85 = arith.constant 1 : index
    %c0_86 = arith.constant 0 : index
    %c0_87 = arith.constant 0 : index
    %133 = vector.load %arg7[%c1_85, %c0_86, %c0_87] : memref<2x1x32xf32, #tpu.memory_space<vmem>>, vector<1x1x32xf32>
    %134 = vector.shape_cast %133 : vector<1x1x32xf32> to vector<1x32xf32>
    %cst_88 = arith.constant dense<0.000000e+00> : vector<9xf32>
    %135 = vector.multi_reduction <add>, %130, %cst_88 [1] : vector<9x32xf32> to vector<9xf32>
    %136 = vector.shape_cast %135 : vector<9xf32> to vector<9x1xf32>
    %cst_89 = arith.constant 3.200000e+01 : f32
    %137 = vector.broadcast %cst_89 : f32 to vector<9x1xf32>
    %138 = arith.divf %136, %137 : vector<9x1xf32>
    %139 = arith.mulf %130, %130 : vector<9x32xf32>
    %cst_90 = arith.constant dense<0.000000e+00> : vector<9xf32>
    %140 = vector.multi_reduction <add>, %139, %cst_90 [1] : vector<9x32xf32> to vector<9xf32>
    %141 = vector.shape_cast %140 : vector<9xf32> to vector<9x1xf32>
    %cst_91 = arith.constant 3.200000e+01 : f32
    %142 = vector.broadcast %cst_91 : f32 to vector<9x1xf32>
    %143 = arith.divf %141, %142 : vector<9x1xf32>
    %144 = arith.mulf %138, %138 : vector<9x1xf32>
    %145 = arith.subf %143, %144 : vector<9x1xf32>
    %146 = vector.broadcast %138 : vector<9x1xf32> to vector<9x32xf32>
    %147 = arith.subf %130, %146 : vector<9x32xf32>
    %cst_92 = arith.constant 9.99999974E-6 : f32
    %148 = vector.broadcast %cst_92 : f32 to vector<9x1xf32>
    %149 = arith.addf %145, %148 : vector<9x1xf32>
    %150 = math.rsqrt %149 : vector<9x1xf32>
    %151 = vector.broadcast %150 : vector<9x1xf32> to vector<9x32xf32>
    %152 = arith.mulf %147, %151 : vector<9x32xf32>
    %153 = vector.broadcast %132 : vector<1x32xf32> to vector<9x32xf32>
    %154 = arith.mulf %152, %153 : vector<9x32xf32>
    %155 = vector.broadcast %134 : vector<1x32xf32> to vector<9x32xf32>
    %156 = arith.addf %154, %155 : vector<9x32xf32>
    %157 = vector.shape_cast %156 : vector<9x32xf32> to vector<1x9x32xf32>
    %158 = vector.broadcast %157 : vector<1x9x32xf32> to vector<4x9x32xf32>
    %c1_93 = arith.constant 1 : index
    %c0_94 = arith.constant 0 : index
    %c0_95 = arith.constant 0 : index
    %c0_96 = arith.constant 0 : index
    %159 = vector.load %arg8[%c1_93, %c0_94, %c0_95, %c0_96] : memref<2x4x32x8xf32, #tpu.memory_space<vmem>>, vector<1x4x32x8xf32>
    %160 = vector.shape_cast %159 : vector<1x4x32x8xf32> to vector<4x32x8xf32>
    "tpu.trace_start"() <{level = 10 : i32, message = "hnd,hdk->hnk"}> : () -> ()
    %cst_97 = arith.constant dense<0.000000e+00> : vector<4x9x8xf32>
    %161 = tpu.matmul %158, %160, %cst_97 {dimension_numbers = #tpu.dot_dimension_numbers<[2], [1], [1], [2], [0, 0, 0, 1, 1, 2], [0], [0]>} : vector<4x9x32xf32>, vector<4x32x8xf32>, vector<4x9x8xf32> -> vector<4x9x8xf32>
    "tpu.trace_stop"() : () -> ()
    %c1_98 = arith.constant 1 : index
    %c0_99 = arith.constant 0 : index
    %c0_100 = arith.constant 0 : index
    %c0_101 = arith.constant 0 : index
    %162 = vector.load %arg9[%c1_98, %c0_99, %c0_100, %c0_101] : memref<2x4x32x8xf32, #tpu.memory_space<vmem>>, vector<1x4x32x8xf32>
    %163 = vector.shape_cast %162 : vector<1x4x32x8xf32> to vector<4x32x8xf32>
    "tpu.trace_start"() <{level = 10 : i32, message = "hnd,hdk->hnk"}> : () -> ()
    %cst_102 = arith.constant dense<0.000000e+00> : vector<4x9x8xf32>
    %164 = tpu.matmul %158, %163, %cst_102 {dimension_numbers = #tpu.dot_dimension_numbers<[2], [1], [1], [2], [0, 0, 0, 1, 1, 2], [0], [0]>} : vector<4x9x32xf32>, vector<4x32x8xf32>, vector<4x9x8xf32> -> vector<4x9x8xf32>
    "tpu.trace_stop"() : () -> ()
    %c1_103 = arith.constant 1 : index
    %c0_104 = arith.constant 0 : index
    %c0_105 = arith.constant 0 : index
    %c0_106 = arith.constant 0 : index
    %165 = vector.load %arg10[%c1_103, %c0_104, %c0_105, %c0_106] : memref<2x4x32x8xf32, #tpu.memory_space<vmem>>, vector<1x4x32x8xf32>
    %166 = vector.shape_cast %165 : vector<1x4x32x8xf32> to vector<4x32x8xf32>
    "tpu.trace_start"() <{level = 10 : i32, message = "hnd,hdk->hnk"}> : () -> ()
    %cst_107 = arith.constant dense<0.000000e+00> : vector<4x9x8xf32>
    %167 = tpu.matmul %158, %166, %cst_107 {dimension_numbers = #tpu.dot_dimension_numbers<[2], [1], [1], [2], [0, 0, 0, 1, 1, 2], [0], [0]>} : vector<4x9x32xf32>, vector<4x32x8xf32>, vector<4x9x8xf32> -> vector<4x9x8xf32>
    "tpu.trace_stop"() : () -> ()
    "tpu.trace_start"() <{level = 10 : i32, message = "hqd,hkd->hqk"}> : () -> ()
    %cst_108 = arith.constant dense<0.000000e+00> : vector<4x9x9xf32>
    %168 = tpu.matmul %161, %164, %cst_108 {dimension_numbers = #tpu.dot_dimension_numbers<[2], [2], [1], [1], [0, 0, 0, 1, 1, 1], [0], [0]>} : vector<4x9x8xf32>, vector<4x9x8xf32>, vector<4x9x9xf32> -> vector<4x9x9xf32>
    "tpu.trace_stop"() : () -> ()
    %cst_109 = arith.constant 0.176776692 : f32
    %169 = vector.broadcast %cst_109 : f32 to vector<4x9x9xf32>
    %170 = arith.mulf %168, %169 : vector<4x9x9xf32>
    %cst_110 = arith.constant dense<0xFF800000> : vector<4x9xf32>
    %171 = vector.multi_reduction <maximumf>, %170, %cst_110 [2] : vector<4x9x9xf32> to vector<4x9xf32>
    %172 = vector.shape_cast %171 : vector<4x9xf32> to vector<4x9x1xf32>
    %173 = vector.broadcast %172 : vector<4x9x1xf32> to vector<4x9x9xf32>
    %174 = arith.subf %170, %173 : vector<4x9x9xf32>
    %175 = math.exp %174 : vector<4x9x9xf32>
    %cst_111 = arith.constant dense<0.000000e+00> : vector<4x9xf32>
    %176 = vector.multi_reduction <add>, %175, %cst_111 [2] : vector<4x9x9xf32> to vector<4x9xf32>
    %177 = vector.shape_cast %176 : vector<4x9xf32> to vector<4x9x1xf32>
    %178 = tpu.reciprocal %177 {approx = true} : vector<4x9x1xf32> -> vector<4x9x1xf32>
    %179 = vector.broadcast %178 : vector<4x9x1xf32> to vector<4x9x9xf32>
    %180 = arith.mulf %175, %179 : vector<4x9x9xf32>
    "tpu.trace_start"() <{level = 10 : i32, message = "hqk,hkd->hqd"}> : () -> ()
    %cst_112 = arith.constant dense<0.000000e+00> : vector<4x9x8xf32>
    %181 = tpu.matmul %180, %167, %cst_112 {dimension_numbers = #tpu.dot_dimension_numbers<[2], [1], [1], [2], [0, 0, 0, 1, 1, 2], [0], [0]>} : vector<4x9x9xf32>, vector<4x9x8xf32>, vector<4x9x8xf32> -> vector<4x9x8xf32>
    "tpu.trace_stop"() : () -> ()
    %c1_113 = arith.constant 1 : index
    %c0_114 = arith.constant 0 : index
    %c0_115 = arith.constant 0 : index
    %c0_116 = arith.constant 0 : index
    %182 = vector.load %arg11[%c1_113, %c0_114, %c0_115, %c0_116] : memref<2x4x8x32xf32, #tpu.memory_space<vmem>>, vector<1x4x8x32xf32>
    %183 = vector.shape_cast %182 : vector<1x4x8x32xf32> to vector<4x8x32xf32>
    "tpu.trace_start"() <{level = 10 : i32, message = "hnd,hdk->hnk"}> : () -> ()
    %cst_117 = arith.constant dense<0.000000e+00> : vector<4x9x32xf32>
    %184 = tpu.matmul %181, %183, %cst_117 {dimension_numbers = #tpu.dot_dimension_numbers<[2], [1], [1], [2], [0, 0, 0, 1, 1, 2], [0], [0]>} : vector<4x9x8xf32>, vector<4x8x32xf32>, vector<4x9x32xf32> -> vector<4x9x32xf32>
    "tpu.trace_stop"() : () -> ()
    %185 = vector.extract_strided_slice %184 {offsets = [0, 0, 0], sizes = [1, 9, 32], strides = [1, 1, 1]} : vector<4x9x32xf32> to vector<1x9x32xf32>
    %186 = vector.shape_cast %185 : vector<1x9x32xf32> to vector<9x32xf32>
    %187 = vector.extract_strided_slice %184 {offsets = [1, 0, 0], sizes = [1, 9, 32], strides = [1, 1, 1]} : vector<4x9x32xf32> to vector<1x9x32xf32>
    %188 = vector.shape_cast %187 : vector<1x9x32xf32> to vector<9x32xf32>
    %189 = arith.addf %186, %188 : vector<9x32xf32>
    %190 = vector.extract_strided_slice %184 {offsets = [2, 0, 0], sizes = [1, 9, 32], strides = [1, 1, 1]} : vector<4x9x32xf32> to vector<1x9x32xf32>
    %191 = vector.shape_cast %190 : vector<1x9x32xf32> to vector<9x32xf32>
    %192 = arith.addf %189, %191 : vector<9x32xf32>
    %193 = vector.extract_strided_slice %184 {offsets = [3, 0, 0], sizes = [1, 9, 32], strides = [1, 1, 1]} : vector<4x9x32xf32> to vector<1x9x32xf32>
    %194 = vector.shape_cast %193 : vector<1x9x32xf32> to vector<9x32xf32>
    %195 = arith.addf %192, %194 : vector<9x32xf32>
    %196 = arith.addf %130, %195 : vector<9x32xf32>
    %c1_118 = arith.constant 1 : index
    %c0_119 = arith.constant 0 : index
    %c0_120 = arith.constant 0 : index
    %197 = vector.load %arg12[%c1_118, %c0_119, %c0_120] : memref<2x1x32xf32, #tpu.memory_space<vmem>>, vector<1x1x32xf32>
    %198 = vector.shape_cast %197 : vector<1x1x32xf32> to vector<1x32xf32>
    %199 = vector.broadcast %198 : vector<1x32xf32> to vector<9x32xf32>
    %200 = arith.addf %196, %199 : vector<9x32xf32>
    %c1_121 = arith.constant 1 : index
    %c0_122 = arith.constant 0 : index
    %c0_123 = arith.constant 0 : index
    %201 = vector.load %arg13[%c1_121, %c0_122, %c0_123] : memref<2x1x32xf32, #tpu.memory_space<vmem>>, vector<1x1x32xf32>
    %202 = vector.shape_cast %201 : vector<1x1x32xf32> to vector<1x32xf32>
    %c1_124 = arith.constant 1 : index
    %c0_125 = arith.constant 0 : index
    %c0_126 = arith.constant 0 : index
    %203 = vector.load %arg14[%c1_124, %c0_125, %c0_126] : memref<2x1x32xf32, #tpu.memory_space<vmem>>, vector<1x1x32xf32>
    %204 = vector.shape_cast %203 : vector<1x1x32xf32> to vector<1x32xf32>
    %cst_127 = arith.constant dense<0.000000e+00> : vector<9xf32>
    %205 = vector.multi_reduction <add>, %200, %cst_127 [1] : vector<9x32xf32> to vector<9xf32>
    %206 = vector.shape_cast %205 : vector<9xf32> to vector<9x1xf32>
    %cst_128 = arith.constant 3.200000e+01 : f32
    %207 = vector.broadcast %cst_128 : f32 to vector<9x1xf32>
    %208 = arith.divf %206, %207 : vector<9x1xf32>
    %209 = arith.mulf %200, %200 : vector<9x32xf32>
    %cst_129 = arith.constant dense<0.000000e+00> : vector<9xf32>
    %210 = vector.multi_reduction <add>, %209, %cst_129 [1] : vector<9x32xf32> to vector<9xf32>
    %211 = vector.shape_cast %210 : vector<9xf32> to vector<9x1xf32>
    %cst_130 = arith.constant 3.200000e+01 : f32
    %212 = vector.broadcast %cst_130 : f32 to vector<9x1xf32>
    %213 = arith.divf %211, %212 : vector<9x1xf32>
    %214 = arith.mulf %208, %208 : vector<9x1xf32>
    %215 = arith.subf %213, %214 : vector<9x1xf32>
    %216 = vector.broadcast %208 : vector<9x1xf32> to vector<9x32xf32>
    %217 = arith.subf %200, %216 : vector<9x32xf32>
    %cst_131 = arith.constant 9.99999974E-6 : f32
    %218 = vector.broadcast %cst_131 : f32 to vector<9x1xf32>
    %219 = arith.addf %215, %218 : vector<9x1xf32>
    %220 = math.rsqrt %219 : vector<9x1xf32>
    %221 = vector.broadcast %220 : vector<9x1xf32> to vector<9x32xf32>
    %222 = arith.mulf %217, %221 : vector<9x32xf32>
    %223 = vector.broadcast %202 : vector<1x32xf32> to vector<9x32xf32>
    %224 = arith.mulf %222, %223 : vector<9x32xf32>
    %225 = vector.broadcast %204 : vector<1x32xf32> to vector<9x32xf32>
    %226 = arith.addf %224, %225 : vector<9x32xf32>
    %c1_132 = arith.constant 1 : index
    %c0_133 = arith.constant 0 : index
    %c0_134 = arith.constant 0 : index
    %227 = vector.load %arg15[%c1_132, %c0_133, %c0_134] : memref<2x32x64xf32, #tpu.memory_space<vmem>>, vector<1x32x64xf32>
    %228 = vector.shape_cast %227 : vector<1x32x64xf32> to vector<32x64xf32>
    %cst_135 = arith.constant dense<0.000000e+00> : vector<9x64xf32>
    %229 = tpu.matmul %226, %228, %cst_135 {dimension_numbers = #tpu.dot_dimension_numbers<[1], [0], [0], [1], [0, 0, 1, 1], [], []>} : vector<9x32xf32>, vector<32x64xf32>, vector<9x64xf32> -> vector<9x64xf32>
    %c1_136 = arith.constant 1 : index
    %c0_137 = arith.constant 0 : index
    %c0_138 = arith.constant 0 : index
    %230 = vector.load %arg16[%c1_136, %c0_137, %c0_138] : memref<2x1x64xf32, #tpu.memory_space<vmem>>, vector<1x1x64xf32>
    %231 = vector.shape_cast %230 : vector<1x1x64xf32> to vector<1x64xf32>
    %232 = vector.broadcast %231 : vector<1x64xf32> to vector<9x64xf32>
    %233 = arith.addf %229, %232 : vector<9x64xf32>
    %cst_139 = arith.constant 0.000000e+00 : f32
    %234 = vector.broadcast %cst_139 : f32 to vector<9x64xf32>
    %235 = arith.maximumf %233, %234 : vector<9x64xf32>
    %c1_140 = arith.constant 1 : index
    %c0_141 = arith.constant 0 : index
    %c0_142 = arith.constant 0 : index
    %236 = vector.load %arg17[%c1_140, %c0_141, %c0_142] : memref<2x64x32xf32, #tpu.memory_space<vmem>>, vector<1x64x32xf32>
    %237 = vector.shape_cast %236 : vector<1x64x32xf32> to vector<64x32xf32>
    %cst_143 = arith.constant dense<0.000000e+00> : vector<9x32xf32>
    %238 = tpu.matmul %235, %237, %cst_143 {dimension_numbers = #tpu.dot_dimension_numbers<[1], [0], [0], [1], [0, 0, 1, 1], [], []>} : vector<9x64xf32>, vector<64x32xf32>, vector<9x32xf32> -> vector<9x32xf32>
    %c1_144 = arith.constant 1 : index
    %c0_145 = arith.constant 0 : index
    %c0_146 = arith.constant 0 : index
    %239 = vector.load %arg18[%c1_144, %c0_145, %c0_146] : memref<2x1x32xf32, #tpu.memory_space<vmem>>, vector<1x1x32xf32>
    %240 = vector.shape_cast %239 : vector<1x1x32xf32> to vector<1x32xf32>
    %241 = vector.broadcast %240 : vector<1x32xf32> to vector<9x32xf32>
    %242 = arith.addf %238, %241 : vector<9x32xf32>
    %243 = arith.addf %200, %242 : vector<9x32xf32>
    %c0_147 = arith.constant 0 : index
    %c0_148 = arith.constant 0 : index
    %c0_149 = arith.constant 0 : index
    %244 = vector.load %arg19[%c0_147, %c0_148, %c0_149] : memref<2x9x32xf32, #tpu.memory_space<vmem>>, vector<1x9x32xf32>
    %245 = vector.shape_cast %244 : vector<1x9x32xf32> to vector<9x32xf32>
    %246 = vector.shape_cast %243 : vector<9x32xf32> to vector<1x9x32xf32>
    tpu.vector_store %arg19[%c0_147, %c0_148, %c0_149], %246 {strides = array<i32>} : memref<2x9x32xf32, #tpu.memory_space<vmem>>, vector<1x9x32xf32>,
    %c0_150 = arith.constant 0 : index
    %c0_151 = arith.constant 0 : index
    %247 = vector.load %arg5[%c0_150, %c0_151] : memref<1x32xf32, #tpu.memory_space<vmem>>, vector<1x32xf32>
    %c1_152 = arith.constant 1 : index
    %c0_153 = arith.constant 0 : index
    %c0_154 = arith.constant 0 : index
    %248 = vector.load %arg19[%c1_152, %c0_153, %c0_154] : memref<2x9x32xf32, #tpu.memory_space<vmem>>, vector<1x1x32xf32>
    %249 = vector.shape_cast %248 : vector<1x1x32xf32> to vector<1x32xf32>
    %250 = vector.shape_cast %247 : vector<1x32xf32> to vector<1x1x32xf32>
    tpu.vector_store %arg19[%c1_152, %c0_153, %c0_154], %250 {strides = array<i32>} : memref<2x9x32xf32, #tpu.memory_space<vmem>>, vector<1x1x32xf32>,
    %251 = vector.extract_strided_slice %7 {offsets = [8, 0], sizes = [8, 32], strides = [1, 1]} : vector<16x32xf32> to vector<8x32xf32>
    %c1_155 = arith.constant 1 : index
    %c1_156 = arith.constant 1 : index
    %c0_157 = arith.constant 0 : index
    %252 = vector.load %arg19[%c1_155, %c1_156, %c0_157] : memref<2x9x32xf32, #tpu.memory_space<vmem>>, vector<1x8x32xf32>
    %253 = vector.shape_cast %252 : vector<1x8x32xf32> to vector<8x32xf32>
    %254 = vector.shape_cast %251 : vector<8x32xf32> to vector<1x8x32xf32>
    tpu.vector_store %arg19[%c1_155, %c1_156, %c0_157], %254 {strides = array<i32>} : memref<2x9x32xf32, #tpu.memory_space<vmem>>, vector<1x8x32xf32>,
    %c1_158 = arith.constant 1 : index
    %c0_159 = arith.constant 0 : index
    %c0_160 = arith.constant 0 : index
    %255 = vector.load %arg19[%c1_158, %c0_159, %c0_160] : memref<2x9x32xf32, #tpu.memory_space<vmem>>, vector<1x9x32xf32>
    %256 = vector.shape_cast %255 : vector<1x9x32xf32> to vector<9x32xf32>
    %c0_161 = arith.constant 0 : index
    %c0_162 = arith.constant 0 : index
    %c0_163 = arith.constant 0 : index
    %257 = vector.load %arg6[%c0_161, %c0_162, %c0_163] : memref<2x1x32xf32, #tpu.memory_space<vmem>>, vector<1x1x32xf32>
    %258 = vector.shape_cast %257 : vector<1x1x32xf32> to vector<1x32xf32>
    %c0_164 = arith.constant 0 : index
    %c0_165 = arith.constant 0 : index
    %c0_166 = arith.constant 0 : index
    %259 = vector.load %arg7[%c0_164, %c0_165, %c0_166] : memref<2x1x32xf32, #tpu.memory_space<vmem>>, vector<1x1x32xf32>
    %260 = vector.shape_cast %259 : vector<1x1x32xf32> to vector<1x32xf32>
    %cst_167 = arith.constant dense<0.000000e+00> : vector<9xf32>
    %261 = vector.multi_reduction <add>, %256, %cst_167 [1] : vector<9x32xf32> to vector<9xf32>
    %262 = vector.shape_cast %261 : vector<9xf32> to vector<9x1xf32>
    %cst_168 = arith.constant 3.200000e+01 : f32
    %263 = vector.broadcast %cst_168 : f32 to vector<9x1xf32>
    %264 = arith.divf %262, %263 : vector<9x1xf32>
    %265 = arith.mulf %256, %256 : vector<9x32xf32>
    %cst_169 = arith.constant dense<0.000000e+00> : vector<9xf32>
    %266 = vector.multi_reduction <add>, %265, %cst_169 [1] : vector<9x32xf32> to vector<9xf32>
    %267 = vector.shape_cast %266 : vector<9xf32> to vector<9x1xf32>
    %cst_170 = arith.constant 3.200000e+01 : f32
    %268 = vector.broadcast %cst_170 : f32 to vector<9x1xf32>
    %269 = arith.divf %267, %268 : vector<9x1xf32>
    %270 = arith.mulf %264, %264 : vector<9x1xf32>
    %271 = arith.subf %269, %270 : vector<9x1xf32>
    %272 = vector.broadcast %264 : vector<9x1xf32> to vector<9x32xf32>
    %273 = arith.subf %256, %272 : vector<9x32xf32>
    %cst_171 = arith.constant 9.99999974E-6 : f32
    %274 = vector.broadcast %cst_171 : f32 to vector<9x1xf32>
    %275 = arith.addf %271, %274 : vector<9x1xf32>
    %276 = math.rsqrt %275 : vector<9x1xf32>
    %277 = vector.broadcast %276 : vector<9x1xf32> to vector<9x32xf32>
    %278 = arith.mulf %273, %277 : vector<9x32xf32>
    %279 = vector.broadcast %258 : vector<1x32xf32> to vector<9x32xf32>
    %280 = arith.mulf %278, %279 : vector<9x32xf32>
    %281 = vector.broadcast %260 : vector<1x32xf32> to vector<9x32xf32>
    %282 = arith.addf %280, %281 : vector<9x32xf32>
    %283 = vector.shape_cast %282 : vector<9x32xf32> to vector<1x9x32xf32>
    %284 = vector.broadcast %283 : vector<1x9x32xf32> to vector<4x9x32xf32>
    %c0_172 = arith.constant 0 : index
    %c0_173 = arith.constant 0 : index
    %c0_174 = arith.constant 0 : index
    %c0_175 = arith.constant 0 : index
    %285 = vector.load %arg8[%c0_172, %c0_173, %c0_174, %c0_175] : memref<2x4x32x8xf32, #tpu.memory_space<vmem>>, vector<1x4x32x8xf32>
    %286 = vector.shape_cast %285 : vector<1x4x32x8xf32> to vector<4x32x8xf32>
    "tpu.trace_start"() <{level = 10 : i32, message = "hnd,hdk->hnk"}> : () -> ()
    %cst_176 = arith.constant dense<0.000000e+00> : vector<4x9x8xf32>
    %287 = tpu.matmul %284, %286, %cst_176 {dimension_numbers = #tpu.dot_dimension_numbers<[2], [1], [1], [2], [0, 0, 0, 1, 1, 2], [0], [0]>} : vector<4x9x32xf32>, vector<4x32x8xf32>, vector<4x9x8xf32> -> vector<4x9x8xf32>
    "tpu.trace_stop"() : () -> ()
    %c0_177 = arith.constant 0 : index
    %c0_178 = arith.constant 0 : index
    %c0_179 = arith.constant 0 : index
    %c0_180 = arith.constant 0 : index
    %288 = vector.load %arg9[%c0_177, %c0_178, %c0_179, %c0_180] : memref<2x4x32x8xf32, #tpu.memory_space<vmem>>, vector<1x4x32x8xf32>
    %289 = vector.shape_cast %288 : vector<1x4x32x8xf32> to vector<4x32x8xf32>
    "tpu.trace_start"() <{level = 10 : i32, message = "hnd,hdk->hnk"}> : () -> ()
    %cst_181 = arith.constant dense<0.000000e+00> : vector<4x9x8xf32>
    %290 = tpu.matmul %284, %289, %cst_181 {dimension_numbers = #tpu.dot_dimension_numbers<[2], [1], [1], [2], [0, 0, 0, 1, 1, 2], [0], [0]>} : vector<4x9x32xf32>, vector<4x32x8xf32>, vector<4x9x8xf32> -> vector<4x9x8xf32>
    "tpu.trace_stop"() : () -> ()
    %c0_182 = arith.constant 0 : index
    %c0_183 = arith.constant 0 : index
    %c0_184 = arith.constant 0 : index
    %c0_185 = arith.constant 0 : index
    %291 = vector.load %arg10[%c0_182, %c0_183, %c0_184, %c0_185] : memref<2x4x32x8xf32, #tpu.memory_space<vmem>>, vector<1x4x32x8xf32>
    %292 = vector.shape_cast %291 : vector<1x4x32x8xf32> to vector<4x32x8xf32>
    "tpu.trace_start"() <{level = 10 : i32, message = "hnd,hdk->hnk"}> : () -> ()
    %cst_186 = arith.constant dense<0.000000e+00> : vector<4x9x8xf32>
    %293 = tpu.matmul %284, %292, %cst_186 {dimension_numbers = #tpu.dot_dimension_numbers<[2], [1], [1], [2], [0, 0, 0, 1, 1, 2], [0], [0]>} : vector<4x9x32xf32>, vector<4x32x8xf32>, vector<4x9x8xf32> -> vector<4x9x8xf32>
    "tpu.trace_stop"() : () -> ()
    "tpu.trace_start"() <{level = 10 : i32, message = "hqd,hkd->hqk"}> : () -> ()
    %cst_187 = arith.constant dense<0.000000e+00> : vector<4x9x9xf32>
    %294 = tpu.matmul %287, %290, %cst_187 {dimension_numbers = #tpu.dot_dimension_numbers<[2], [2], [1], [1], [0, 0, 0, 1, 1, 1], [0], [0]>} : vector<4x9x8xf32>, vector<4x9x8xf32>, vector<4x9x9xf32> -> vector<4x9x9xf32>
    "tpu.trace_stop"() : () -> ()
    %cst_188 = arith.constant 0.176776692 : f32
    %295 = vector.broadcast %cst_188 : f32 to vector<4x9x9xf32>
    %296 = arith.mulf %294, %295 : vector<4x9x9xf32>
    %cst_189 = arith.constant dense<0xFF800000> : vector<4x9xf32>
    %297 = vector.multi_reduction <maximumf>, %296, %cst_189 [2] : vector<4x9x9xf32> to vector<4x9xf32>
    %298 = vector.shape_cast %297 : vector<4x9xf32> to vector<4x9x1xf32>
    %299 = vector.broadcast %298 : vector<4x9x1xf32> to vector<4x9x9xf32>
    %300 = arith.subf %296, %299 : vector<4x9x9xf32>
    %301 = math.exp %300 : vector<4x9x9xf32>
    %cst_190 = arith.constant dense<0.000000e+00> : vector<4x9xf32>
    %302 = vector.multi_reduction <add>, %301, %cst_190 [2] : vector<4x9x9xf32> to vector<4x9xf32>
    %303 = vector.shape_cast %302 : vector<4x9xf32> to vector<4x9x1xf32>
    %304 = tpu.reciprocal %303 {approx = true} : vector<4x9x1xf32> -> vector<4x9x1xf32>
    %305 = vector.broadcast %304 : vector<4x9x1xf32> to vector<4x9x9xf32>
    %306 = arith.mulf %301, %305 : vector<4x9x9xf32>
    "tpu.trace_start"() <{level = 10 : i32, message = "hqk,hkd->hqd"}> : () -> ()
    %cst_191 = arith.constant dense<0.000000e+00> : vector<4x9x8xf32>
    %307 = tpu.matmul %306, %293, %cst_191 {dimension_numbers = #tpu.dot_dimension_numbers<[2], [1], [1], [2], [0, 0, 0, 1, 1, 2], [0], [0]>} : vector<4x9x9xf32>, vector<4x9x8xf32>, vector<4x9x8xf32> -> vector<4x9x8xf32>
    "tpu.trace_stop"() : () -> ()
    %c0_192 = arith.constant 0 : index
    %c0_193 = arith.constant 0 : index
    %c0_194 = arith.constant 0 : index
    %c0_195 = arith.constant 0 : index
    %308 = vector.load %arg11[%c0_192, %c0_193, %c0_194, %c0_195] : memref<2x4x8x32xf32, #tpu.memory_space<vmem>>, vector<1x4x8x32xf32>
    %309 = vector.shape_cast %308 : vector<1x4x8x32xf32> to vector<4x8x32xf32>
    "tpu.trace_start"() <{level = 10 : i32, message = "hnd,hdk->hnk"}> : () -> ()
    %cst_196 = arith.constant dense<0.000000e+00> : vector<4x9x32xf32>
    %310 = tpu.matmul %307, %309, %cst_196 {dimension_numbers = #tpu.dot_dimension_numbers<[2], [1], [1], [2], [0, 0, 0, 1, 1, 2], [0], [0]>} : vector<4x9x8xf32>, vector<4x8x32xf32>, vector<4x9x32xf32> -> vector<4x9x32xf32>
    "tpu.trace_stop"() : () -> ()
    %311 = vector.extract_strided_slice %310 {offsets = [0, 0, 0], sizes = [1, 9, 32], strides = [1, 1, 1]} : vector<4x9x32xf32> to vector<1x9x32xf32>
    %312 = vector.shape_cast %311 : vector<1x9x32xf32> to vector<9x32xf32>
    %313 = vector.extract_strided_slice %310 {offsets = [1, 0, 0], sizes = [1, 9, 32], strides = [1, 1, 1]} : vector<4x9x32xf32> to vector<1x9x32xf32>
    %314 = vector.shape_cast %313 : vector<1x9x32xf32> to vector<9x32xf32>
    %315 = arith.addf %312, %314 : vector<9x32xf32>
    %316 = vector.extract_strided_slice %310 {offsets = [2, 0, 0], sizes = [1, 9, 32], strides = [1, 1, 1]} : vector<4x9x32xf32> to vector<1x9x32xf32>
    %317 = vector.shape_cast %316 : vector<1x9x32xf32> to vector<9x32xf32>
    %318 = arith.addf %315, %317 : vector<9x32xf32>
    %319 = vector.extract_strided_slice %310 {offsets = [3, 0, 0], sizes = [1, 9, 32], strides = [1, 1, 1]} : vector<4x9x32xf32> to vector<1x9x32xf32>
    %320 = vector.shape_cast %319 : vector<1x9x32xf32> to vector<9x32xf32>
    %321 = arith.addf %318, %320 : vector<9x32xf32>
    %322 = arith.addf %256, %321 : vector<9x32xf32>
    %c0_197 = arith.constant 0 : index
    %c0_198 = arith.constant 0 : index
    %c0_199 = arith.constant 0 : index
    %323 = vector.load %arg12[%c0_197, %c0_198, %c0_199] : memref<2x1x32xf32, #tpu.memory_space<vmem>>, vector<1x1x32xf32>
    %324 = vector.shape_cast %323 : vector<1x1x32xf32> to vector<1x32xf32>
    %325 = vector.broadcast %324 : vector<1x32xf32> to vector<9x32xf32>
    %326 = arith.addf %322, %325 : vector<9x32xf32>
    %c0_200 = arith.constant 0 : index
    %c0_201 = arith.constant 0 : index
    %c0_202 = arith.constant 0 : index
    %327 = vector.load %arg13[%c0_200, %c0_201, %c0_202] : memref<2x1x32xf32, #tpu.memory_space<vmem>>, vector<1x1x32xf32>
    %328 = vector.shape_cast %327 : vector<1x1x32xf32> to vector<1x32xf32>
    %c0_203 = arith.constant 0 : index
    %c0_204 = arith.constant 0 : index
    %c0_205 = arith.constant 0 : index
    %329 = vector.load %arg14[%c0_203, %c0_204, %c0_205] : memref<2x1x32xf32, #tpu.memory_space<vmem>>, vector<1x1x32xf32>
    %330 = vector.shape_cast %329 : vector<1x1x32xf32> to vector<1x32xf32>
    %cst_206 = arith.constant dense<0.000000e+00> : vector<9xf32>
    %331 = vector.multi_reduction <add>, %326, %cst_206 [1] : vector<9x32xf32> to vector<9xf32>
    %332 = vector.shape_cast %331 : vector<9xf32> to vector<9x1xf32>
    %cst_207 = arith.constant 3.200000e+01 : f32
    %333 = vector.broadcast %cst_207 : f32 to vector<9x1xf32>
    %334 = arith.divf %332, %333 : vector<9x1xf32>
    %335 = arith.mulf %326, %326 : vector<9x32xf32>
    %cst_208 = arith.constant dense<0.000000e+00> : vector<9xf32>
    %336 = vector.multi_reduction <add>, %335, %cst_208 [1] : vector<9x32xf32> to vector<9xf32>
    %337 = vector.shape_cast %336 : vector<9xf32> to vector<9x1xf32>
    %cst_209 = arith.constant 3.200000e+01 : f32
    %338 = vector.broadcast %cst_209 : f32 to vector<9x1xf32>
    %339 = arith.divf %337, %338 : vector<9x1xf32>
    %340 = arith.mulf %334, %334 : vector<9x1xf32>
    %341 = arith.subf %339, %340 : vector<9x1xf32>
    %342 = vector.broadcast %334 : vector<9x1xf32> to vector<9x32xf32>
    %343 = arith.subf %326, %342 : vector<9x32xf32>
    %cst_210 = arith.constant 9.99999974E-6 : f32
    %344 = vector.broadcast %cst_210 : f32 to vector<9x1xf32>
    %345 = arith.addf %341, %344 : vector<9x1xf32>
    %346 = math.rsqrt %345 : vector<9x1xf32>
    %347 = vector.broadcast %346 : vector<9x1xf32> to vector<9x32xf32>
    %348 = arith.mulf %343, %347 : vector<9x32xf32>
    %349 = vector.broadcast %328 : vector<1x32xf32> to vector<9x32xf32>
    %350 = arith.mulf %348, %349 : vector<9x32xf32>
    %351 = vector.broadcast %330 : vector<1x32xf32> to vector<9x32xf32>
    %352 = arith.addf %350, %351 : vector<9x32xf32>
    %c0_211 = arith.constant 0 : index
    %c0_212 = arith.constant 0 : index
    %c0_213 = arith.constant 0 : index
    %353 = vector.load %arg15[%c0_211, %c0_212, %c0_213] : memref<2x32x64xf32, #tpu.memory_space<vmem>>, vector<1x32x64xf32>
    %354 = vector.shape_cast %353 : vector<1x32x64xf32> to vector<32x64xf32>
    %cst_214 = arith.constant dense<0.000000e+00> : vector<9x64xf32>
    %355 = tpu.matmul %352, %354, %cst_214 {dimension_numbers = #tpu.dot_dimension_numbers<[1], [0], [0], [1], [0, 0, 1, 1], [], []>} : vector<9x32xf32>, vector<32x64xf32>, vector<9x64xf32> -> vector<9x64xf32>
    %c0_215 = arith.constant 0 : index
    %c0_216 = arith.constant 0 : index
    %c0_217 = arith.constant 0 : index
    %356 = vector.load %arg16[%c0_215, %c0_216, %c0_217] : memref<2x1x64xf32, #tpu.memory_space<vmem>>, vector<1x1x64xf32>
    %357 = vector.shape_cast %356 : vector<1x1x64xf32> to vector<1x64xf32>
    %358 = vector.broadcast %357 : vector<1x64xf32> to vector<9x64xf32>
    %359 = arith.addf %355, %358 : vector<9x64xf32>
    %cst_218 = arith.constant 0.000000e+00 : f32
    %360 = vector.broadcast %cst_218 : f32 to vector<9x64xf32>
    %361 = arith.maximumf %359, %360 : vector<9x64xf32>
    %c0_219 = arith.constant 0 : index
    %c0_220 = arith.constant 0 : index
    %c0_221 = arith.constant 0 : index
    %362 = vector.load %arg17[%c0_219, %c0_220, %c0_221] : memref<2x64x32xf32, #tpu.memory_space<vmem>>, vector<1x64x32xf32>
    %363 = vector.shape_cast %362 : vector<1x64x32xf32> to vector<64x32xf32>
    %cst_222 = arith.constant dense<0.000000e+00> : vector<9x32xf32>
    %364 = tpu.matmul %361, %363, %cst_222 {dimension_numbers = #tpu.dot_dimension_numbers<[1], [0], [0], [1], [0, 0, 1, 1], [], []>} : vector<9x64xf32>, vector<64x32xf32>, vector<9x32xf32> -> vector<9x32xf32>
    %c0_223 = arith.constant 0 : index
    %c0_224 = arith.constant 0 : index
    %c0_225 = arith.constant 0 : index
    %365 = vector.load %arg18[%c0_223, %c0_224, %c0_225] : memref<2x1x32xf32, #tpu.memory_space<vmem>>, vector<1x1x32xf32>
    %366 = vector.shape_cast %365 : vector<1x1x32xf32> to vector<1x32xf32>
    %367 = vector.broadcast %366 : vector<1x32xf32> to vector<9x32xf32>
    %368 = arith.addf %364, %367 : vector<9x32xf32>
    %369 = arith.addf %326, %368 : vector<9x32xf32>
    %c1_226 = arith.constant 1 : index
    %c0_227 = arith.constant 0 : index
    %c0_228 = arith.constant 0 : index
    %370 = vector.load %arg6[%c1_226, %c0_227, %c0_228] : memref<2x1x32xf32, #tpu.memory_space<vmem>>, vector<1x1x32xf32>
    %371 = vector.shape_cast %370 : vector<1x1x32xf32> to vector<1x32xf32>
    %c1_229 = arith.constant 1 : index
    %c0_230 = arith.constant 0 : index
    %c0_231 = arith.constant 0 : index
    %372 = vector.load %arg7[%c1_229, %c0_230, %c0_231] : memref<2x1x32xf32, #tpu.memory_space<vmem>>, vector<1x1x32xf32>
    %373 = vector.shape_cast %372 : vector<1x1x32xf32> to vector<1x32xf32>
    %cst_232 = arith.constant dense<0.000000e+00> : vector<9xf32>
    %374 = vector.multi_reduction <add>, %369, %cst_232 [1] : vector<9x32xf32> to vector<9xf32>
    %375 = vector.shape_cast %374 : vector<9xf32> to vector<9x1xf32>
    %cst_233 = arith.constant 3.200000e+01 : f32
    %376 = vector.broadcast %cst_233 : f32 to vector<9x1xf32>
    %377 = arith.divf %375, %376 : vector<9x1xf32>
    %378 = arith.mulf %369, %369 : vector<9x32xf32>
    %cst_234 = arith.constant dense<0.000000e+00> : vector<9xf32>
    %379 = vector.multi_reduction <add>, %378, %cst_234 [1] : vector<9x32xf32> to vector<9xf32>
    %380 = vector.shape_cast %379 : vector<9xf32> to vector<9x1xf32>
    %cst_235 = arith.constant 3.200000e+01 : f32
    %381 = vector.broadcast %cst_235 : f32 to vector<9x1xf32>
    %382 = arith.divf %380, %381 : vector<9x1xf32>
    %383 = arith.mulf %377, %377 : vector<9x1xf32>
    %384 = arith.subf %382, %383 : vector<9x1xf32>
    %385 = vector.broadcast %377 : vector<9x1xf32> to vector<9x32xf32>
    %386 = arith.subf %369, %385 : vector<9x32xf32>
    %cst_236 = arith.constant 9.99999974E-6 : f32
    %387 = vector.broadcast %cst_236 : f32 to vector<9x1xf32>
    %388 = arith.addf %384, %387 : vector<9x1xf32>
    %389 = math.rsqrt %388 : vector<9x1xf32>
    %390 = vector.broadcast %389 : vector<9x1xf32> to vector<9x32xf32>
    %391 = arith.mulf %386, %390 : vector<9x32xf32>
    %392 = vector.broadcast %371 : vector<1x32xf32> to vector<9x32xf32>
    %393 = arith.mulf %391, %392 : vector<9x32xf32>
    %394 = vector.broadcast %373 : vector<1x32xf32> to vector<9x32xf32>
    %395 = arith.addf %393, %394 : vector<9x32xf32>
    %396 = vector.shape_cast %395 : vector<9x32xf32> to vector<1x9x32xf32>
    %397 = vector.broadcast %396 : vector<1x9x32xf32> to vector<4x9x32xf32>
    %c1_237 = arith.constant 1 : index
    %c0_238 = arith.constant 0 : index
    %c0_239 = arith.constant 0 : index
    %c0_240 = arith.constant 0 : index
    %398 = vector.load %arg8[%c1_237, %c0_238, %c0_239, %c0_240] : memref<2x4x32x8xf32, #tpu.memory_space<vmem>>, vector<1x4x32x8xf32>
    %399 = vector.shape_cast %398 : vector<1x4x32x8xf32> to vector<4x32x8xf32>
    "tpu.trace_start"() <{level = 10 : i32, message = "hnd,hdk->hnk"}> : () -> ()
    %cst_241 = arith.constant dense<0.000000e+00> : vector<4x9x8xf32>
    %400 = tpu.matmul %397, %399, %cst_241 {dimension_numbers = #tpu.dot_dimension_numbers<[2], [1], [1], [2], [0, 0, 0, 1, 1, 2], [0], [0]>} : vector<4x9x32xf32>, vector<4x32x8xf32>, vector<4x9x8xf32> -> vector<4x9x8xf32>
    "tpu.trace_stop"() : () -> ()
    %c1_242 = arith.constant 1 : index
    %c0_243 = arith.constant 0 : index
    %c0_244 = arith.constant 0 : index
    %c0_245 = arith.constant 0 : index
    %401 = vector.load %arg9[%c1_242, %c0_243, %c0_244, %c0_245] : memref<2x4x32x8xf32, #tpu.memory_space<vmem>>, vector<1x4x32x8xf32>
    %402 = vector.shape_cast %401 : vector<1x4x32x8xf32> to vector<4x32x8xf32>
    "tpu.trace_start"() <{level = 10 : i32, message = "hnd,hdk->hnk"}> : () -> ()
    %cst_246 = arith.constant dense<0.000000e+00> : vector<4x9x8xf32>
    %403 = tpu.matmul %397, %402, %cst_246 {dimension_numbers = #tpu.dot_dimension_numbers<[2], [1], [1], [2], [0, 0, 0, 1, 1, 2], [0], [0]>} : vector<4x9x32xf32>, vector<4x32x8xf32>, vector<4x9x8xf32> -> vector<4x9x8xf32>
    "tpu.trace_stop"() : () -> ()
    %c1_247 = arith.constant 1 : index
    %c0_248 = arith.constant 0 : index
    %c0_249 = arith.constant 0 : index
    %c0_250 = arith.constant 0 : index
    %404 = vector.load %arg10[%c1_247, %c0_248, %c0_249, %c0_250] : memref<2x4x32x8xf32, #tpu.memory_space<vmem>>, vector<1x4x32x8xf32>
    %405 = vector.shape_cast %404 : vector<1x4x32x8xf32> to vector<4x32x8xf32>
    "tpu.trace_start"() <{level = 10 : i32, message = "hnd,hdk->hnk"}> : () -> ()
    %cst_251 = arith.constant dense<0.000000e+00> : vector<4x9x8xf32>
    %406 = tpu.matmul %397, %405, %cst_251 {dimension_numbers = #tpu.dot_dimension_numbers<[2], [1], [1], [2], [0, 0, 0, 1, 1, 2], [0], [0]>} : vector<4x9x32xf32>, vector<4x32x8xf32>, vector<4x9x8xf32> -> vector<4x9x8xf32>
    "tpu.trace_stop"() : () -> ()
    "tpu.trace_start"() <{level = 10 : i32, message = "hqd,hkd->hqk"}> : () -> ()
    %cst_252 = arith.constant dense<0.000000e+00> : vector<4x9x9xf32>
    %407 = tpu.matmul %400, %403, %cst_252 {dimension_numbers = #tpu.dot_dimension_numbers<[2], [2], [1], [1], [0, 0, 0, 1, 1, 1], [0], [0]>} : vector<4x9x8xf32>, vector<4x9x8xf32>, vector<4x9x9xf32> -> vector<4x9x9xf32>
    "tpu.trace_stop"() : () -> ()
    %cst_253 = arith.constant 0.176776692 : f32
    %408 = vector.broadcast %cst_253 : f32 to vector<4x9x9xf32>
    %409 = arith.mulf %407, %408 : vector<4x9x9xf32>
    %cst_254 = arith.constant dense<0xFF800000> : vector<4x9xf32>
    %410 = vector.multi_reduction <maximumf>, %409, %cst_254 [2] : vector<4x9x9xf32> to vector<4x9xf32>
    %411 = vector.shape_cast %410 : vector<4x9xf32> to vector<4x9x1xf32>
    %412 = vector.broadcast %411 : vector<4x9x1xf32> to vector<4x9x9xf32>
    %413 = arith.subf %409, %412 : vector<4x9x9xf32>
    %414 = math.exp %413 : vector<4x9x9xf32>
    %cst_255 = arith.constant dense<0.000000e+00> : vector<4x9xf32>
    %415 = vector.multi_reduction <add>, %414, %cst_255 [2] : vector<4x9x9xf32> to vector<4x9xf32>
    %416 = vector.shape_cast %415 : vector<4x9xf32> to vector<4x9x1xf32>
    %417 = tpu.reciprocal %416 {approx = true} : vector<4x9x1xf32> -> vector<4x9x1xf32>
    %418 = vector.broadcast %417 : vector<4x9x1xf32> to vector<4x9x9xf32>
    %419 = arith.mulf %414, %418 : vector<4x9x9xf32>
    "tpu.trace_start"() <{level = 10 : i32, message = "hqk,hkd->hqd"}> : () -> ()
    %cst_256 = arith.constant dense<0.000000e+00> : vector<4x9x8xf32>
    %420 = tpu.matmul %419, %406, %cst_256 {dimension_numbers = #tpu.dot_dimension_numbers<[2], [1], [1], [2], [0, 0, 0, 1, 1, 2], [0], [0]>} : vector<4x9x9xf32>, vector<4x9x8xf32>, vector<4x9x8xf32> -> vector<4x9x8xf32>
    "tpu.trace_stop"() : () -> ()
    %c1_257 = arith.constant 1 : index
    %c0_258 = arith.constant 0 : index
    %c0_259 = arith.constant 0 : index
    %c0_260 = arith.constant 0 : index
    %421 = vector.load %arg11[%c1_257, %c0_258, %c0_259, %c0_260] : memref<2x4x8x32xf32, #tpu.memory_space<vmem>>, vector<1x4x8x32xf32>
    %422 = vector.shape_cast %421 : vector<1x4x8x32xf32> to vector<4x8x32xf32>
    "tpu.trace_start"() <{level = 10 : i32, message = "hnd,hdk->hnk"}> : () -> ()
    %cst_261 = arith.constant dense<0.000000e+00> : vector<4x9x32xf32>
    %423 = tpu.matmul %420, %422, %cst_261 {dimension_numbers = #tpu.dot_dimension_numbers<[2], [1], [1], [2], [0, 0, 0, 1, 1, 2], [0], [0]>} : vector<4x9x8xf32>, vector<4x8x32xf32>, vector<4x9x32xf32> -> vector<4x9x32xf32>
    "tpu.trace_stop"() : () -> ()
    %424 = vector.extract_strided_slice %423 {offsets = [0, 0, 0], sizes = [1, 9, 32], strides = [1, 1, 1]} : vector<4x9x32xf32> to vector<1x9x32xf32>
    %425 = vector.shape_cast %424 : vector<1x9x32xf32> to vector<9x32xf32>
    %426 = vector.extract_strided_slice %423 {offsets = [1, 0, 0], sizes = [1, 9, 32], strides = [1, 1, 1]} : vector<4x9x32xf32> to vector<1x9x32xf32>
    %427 = vector.shape_cast %426 : vector<1x9x32xf32> to vector<9x32xf32>
    %428 = arith.addf %425, %427 : vector<9x32xf32>
    %429 = vector.extract_strided_slice %423 {offsets = [2, 0, 0], sizes = [1, 9, 32], strides = [1, 1, 1]} : vector<4x9x32xf32> to vector<1x9x32xf32>
    %430 = vector.shape_cast %429 : vector<1x9x32xf32> to vector<9x32xf32>
    %431 = arith.addf %428, %430 : vector<9x32xf32>
    %432 = vector.extract_strided_slice %423 {offsets = [3, 0, 0], sizes = [1, 9, 32], strides = [1, 1, 1]} : vector<4x9x32xf32> to vector<1x9x32xf32>
    %433 = vector.shape_cast %432 : vector<1x9x32xf32> to vector<9x32xf32>
    %434 = arith.addf %431, %433 : vector<9x32xf32>
    %435 = arith.addf %369, %434 : vector<9x32xf32>
    %c1_262 = arith.constant 1 : index
    %c0_263 = arith.constant 0 : index
    %c0_264 = arith.constant 0 : index
    %436 = vector.load %arg12[%c1_262, %c0_263, %c0_264] : memref<2x1x32xf32, #tpu.memory_space<vmem>>, vector<1x1x32xf32>
    %437 = vector.shape_cast %436 : vector<1x1x32xf32> to vector<1x32xf32>
    %438 = vector.broadcast %437 : vector<1x32xf32> to vector<9x32xf32>
    %439 = arith.addf %435, %438 : vector<9x32xf32>
    %c1_265 = arith.constant 1 : index
    %c0_266 = arith.constant 0 : index
    %c0_267 = arith.constant 0 : index
    %440 = vector.load %arg13[%c1_265, %c0_266, %c0_267] : memref<2x1x32xf32, #tpu.memory_space<vmem>>, vector<1x1x32xf32>
    %441 = vector.shape_cast %440 : vector<1x1x32xf32> to vector<1x32xf32>
    %c1_268 = arith.constant 1 : index
    %c0_269 = arith.constant 0 : index
    %c0_270 = arith.constant 0 : index
    %442 = vector.load %arg14[%c1_268, %c0_269, %c0_270] : memref<2x1x32xf32, #tpu.memory_space<vmem>>, vector<1x1x32xf32>
    %443 = vector.shape_cast %442 : vector<1x1x32xf32> to vector<1x32xf32>
    %cst_271 = arith.constant dense<0.000000e+00> : vector<9xf32>
    %444 = vector.multi_reduction <add>, %439, %cst_271 [1] : vector<9x32xf32> to vector<9xf32>
    %445 = vector.shape_cast %444 : vector<9xf32> to vector<9x1xf32>
    %cst_272 = arith.constant 3.200000e+01 : f32
    %446 = vector.broadcast %cst_272 : f32 to vector<9x1xf32>
    %447 = arith.divf %445, %446 : vector<9x1xf32>
    %448 = arith.mulf %439, %439 : vector<9x32xf32>
    %cst_273 = arith.constant dense<0.000000e+00> : vector<9xf32>
    %449 = vector.multi_reduction <add>, %448, %cst_273 [1] : vector<9x32xf32> to vector<9xf32>
    %450 = vector.shape_cast %449 : vector<9xf32> to vector<9x1xf32>
    %cst_274 = arith.constant 3.200000e+01 : f32
    %451 = vector.broadcast %cst_274 : f32 to vector<9x1xf32>
    %452 = arith.divf %450, %451 : vector<9x1xf32>
    %453 = arith.mulf %447, %447 : vector<9x1xf32>
    %454 = arith.subf %452, %453 : vector<9x1xf32>
    %455 = vector.broadcast %447 : vector<9x1xf32> to vector<9x32xf32>
    %456 = arith.subf %439, %455 : vector<9x32xf32>
    %cst_275 = arith.constant 9.99999974E-6 : f32
    %457 = vector.broadcast %cst_275 : f32 to vector<9x1xf32>
    %458 = arith.addf %454, %457 : vector<9x1xf32>
    %459 = math.rsqrt %458 : vector<9x1xf32>
    %460 = vector.broadcast %459 : vector<9x1xf32> to vector<9x32xf32>
    %461 = arith.mulf %456, %460 : vector<9x32xf32>
    %462 = vector.broadcast %441 : vector<1x32xf32> to vector<9x32xf32>
    %463 = arith.mulf %461, %462 : vector<9x32xf32>
    %464 = vector.broadcast %443 : vector<1x32xf32> to vector<9x32xf32>
    %465 = arith.addf %463, %464 : vector<9x32xf32>
    %c1_276 = arith.constant 1 : index
    %c0_277 = arith.constant 0 : index
    %c0_278 = arith.constant 0 : index
    %466 = vector.load %arg15[%c1_276, %c0_277, %c0_278] : memref<2x32x64xf32, #tpu.memory_space<vmem>>, vector<1x32x64xf32>
    %467 = vector.shape_cast %466 : vector<1x32x64xf32> to vector<32x64xf32>
    %cst_279 = arith.constant dense<0.000000e+00> : vector<9x64xf32>
    %468 = tpu.matmul %465, %467, %cst_279 {dimension_numbers = #tpu.dot_dimension_numbers<[1], [0], [0], [1], [0, 0, 1, 1], [], []>} : vector<9x32xf32>, vector<32x64xf32>, vector<9x64xf32> -> vector<9x64xf32>
    %c1_280 = arith.constant 1 : index
    %c0_281 = arith.constant 0 : index
    %c0_282 = arith.constant 0 : index
    %469 = vector.load %arg16[%c1_280, %c0_281, %c0_282] : memref<2x1x64xf32, #tpu.memory_space<vmem>>, vector<1x1x64xf32>
    %470 = vector.shape_cast %469 : vector<1x1x64xf32> to vector<1x64xf32>
    %471 = vector.broadcast %470 : vector<1x64xf32> to vector<9x64xf32>
    %472 = arith.addf %468, %471 : vector<9x64xf32>
    %cst_283 = arith.constant 0.000000e+00 : f32
    %473 = vector.broadcast %cst_283 : f32 to vector<9x64xf32>
    %474 = arith.maximumf %472, %473 : vector<9x64xf32>
    %c1_284 = arith.constant 1 : index
    %c0_285 = arith.constant 0 : index
    %c0_286 = arith.constant 0 : index
    %475 = vector.load %arg17[%c1_284, %c0_285, %c0_286] : memref<2x64x32xf32, #tpu.memory_space<vmem>>, vector<1x64x32xf32>
    %476 = vector.shape_cast %475 : vector<1x64x32xf32> to vector<64x32xf32>
    %cst_287 = arith.constant dense<0.000000e+00> : vector<9x32xf32>
    %477 = tpu.matmul %474, %476, %cst_287 {dimension_numbers = #tpu.dot_dimension_numbers<[1], [0], [0], [1], [0, 0, 1, 1], [], []>} : vector<9x64xf32>, vector<64x32xf32>, vector<9x32xf32> -> vector<9x32xf32>
    %c1_288 = arith.constant 1 : index
    %c0_289 = arith.constant 0 : index
    %c0_290 = arith.constant 0 : index
    %478 = vector.load %arg18[%c1_288, %c0_289, %c0_290] : memref<2x1x32xf32, #tpu.memory_space<vmem>>, vector<1x1x32xf32>
    %479 = vector.shape_cast %478 : vector<1x1x32xf32> to vector<1x32xf32>
    %480 = vector.broadcast %479 : vector<1x32xf32> to vector<9x32xf32>
    %481 = arith.addf %477, %480 : vector<9x32xf32>
    %482 = arith.addf %439, %481 : vector<9x32xf32>
    %c1_291 = arith.constant 1 : index
    %c0_292 = arith.constant 0 : index
    %c0_293 = arith.constant 0 : index
    %483 = vector.load %arg19[%c1_291, %c0_292, %c0_293] : memref<2x9x32xf32, #tpu.memory_space<vmem>>, vector<1x9x32xf32>
    %484 = vector.shape_cast %483 : vector<1x9x32xf32> to vector<9x32xf32>
    %485 = vector.shape_cast %482 : vector<9x32xf32> to vector<1x9x32xf32>
    tpu.vector_store %arg19[%c1_291, %c0_292, %c0_293], %485 {strides = array<i32>} : memref<2x9x32xf32, #tpu.memory_space<vmem>>, vector<1x9x32xf32>,
    return
  }
  func.func @transform_0(%arg0: i32) -> (i32, i32) {
    %c0_i32 = arith.constant 0 : i32
    %c0_i32_0 = arith.constant 0 : i32
    %c0_i32_1 = arith.constant 0 : i32
    return %c0_i32, %c0_i32_0 : i32, i32
  }
  func.func @transform_1(%arg0: i32) -> (i32, i32) {
    %c0_i32 = arith.constant 0 : i32
    %c0_i32_0 = arith.constant 0 : i32
    %c0_i32_1 = arith.constant 0 : i32
    return %c0_i32, %c0_i32_0 : i32, i32
  }
  func.func @transform_2(%arg0: i32) -> (i32, i32) {
    %c0_i32 = arith.constant 0 : i32
    %c0_i32_0 = arith.constant 0 : i32
    %c0_i32_1 = arith.constant 0 : i32
    return %c0_i32, %c0_i32_0 : i32, i32
  }
  func.func @transform_3(%arg0: i32) -> (i32, i32) {
    %c0_i32 = arith.constant 0 : i32
    %c0_i32_0 = arith.constant 0 : i32
    %c0_i32_1 = arith.constant 0 : i32
    return %c0_i32, %c0_i32_0 : i32, i32
  }
  func.func @transform_4(%arg0: i32) -> (i32, i32) {
    %c0_i32 = arith.constant 0 : i32
    %c0_i32_0 = arith.constant 0 : i32
    %c0_i32_1 = arith.constant 0 : i32
    return %c0_i32, %c0_i32_0 : i32, i32
  }
  func.func @transform_5(%arg0: i32) -> (i32, i32, i32) {
    %c0_i32 = arith.constant 0 : i32
    %c0_i32_0 = arith.constant 0 : i32
    %c0_i32_1 = arith.constant 0 : i32
    %c0_i32_2 = arith.constant 0 : i32
    return %c0_i32, %c0_i32_0, %c0_i32_1 : i32, i32, i32
  }
  func.func @transform_6(%arg0: i32) -> (i32, i32, i32) {
    %c0_i32 = arith.constant 0 : i32
    %c0_i32_0 = arith.constant 0 : i32
    %c0_i32_1 = arith.constant 0 : i32
    %c0_i32_2 = arith.constant 0 : i32
    return %c0_i32, %c0_i32_0, %c0_i32_1 : i32, i32, i32
  }
  func.func @transform_7(%arg0: i32) -> (i32, i32, i32, i32) {
    %c0_i32 = arith.constant 0 : i32
    %c0_i32_0 = arith.constant 0 : i32
    %c0_i32_1 = arith.constant 0 : i32
    %c0_i32_2 = arith.constant 0 : i32
    %c0_i32_3 = arith.constant 0 : i32
    return %c0_i32, %c0_i32_0, %c0_i32_1, %c0_i32_2 : i32, i32, i32, i32
  }
  func.func @transform_8(%arg0: i32) -> (i32, i32, i32, i32) {
    %c0_i32 = arith.constant 0 : i32
    %c0_i32_0 = arith.constant 0 : i32
    %c0_i32_1 = arith.constant 0 : i32
    %c0_i32_2 = arith.constant 0 : i32
    %c0_i32_3 = arith.constant 0 : i32
    return %c0_i32, %c0_i32_0, %c0_i32_1, %c0_i32_2 : i32, i32, i32, i32
  }
  func.func @transform_9(%arg0: i32) -> (i32, i32, i32, i32) {
    %c0_i32 = arith.constant 0 : i32
    %c0_i32_0 = arith.constant 0 : i32
    %c0_i32_1 = arith.constant 0 : i32
    %c0_i32_2 = arith.constant 0 : i32
    %c0_i32_3 = arith.constant 0 : i32
    return %c0_i32, %c0_i32_0, %c0_i32_1, %c0_i32_2 : i32, i32, i32, i32
  }
  func.func @transform_10(%arg0: i32) -> (i32, i32, i32, i32) {
    %c0_i32 = arith.constant 0 : i32
    %c0_i32_0 = arith.constant 0 : i32
    %c0_i32_1 = arith.constant 0 : i32
    %c0_i32_2 = arith.constant 0 : i32
    %c0_i32_3 = arith.constant 0 : i32
    return %c0_i32, %c0_i32_0, %c0_i32_1, %c0_i32_2 : i32, i32, i32, i32
  }
  func.func @transform_11(%arg0: i32) -> (i32, i32, i32) {
    %c0_i32 = arith.constant 0 : i32
    %c0_i32_0 = arith.constant 0 : i32
    %c0_i32_1 = arith.constant 0 : i32
    %c0_i32_2 = arith.constant 0 : i32
    return %c0_i32, %c0_i32_0, %c0_i32_1 : i32, i32, i32
  }
  func.func @transform_12(%arg0: i32) -> (i32, i32, i32) {
    %c0_i32 = arith.constant 0 : i32
    %c0_i32_0 = arith.constant 0 : i32
    %c0_i32_1 = arith.constant 0 : i32
    %c0_i32_2 = arith.constant 0 : i32
    return %c0_i32, %c0_i32_0, %c0_i32_1 : i32, i32, i32
  }
  func.func @transform_13(%arg0: i32) -> (i32, i32, i32) {
    %c0_i32 = arith.constant 0 : i32
    %c0_i32_0 = arith.constant 0 : i32
    %c0_i32_1 = arith.constant 0 : i32
    %c0_i32_2 = arith.constant 0 : i32
    return %c0_i32, %c0_i32_0, %c0_i32_1 : i32, i32, i32
  }
  func.func @transform_14(%arg0: i32) -> (i32, i32, i32) {
    %c0_i32 = arith.constant 0 : i32
    %c0_i32_0 = arith.constant 0 : i32
    %c0_i32_1 = arith.constant 0 : i32
    %c0_i32_2 = arith.constant 0 : i32
    return %c0_i32, %c0_i32_0, %c0_i32_1 : i32, i32, i32
  }
  func.func @transform_15(%arg0: i32) -> (i32, i32, i32) {
    %c0_i32 = arith.constant 0 : i32
    %c0_i32_0 = arith.constant 0 : i32
    %c0_i32_1 = arith.constant 0 : i32
    %c0_i32_2 = arith.constant 0 : i32
    return %c0_i32, %c0_i32_0, %c0_i32_1 : i32, i32, i32
  }
  func.func @transform_16(%arg0: i32) -> (i32, i32, i32) {
    %c0_i32 = arith.constant 0 : i32
    %c0_i32_0 = arith.constant 0 : i32
    %c0_i32_1 = arith.constant 0 : i32
    %c0_i32_2 = arith.constant 0 : i32
    return %c0_i32, %c0_i32_0, %c0_i32_1 : i32, i32, i32
  }
  func.func @transform_17(%arg0: i32) -> (i32, i32, i32) {
    %c0_i32 = arith.constant 0 : i32
    %c0_i32_0 = arith.constant 0 : i32
    %c0_i32_1 = arith.constant 0 : i32
    %c0_i32_2 = arith.constant 0 : i32
    return %c0_i32, %c0_i32_0, %c0_i32_1 : i32, i32, i32
  }
  func.func @transform_18(%arg0: i32) -> (i32, i32, i32) {
    %c0_i32 = arith.constant 0 : i32
    %c0_i32_0 = arith.constant 0 : i32
    %c0_i32_1 = arith.constant 0 : i32
    %c0_i32_2 = arith.constant 0 : i32
    return %c0_i32, %c0_i32_0, %c0_i32_1 : i32, i32, i32
  }
}

</mosaic_0001>

<bundles_post_ra>
// kernel: tpu_custom_call.1
= control target key start
LH: loop header
LB: loop body
LE: loop exit
PB: predicated region body
PF: predicated region fallthrough
CT: control target
= control target key end

     0   :  { %vm73_vm0 = vcmask 1043456   ;;  %vm66_vm1 = vcmask 31744   ;;  %vm105_vm2 = vcmask 253952   ;;  %vm107_vm3 = vcmask 261120   ;;  %s6488_s1 = inlined_call_operand.vmem [shape: f32[4,32], index: 1, kind: input, shape index: {}]   ;;  %s6489_s0 = inlined_call_operand.vmem [shape: f32[16,4], index: 0, kind: input, shape index: {}]   ;;  %s6490_s2 = inlined_call_operand.vmem [shape: f32[1,32], index: 2, kind: input, shape index: {}]   ;;  %s6491_s4 = inlined_call_operand.vmem [shape: f32[1,32], index: 4, kind: input, shape index: {}]   ;;  %s6492_s18 = inlined_call_operand.vmem [shape: f32[2,9,32], index: 18, kind: output, shape index: {}]   ;;  %s6493_s3 = inlined_call_operand.vmem [shape: f32[16,32], index: 3, kind: input, shape index: {}]   ;;  %s6494_s5 = inlined_call_operand.vmem [shape: f32[2,1,32], index: 5, kind: input, shape index: {}]   ;;  %s6495_s6 = inlined_call_operand.vmem [shape: f32[2,1,32], index: 6, kind: input, shape index: {}]   ;;  %s6496_s7 = inlined_call_operand.vmem [shape: f32[2,4,32,8], index: 7, kind: input, shape index: {}]   ;;  %s6497_s8 = inlined_call_operand.vmem [shape: f32[2,4,32,8], index: 8, kind: input, shape index: {}]   ;;  %s6498_s9 = inlined_call_operand.vmem [shape: f32[2,4,32,8], index: 9, kind: input, shape index: {}]   ;;  %s6499_s10 = inlined_call_operand.vmem [shape: f32[2,4,8,32], index: 10, kind: input, shape index: {}]   ;;  %s6500_s11 = inlined_call_operand.vmem [shape: f32[2,1,32], index: 11, kind: input, shape index: {}]   ;;  %s6501_s12 = inlined_call_operand.vmem [shape: f32[2,1,32], index: 12, kind: input, shape index: {}]   ;;  %s6502_s13 = inlined_call_operand.vmem [shape: f32[2,1,32], index: 13, kind: input, shape index: {}]   ;;  %s6503_s15 = inlined_call_operand.vmem [shape: f32[2,1,64], index: 15, kind: input, shape index: {}]   ;;  %s6504_s14 = inlined_call_operand.vmem [shape: f32[2,32,64], index: 14, kind: input, shape index: {}]   ;;  %s6505_s16 = inlined_call_operand.vmem [shape: f32[2,64,32], index: 16, kind: input, shape index: {}]   ;;  %s6506_s17 = inlined_call_operand.vmem [shape: f32[2,1,32], index: 17, kind: input, shape index: {}]  }
   0x1   :  { %6508 = sst [smem:[#allocation2_spill]] %s6488_s1  ;;  %v104_v2 = vld [vmem:[%s6491_s4] sm:$0x1]  ;;  %v4870_v16 = vmov 32.0   ;;  %v181_v25 = vld [vmem:[%s6496_s7 + $0x18] sm:$0xff]  ;;  %v180_v30 = vld [vmem:[%s6496_s7 + $0x10] sm:$0xff] }
   0x2   :  { %6509 = sst [smem:[#allocation3_spill]] %s6489_s0  ;;  %106 = vst.msk [vmem:[%s6492_s18] sm:$0x1] %vm105_vm2, %v104_v2  ;;  %v100_v5 = vld [vmem:[%s6493_s3] sm:$0xff]  ;;  %4708 = vrcp.f32 %v4870_v16  ;;  %v185_v26 = vld [vmem:[%s6496_s7 + $0x38] sm:$0xff]  ;;  %v184_v31 = vld [vmem:[%s6496_s7 + $0x30] sm:$0xff] }
   0x3   :  { %6510 = sst [smem:[#allocation4_spill]] %s6490_s2  ;;  %v189_v27 = vld [vmem:[%s6496_s7 + $0x58] sm:$0xff]  ;;  %235 = vmatpush.msra.mxu2 %v185_v26  ;;  %v188_v32 = vld [vmem:[%s6496_s7 + $0x50] sm:$0xff]  ;;  %v179_v34 = vld [vmem:[%s6496_s7 + $0x8] sm:$0xff]  ;;  %vm508_vm11 = vcmask 64512   ;;  %vm753_vm12 = vcmask 1040384  }
   0x4   :  { %s6511_s29 = sld [smem:[#allocation2_spill]]  ;;  %v193_v28 = vld [vmem:[%s6496_s7 + $0x78] sm:$0xff]  ;;  %258 = vmatpush.msra.mxu3 %v189_v27  ;;  %v192_v33 = vld [vmem:[%s6496_s7 + $0x70] sm:$0xff]  ;;  %v183_v35 = vld [vmem:[%s6496_s7 + $0x28] sm:$0xff]  ;;  %vm657_vm13 = vcmask 72704   ;;  %vm661_vm14 = vcmask 65536  }
   0x5   :  { %s6512_s19 = sld [smem:[#allocation3_spill]]  ;;  %236 = vmatpush.msra.mxu2 %v184_v31  ;;  %v187_v36 = vld [vmem:[%s6496_s7 + $0x48] sm:$0xff]  ;;  %v178_v40 = vld [vmem:[%s6496_s7] sm:$0xff]  ;;  %v295_v54 = vld [vmem:[%s6497_s8 + $0x18] sm:$0xff] }
   0x6   :  { %s6513_s24 = sld [smem:[#allocation4_spill]]  ;;  %259 = vmatpush.msra.mxu3 %v188_v32  ;;  %v191_v39 = vld [vmem:[%s6496_s7 + $0x68] sm:$0xff]  ;;  %v182_v41 = vld [vmem:[%s6496_s7 + $0x20] sm:$0xff]  ;;  %v299_v55 = vld [vmem:[%s6497_s8 + $0x38] sm:$0xff] }
   0x7   :  { %237 = vmatpush.msra.mxu2 %v183_v35  ;;  %v186_v42 = vld [vmem:[%s6496_s7 + $0x40] sm:$0xff]  ;;  %v303_v56 = vld [vmem:[%s6497_s8 + $0x58] sm:$0xff]  ;;  %v294_v58 = vld [vmem:[%s6497_s8 + $0x10] sm:$0xff] }
   0x8   :  { %v4709_v17 = vpop.eup %4708  ;;  %260 = vmatpush.msra.mxu3 %v187_v36  ;;  %v190_v43 = vld [vmem:[%s6496_s7 + $0x60] sm:$0xff]  ;;  %v307_v57 = vld [vmem:[%s6497_s8 + $0x78] sm:$0xff]  ;;  %v298_v59 = vld [vmem:[%s6497_s8 + $0x30] sm:$0xff] }
   0x9   :  { %v120_v18 = vmul.f32 32.0, %v4709_v17  ;;  %vm124_vm4 = vweird.f32 %v4709_v17  ;;  %238 = vmatpush.msra.mxu2 %v182_v41  ;;  %v302_v60 = vld [vmem:[%s6497_s8 + $0x50] sm:$0xff]  ;;  %v293_v62 = vld [vmem:[%s6497_s8 + $0x8] sm:$0xff]  ;;  %v403_v32 = vld [vmem:[%s6498_s9 + $0x18] sm:$0xff] }
   0xa   :  { %v61_v0 = vld [vmem:[%s6511_s29] sm:$0xf]  ;;  %261 = vmatpush.msra.mxu3 %v186_v42  ;;  %v306_v61 = vld [vmem:[%s6497_s8 + $0x70] sm:$0xff]  ;;  %v297_v63 = vld [vmem:[%s6497_s8 + $0x28] sm:$0xff] }
   0xb   :  { %v59_v1 = vld [vmem:[%s6512_s19] sm:$0xff]  ;;  %4270 = vmatpush.msk.msra.mxu0 %vm73_vm0, %v61_v0  ;;  %4677 = vmatpush.msk.msra.mxu1 %vm73_vm0, %v61_v0  ;;  %v121_v19 = vsub.f32 1.0, %v120_v18  ;;  %v60_v22 = vld [vmem:[%s6512_s19 + $0x8] sm:$0xff]  ;;  %v415_v35 = vld [vmem:[%s6498_s9 + $0x78] sm:$0xff] }
   0xc   :  { %4271 = vmatmul.msk.f32.vlgmr.msra.gmra.mxu0 %vm66_vm1, %v59_v1  ;;  %v4983_v3 = vld [vmem:[%s6513_s24] ss:$0 sm:$0xff]  ;;  %4272 = vmatmul.msk.f32.vlgmr.msra.gmra.mxu1 %vm66_vm1, %v60_v22  ;;  %v301_v0 = vld [vmem:[%s6497_s8 + $0x48] sm:$0xff]  ;;  %v402_v36 = vld [vmem:[%s6498_s9 + $0x10] sm:$0xff] }
   0xd   :  { %v122_v20 = vmul.f32 %v4709_v17, %v121_v19  ;;  %212 = vmatpush.msrb.mxu1 %v181_v25  ;;  %281 = vmatpush.msrb.mxu0 %v193_v28  ;;  %v305_v1 = vld [vmem:[%s6497_s8 + $0x68] sm:$0xff]  ;;  %v4680_v22 = vld [vmem:[%s6494_s5] ss:$0 sm:$0xff] }
   0xe   :  { %343 = vmatpush.msrb.mxu2 %v299_v55  ;;  %366 = vmatpush.msrb.mxu3 %v303_v56  ;;  %v401_v41 = vld [vmem:[%s6498_s9 + $0x8] sm:$0xff] }
   0xf   :  { %v123_v21 = vadd.f32 %v4709_v17, %v122_v20  ;;  %213 = vmatpush.msrb.mxu1 %v180_v30  ;;  %282 = vmatpush.msrb.mxu0 %v192_v33  ;;  %v407_v33 = vld [vmem:[%s6498_s9 + $0x38] sm:$0xff]  ;;  %v405_v42 = vld [vmem:[%s6498_s9 + $0x28] sm:$0xff] }
  0x10   :  { %344 = vmatpush.msrb.mxu2 %v298_v59  ;;  %367 = vmatpush.msrb.mxu3 %v302_v60 }
  0x11   :  { %v5029_v29 = vsel %vm124_vm4, %v4709_v17, %v123_v21  ;;  %214 = vmatpush.msrb.mxu1 %v179_v34  ;;  %283 = vmatpush.msrb.mxu0 %v191_v39  ;;  %v411_v34 = vld [vmem:[%s6498_s9 + $0x58] sm:$0xff]  ;;  %v410_v39 = vld [vmem:[%s6498_s9 + $0x50] sm:$0xff] }
  0x12   :  { %345 = vmatpush.msrb.mxu2 %v297_v63  ;;  %368 = vmatpush.msrb.mxu3 %v301_v0 }
  0x13   :  { %215 = vmatpush.msrb.mxu1 %v178_v40  ;;  %284 = vmatpush.msrb.mxu0 %v190_v43  ;;  %v414_v40 = vld [vmem:[%s6498_s9 + $0x70] sm:$0xff]  ;;  %v409_v43 = vld [vmem:[%s6498_s9 + $0x48] sm:$0xff] }
  0x15   :  { %320 = vmatpush.msra.mxu1 %v295_v54  ;;  %389 = vmatpush.msra.mxu0 %v307_v57  ;;  %v2198_v54 = vld [vmem:[%s6491_s4] sm:$0x1] }
  0x16   :  { %4472 = vst.msk [vmem:[%s6492_s18 + $0x10] sm:$0x1] %vm105_vm2, %v2198_v54 }
  0x17   :  { %321 = vmatpush.msra.mxu1 %v294_v58  ;;  %390 = vmatpush.msra.mxu0 %v306_v61 }
  0x19   :  { %322 = vmatpush.msra.mxu1 %v293_v62  ;;  %391 = vmatpush.msra.mxu0 %v305_v1 }
  0x89   :  { %v94_v4 = vpop.f32.mrf.mxu0 }
  0x8a   :  { %v95_v6 = vadd.f32 %v4983_v3, %v94_v4  ;;  %v292_v4 = vld [vmem:[%s6497_s8] sm:$0xff] }
  0x8b   :  { %323 = vmatpush.msra.mxu1 %v292_v4 }
  0x8c   :  { %v102_v7 = vadd.f32 %v100_v5, %v95_v6  ;;  %v296_v5 = vld [vmem:[%s6497_s8 + $0x20] sm:$0xff] }
  0x8d   :  { %346 = vmatpush.msrb.mxu2 %v296_v5 }
  0x8e   :  { %108 = vst.msk [vmem:[%s6492_s18 + $0x1] sm:$0xff] %vm107_vm3, %v102_v7 }
  0x95   :  { %v4996_v8 = vld [vmem:[%s6492_s18 + $0x8] sm:$0x1]  ;;  %v5001_v9 = vld [vmem:[%s6492_s18] sm:$0xff] }
  0x96   :  { %v116_v10 = vsel %vm105_vm2, %v4996_v8, 0.0  ;;  %v113_v11 = vsel %vm107_vm3, %v5001_v9, 0.0  ;;  %v129_v12 = vmul.f32 %v4996_v8, %v4996_v8  ;;  %v128_v13 = vmul.f32 %v5001_v9, %v5001_v9 }
  0x97   :  { %117 = vadd.xlane.f32.xlu1 %v116_v10  ;;  %114 = vadd.xlane.f32.xlu0 %v113_v11  ;;  %v300_v10 = vld [vmem:[%s6497_s8 + $0x40] sm:$0xff] }
  0x98   :  { %v133_v14 = vsel %vm105_vm2, %v129_v12, 0.0  ;;  %v130_v15 = vsel %vm107_vm3, %v128_v13, 0.0  ;;  %v304_v11 = vld [vmem:[%s6497_s8 + $0x60] sm:$0xff]  ;;  %369 = vmatpush.msrb.mxu3 %v300_v10 }
  0x99   :  { %392 = vmatpush.msra.mxu0 %v304_v11 }
  0x9f   :  { %134 = vadd.xlane.f32.xlu1 %v133_v14  ;;  %131 = vadd.xlane.f32.xlu0 %v130_v15 }
 0x10a   :  { %v118_v23 = vpop.xlane.xlu1 %117  ;;  %v115_v24 = vpop.xlane.xlu0 %114 }
 0x10b   :  { %v5053_v37 = vmul.f32 %v5029_v29, %v118_v23  ;;  %v5056_v38 = vmul.f32 %v5029_v29, %v115_v24  ;;  %v4681_v24 = vld [vmem:[%s6495_s6] ss:$0 sm:$0xff] }
 0x10d   :  { %v139_v46 = vmul.f32 %v5053_v37, %v5053_v37  ;;  %v138_v47 = vmul.f32 %v5056_v38, %v5056_v38  ;;  %v142_v21 = vsub.f32 %v5001_v9, %v5056_v38  ;;  %v143_v27 = vsub.f32 %v4996_v8, %v5053_v37  ;;  %v406_v37 = vld [vmem:[%s6498_s9 + $0x30] sm:$0xff] }
 0x112   :  { %v135_v44 = vpop.xlane.xlu1 %134  ;;  %v132_v45 = vpop.xlane.xlu0 %131 }
 0x113   :  { %v137_v48 = vmul.f32 %v135_v44, %v5029_v29  ;;  %v136_v49 = vmul.f32 %v132_v45, %v5029_v29  ;;  %v413_v44 = vld [vmem:[%s6498_s9 + $0x68] sm:$0xff] }
 0x115   :  { %v141_v50 = vsub.f32 %v137_v48, %v139_v46  ;;  %v140_v51 = vsub.f32 %v136_v49, %v138_v47  ;;  %v400_v46 = vld [vmem:[%s6498_s9] sm:$0xff] }
 0x116   :  { %v404_v47 = vld [vmem:[%s6498_s9 + $0x20] sm:$0xff] }
 0x117   :  { %v145_v52 = vadd.f32 1e-05, %v141_v50  ;;  %v144_v53 = vadd.f32 1e-05, %v140_v51  ;;  %v408_v48 = vld [vmem:[%s6498_s9 + $0x40] sm:$0xff]  ;;  %v97_v50 = vpop.f32.mrf.mxu1  ;;  %v101_v51 = vld [vmem:[%s6493_s3 + $0x8] sm:$0xff] }
 0x118   :  { %v412_v49 = vld [vmem:[%s6498_s9 + $0x60] sm:$0xff] }
 0x119   :  { %4710 = vrsqrt.f32 %v145_v52  ;;  %vm152_vm7 = vweird.f32 %v144_v53  ;;  %vm162_vm9 = vweird.f32 %v145_v52 }
 0x11a   :  { %4712 = vrsqrt.f32 %v144_v53 }
 0x11f   :  { %v4711_v2 = vpop.eup %4710 }
 0x120   :  { %v4713_v6 = vpop.eup %4712  ;;  %v157_v7 = vmul.f32 %v4711_v2, %v145_v52  ;;  %vm163_vm6 = vweird.f32 %v4711_v2  ;;  %v98_v52 = vadd.f32 %v4983_v3, %v97_v50 }
 0x121   :  { %v147_v12 = vmul.f32 %v4713_v6, %v144_v53  ;;  %vm153_vm5 = vweird.f32 %v4713_v6  ;;  %vm164_vm10 = vmor %vm162_vm9, %vm163_vm6 }
 0x122   :  { %v158_v13 = vmul.f32 %v4711_v2, %v157_v7  ;;  %vm154_vm8 = vmor %vm152_vm7, %vm153_vm5  ;;  %v103_v53 = vadd.f32 %v101_v51, %v98_v52  ;;  %vm1121_vm7 = vcmask 523264  }
 0x123   :  { %v148_v14 = vmul.f32 %v4713_v6, %v147_v12 }
 0x124   :  { %v159_v15 = vmul.f32 0.5, %v158_v13  ;;  %4473 = vst.msk [vmem:[%s6492_s18 + $0x11] sm:$0xff] %vm107_vm3, %v103_v53 }
 0x125   :  { %v149_v16 = vmul.f32 0.5, %v148_v14 }
 0x126   :  { %v160_v17 = vsub.f32 1.5, %v159_v15 }
 0x127   :  { %v150_v18 = vsub.f32 1.5, %v149_v16 }
 0x128   :  { %v161_v19 = vmul.f32 %v4711_v2, %v160_v17 }
 0x129   :  { %v151_v20 = vmul.f32 %v4713_v6, %v150_v18 }
 0x12a   :  { %v165_v26 = vsel %vm164_vm10, %v4711_v2, %v161_v19 }
 0x12b   :  { %v155_v23 = vsel %vm154_vm8, %v4713_v6, %v151_v20  ;;  %v167_v30 = vmul.f32 %v165_v26, %v143_v27 }
 0x12c   :  { %v166_v25 = vmul.f32 %v155_v23, %v142_v21 }
 0x12d   :  { %v172_v38 = vmul.f32 %v4680_v22, %v167_v30 }
 0x12e   :  { %v171_v28 = vmul.f32 %v4680_v22, %v166_v25 }
 0x12f   :  { %v177_v45 = vadd.f32 %v4681_v24, %v172_v38 }
 0x130   :  { %v176_v31 = vadd.f32 %v4681_v24, %v171_v28 }
 0x132   :  { %4273 = vmatmul.msk.f32.vlgmr.msrb.gmra.mxu1 %vm107_vm3, %v176_v31  ;;  %4275 = vmatmul.msk.f32.vlgmr.msra.gmra.mxu2 %vm107_vm3, %v176_v31 }
 0x133   :  { %4277 = vmatmul.msk.f32.vlgmr.msra.gmra.mxu3 %vm107_vm3, %v176_v31  ;;  %4279 = vmatmul.msk.f32.vlgmr.msrb.gmra.mxu0 %vm107_vm3, %v176_v31 }
 0x134   :  { %428 = vmatpush.msrb.mxu1 %v403_v32  ;;  %451 = vmatpush.msra.mxu2 %v407_v33 }
 0x135   :  { %474 = vmatpush.msra.mxu3 %v411_v34  ;;  %497 = vmatpush.msrb.mxu0 %v415_v35 }
 0x136   :  { %429 = vmatpush.msrb.mxu1 %v402_v36  ;;  %452 = vmatpush.msra.mxu2 %v406_v37 }
 0x137   :  { %475 = vmatpush.msra.mxu3 %v410_v39  ;;  %498 = vmatpush.msrb.mxu0 %v414_v40 }
 0x138   :  { %430 = vmatpush.msrb.mxu1 %v401_v41  ;;  %453 = vmatpush.msra.mxu2 %v405_v42 }
 0x139   :  { %476 = vmatpush.msra.mxu3 %v409_v43  ;;  %499 = vmatpush.msrb.mxu0 %v413_v44 }
 0x13a   :  { %4274 = vmatmul.msk.f32.gmra.mxu1 %vm107_vm3, %v177_v45  ;;  %4276 = vmatmul.msk.f32.gmra.mxu2 %vm107_vm3, %v177_v45 }
 0x13b   :  { %4278 = vmatmul.msk.f32.gmra.mxu3 %vm107_vm3, %v177_v45  ;;  %4280 = vmatmul.msk.f32.gmra.mxu0 %vm107_vm3, %v177_v45 }
 0x13c   :  { %431 = vmatpush.msrb.mxu1 %v400_v46  ;;  %454 = vmatpush.msra.mxu2 %v404_v47 }
 0x13d   :  { %477 = vmatpush.msra.mxu3 %v408_v48  ;;  %500 = vmatpush.msrb.mxu0 %v412_v49 }
 0x142   :  { %4281 = vmatmul.msk.f32.vlgmr.msra.gmra.mxu1 %vm107_vm3, %v176_v31  ;;  %4283 = vmatmul.msk.f32.vlgmr.msrb.gmra.mxu2 %vm107_vm3, %v176_v31 }
 0x143   :  { %4285 = vmatmul.msk.f32.vlgmr.msrb.gmra.mxu3 %vm107_vm3, %v176_v31  ;;  %4287 = vmatmul.msk.f32.vlgmr.msra.gmra.mxu0 %vm107_vm3, %v176_v31 }
 0x14a   :  { %4282 = vmatmul.msk.f32.gmra.mxu1 %vm107_vm3, %v177_v45  ;;  %4284 = vmatmul.msk.f32.gmra.mxu2 %vm107_vm3, %v177_v45 }
 0x14b   :  { %4286 = vmatmul.msk.f32.gmra.mxu3 %vm107_vm3, %v177_v45  ;;  %4288 = vmatmul.msk.f32.gmra.mxu0 %vm107_vm3, %v177_v45 }
 0x152   :  { %4289 = vmatmul.msk.f32.vlgmr.msrb.gmra.mxu1 %vm107_vm3, %v176_v31  ;;  %4291 = vmatmul.msk.f32.vlgmr.msra.gmra.mxu2 %vm107_vm3, %v176_v31 }
 0x153   :  { %4293 = vmatmul.msk.f32.vlgmr.msra.gmra.mxu3 %vm107_vm3, %v176_v31  ;;  %4295 = vmatmul.msk.f32.vlgmr.msrb.gmra.mxu0 %vm107_vm3, %v176_v31 }
 0x15a   :  { %4290 = vmatmul.msk.f32.gmra.mxu1 %vm107_vm3, %v177_v45  ;;  %4292 = vmatmul.msk.f32.gmra.mxu2 %vm107_vm3, %v177_v45 }
 0x15b   :  { %4294 = vmatmul.msk.f32.gmra.mxu3 %vm107_vm3, %v177_v45  ;;  %4296 = vmatmul.msk.f32.gmra.mxu0 %vm107_vm3, %v177_v45 }
 0x1af   :  { %v217_v55 = vpop.f32.mrf.mxu1 }
 0x1b0   :  { %v286_v56 = vpop.f32.mrf.mxu0 }
 0x1b5   :  { %v240_v57 = vpop.f32.mrf.mxu2 }
 0x1b6   :  { %v263_v58 = vpop.f32.mrf.mxu3 }
 0x1b7   :  { %v220_v3 = vpop.f32.mrf.mxu1 }
 0x1b8   :  { %v289_v59 = vpop.f32.mrf.mxu0 }
 0x1bd   :  { %v243_v60 = vpop.f32.mrf.mxu2 }
 0x1be   :  { %v266_v61 = vpop.f32.mrf.mxu3 }
 0x1bf   :  { %v325_v62 = vpop.f32.mrf.mxu1 }
 0x1c0   :  { %v394_v63 = vpop.f32.mrf.mxu0 }
 0x1c5   :  { %v348_v0 = vpop.f32.mrf.mxu2 }
 0x1c6   :  { %v371_v1 = vpop.f32.mrf.mxu3 }
 0x1c7   :  { %v328_v2 = vpop.f32.mrf.mxu1 }
 0x1c8   :  { %v397_v4 = vpop.f32.mrf.mxu0  ;;  %4297 = vmatpush.xpose.msk.msra.mxu1 %vm508_vm11, %v328_v2 }
 0x1c9   :  { %4309 = vmatpush.xpose.msk.msra.mxu0 %vm508_vm11, %v397_v4 }
 0x1cc   :  { %4298 = vmatpush.xpose.msk.msra.mxu1 %vm508_vm11, %v325_v62 }
 0x1cd   :  { %4310 = vmatpush.xpose.msk.msra.mxu0 %vm508_vm11, %v394_v63  ;;  %v351_v5 = vpop.f32.mrf.mxu2 }
 0x1ce   :  { %v374_v6 = vpop.f32.mrf.mxu3  ;;  %4301 = vmatpush.xpose.msk.msrb.mxu2 %vm508_vm11, %v351_v5 }
 0x1cf   :  { %4305 = vmatpush.xpose.msk.msrb.mxu3 %vm508_vm11, %v374_v6  ;;  %v433_v7 = vpop.f32.mrf.mxu1  ;;  %4299 = vmatmul.msk.f32.vlgmr.msra.gmra.mxu1 %vm508_vm11, %v217_v55 }
 0x1d0   :  { %v502_v10 = vpop.f32.mrf.mxu0  ;;  %4311 = vmatmul.msk.f32.vlgmr.msra.gmra.mxu0 %vm508_vm11, %v286_v56 }
 0x1d2   :  { %4302 = vmatpush.xpose.msk.msrb.mxu2 %vm508_vm11, %v348_v0 }
 0x1d3   :  { %4306 = vmatpush.xpose.msk.msrb.mxu3 %vm508_vm11, %v371_v1 }
 0x1d5   :  { %v456_v11 = vpop.f32.mrf.mxu2  ;;  %4303 = vmatmul.msk.f32.vlgmr.msrb.gmra.mxu2 %vm508_vm11, %v240_v57 }
 0x1d6   :  { %v479_v12 = vpop.f32.mrf.mxu3  ;;  %4307 = vmatmul.msk.f32.vlgmr.msrb.gmra.mxu3 %vm508_vm11, %v263_v58 }
 0x1d7   :  { %v436_v13 = vpop.f32.mrf.mxu1  ;;  %4300 = vmatmul.msk.f32.gmra.mxu1 %vm508_vm11, %v220_v3 }
 0x1d8   :  { %v505_v14 = vpop.f32.mrf.mxu0  ;;  %4312 = vmatmul.msk.f32.gmra.mxu0 %vm508_vm11, %v289_v59  ;;  %4313 = vmatpush.msk.msrb.mxu1 %vm753_vm12, %v436_v13 }
 0x1d9   :  { %4322 = vmatpush.msk.msrb.mxu0 %vm753_vm12, %v505_v14 }
 0x1da   :  { %772 = vmatpush.msrb.mxu1 %v433_v7 }
 0x1db   :  { %868 = vmatpush.msrb.mxu0 %v502_v10 }
 0x1dd   :  { %v459_v15 = vpop.f32.mrf.mxu2  ;;  %4304 = vmatmul.msk.f32.gmra.mxu2 %vm508_vm11, %v243_v60 }
 0x1de   :  { %v482_v16 = vpop.f32.mrf.mxu3  ;;  %4308 = vmatmul.msk.f32.gmra.mxu3 %vm508_vm11, %v266_v61  ;;  %4316 = vmatpush.msk.msra.mxu2 %vm753_vm12, %v459_v15 }
 0x1df   :  { %4319 = vmatpush.msk.msra.mxu3 %vm753_vm12, %v482_v16 }
 0x1e0   :  { %804 = vmatpush.msra.mxu2 %v456_v11 }
 0x1e1   :  { %836 = vmatpush.msra.mxu3 %v479_v12 }
 0x24c   :  { %v538_v20 = vpop.f32.mrf.mxu1 }
 0x24d   :  { %v643_v26 = vpop.f32.mrf.mxu0  ;;  %v649_v33 = vmul.f32 0.17677669, %v538_v20 }
 0x24e   :  { %v655_v34 = vmul.f32 0.17677669, %v643_v26 }
 0x24f   :  { %v658_v37 = vsel %vm657_vm13, %v649_v33, -inf }
 0x250   :  { %v677_v36 = vsel %vm657_vm13, %v655_v34, -inf }
 0x254   :  { %v541_v32 = vpop.f32.mrf.mxu1 }
 0x255   :  { %v650_v35 = vmul.f32 0.17677669, %v541_v32  ;;  %v646_v38 = vpop.f32.mrf.mxu0 }
 0x256   :  { %v656_v40 = vmul.f32 0.17677669, %v646_v38 }
 0x257   :  { %v662_v39 = vsel %vm661_vm14, %v650_v35, -inf }
 0x258   :  { %v573_v17 = vpop.f32.mrf.mxu2  ;;  %v680_v41 = vsel %vm661_vm14, %v656_v40, -inf }
 0x259   :  { %v608_v18 = vpop.f32.mrf.mxu3  ;;  %v651_v19 = vmul.f32 0.17677669, %v573_v17 }
 0x25a   :  { %v653_v22 = vmul.f32 0.17677669, %v608_v18 }
 0x25b   :  { %v665_v21 = vsel %vm657_vm13, %v651_v19, -inf }
 0x25c   :  { %666 = vmax.xlane.f32.xlu2 %v665_v21  ;;  %v671_v28 = vsel %vm657_vm13, %v653_v22, -inf }
 0x260   :  { %v576_v23 = vpop.f32.mrf.mxu2 }
 0x261   :  { %v652_v24 = vmul.f32 0.17677669, %v576_v23  ;;  %v611_v25 = vpop.f32.mrf.mxu3 }
 0x262   :  { %v654_v27 = vmul.f32 0.17677669, %v611_v25 }
 0x263   :  { %v668_v30 = vsel %vm661_vm14, %v652_v24, -inf }
 0x264   :  { %v674_v31 = vsel %vm661_vm14, %v654_v27, -inf  ;;  %672 = vmax.xlane.f32.xlu2 %v671_v28  ;;  %669 = vmax.xlane.f32.xlu0 %v668_v30 }
 0x265   :  { %675 = vmax.xlane.f32.xlu1 %v674_v31 }
 0x26c   :  { %678 = vmax.xlane.f32.xlu0 %v677_v36  ;;  %659 = vmax.xlane.f32.xlu2 %v658_v37 }
 0x26d   :  { %663 = vmax.xlane.f32.xlu1 %v662_v39 }
 0x274   :  { %681 = vmax.xlane.f32.xlu2 %v680_v41 }
 0x2cf   :  { %v667_v42 = vpop.xlane.xlu2 %666 }
 0x2d0   :  { %v685_v43 = vsub.f32 %v651_v19, %v667_v42 }
 0x2d2   :  { %v695_v44 = vmul.f32 1.442695, %v685_v43 }
 0x2d4   :  { %4714 = vpow2.f32 %v695_v44 }
 0x2d7   :  { %v673_v45 = vpop.xlane.xlu2 %672  ;;  %v670_v46 = vpop.xlane.xlu0 %669 }
 0x2d8   :  { %v676_v47 = vpop.xlane.xlu1 %675  ;;  %v687_v48 = vsub.f32 %v653_v22, %v673_v45  ;;  %v686_v49 = vsub.f32 %v652_v24, %v670_v46  ;;  %v877_v45 = vld [vmem:[%s6499_s10 + $0x8] sm:$0xff]  ;;  %v878_v46 = vld [vmem:[%s6499_s10 + $0x10] sm:$0xff] }
 0x2d9   :  { %v688_v50 = vsub.f32 %v654_v27, %v676_v47  ;;  %930 = vmatpush.msrb.mxu2 %v877_v45  ;;  %v876_v47 = vld [vmem:[%s6499_s10] sm:$0xff]  ;;  %959 = vmatpush.msrb.mxu3 %v878_v46 }
 0x2da   :  { %v4715_v51 = vpop.eup %4714  ;;  %v699_v52 = vmul.f32 1.442695, %v687_v48  ;;  %v697_v53 = vmul.f32 1.442695, %v686_v49  ;;  %901 = vmatpush.msra.mxu1 %v876_v47  ;;  %v879_v48 = vld [vmem:[%s6499_s10 + $0x18] sm:$0xff] }
 0x2db   :  { %v701_v54 = vmul.f32 1.442695, %v688_v50  ;;  %v713_v55 = vsel %vm657_vm13, %v4715_v51, 0.0  ;;  %988 = vmatpush.msra.mxu0 %v879_v48 }
 0x2dc   :  { %4716 = vpow2.f32 %v699_v52  ;;  %714 = vadd.xlane.f32.xlu0 %v713_v55 }
 0x2dd   :  { %4718 = vpow2.f32 %v701_v54 }
 0x2de   :  { %4720 = vpow2.f32 %v697_v53 }
 0x2df   :  { %v679_v56 = vpop.xlane.xlu0 %678  ;;  %v660_v57 = vpop.xlane.xlu2 %659 }
 0x2e0   :  { %v689_v58 = vsub.f32 %v655_v34, %v679_v56  ;;  %v683_v3 = vsub.f32 %v649_v33, %v660_v57  ;;  %v664_v59 = vpop.xlane.xlu1 %663 }
 0x2e1   :  { %v684_v60 = vsub.f32 %v650_v35, %v664_v59 }
 0x2e2   :  { %v4717_v61 = vpop.eup %4716  ;;  %v703_v62 = vmul.f32 1.442695, %v689_v58  ;;  %v691_v63 = vmul.f32 1.442695, %v683_v3 }
 0x2e3   :  { %v4719_v0 = vpop.eup %4718  ;;  %v693_v1 = vmul.f32 1.442695, %v684_v60  ;;  %v719_v2 = vsel %vm657_vm13, %v4717_v61, 0.0 }
 0x2e4   :  { %v4721_v4 = vpop.eup %4720  ;;  %4722 = vpow2.f32 %v703_v62  ;;  %v722_v5 = vsel %vm661_vm14, %v4719_v0, 0.0  ;;  %720 = vadd.xlane.f32.xlu1 %v719_v2 }
 0x2e5   :  { %4724 = vpow2.f32 %v691_v63  ;;  %723 = vadd.xlane.f32.xlu0 %v722_v5  ;;  %v716_v6 = vsel %vm661_vm14, %v4721_v4, 0.0  ;;  %v4682_v63 = vld [vmem:[%s6500_s11] ss:$0 sm:$0xff] }
 0x2e6   :  { %4726 = vpow2.f32 %v693_v1  ;;  %717 = vadd.xlane.f32.xlu2 %v716_v6 }
 0x2e7   :  { %v682_v7 = vpop.xlane.xlu2 %681 }
 0x2e8   :  { %v690_v10 = vsub.f32 %v656_v40, %v682_v7 }
 0x2ea   :  { %v4723_v11 = vpop.eup %4722  ;;  %v705_v12 = vmul.f32 1.442695, %v690_v10 }
 0x2eb   :  { %v4725_v13 = vpop.eup %4724  ;;  %v725_v14 = vsel %vm657_vm13, %v4723_v11, 0.0 }
 0x2ec   :  { %v4727_v15 = vpop.eup %4726  ;;  %4728 = vpow2.f32 %v705_v12  ;;  %v707_v16 = vsel %vm657_vm13, %v4725_v13, 0.0 }
 0x2ed   :  { %708 = vadd.xlane.f32.xlu1 %v707_v16  ;;  %v710_v17 = vsel %vm661_vm14, %v4727_v15, 0.0 }
 0x2ee   :  { %726 = vadd.xlane.f32.xlu2 %v725_v14  ;;  %711 = vadd.xlane.f32.xlu0 %v710_v17 }
 0x2f2   :  { %v4729_v18 = vpop.eup %4728 }
 0x2f3   :  { %v728_v19 = vsel %vm661_vm14, %v4729_v18, 0.0 }
 0x2f5   :  { %729 = vadd.xlane.f32.xlu1 %v728_v19  ;;  %v1073_v19 = vld [vmem:[%s6504_s14 + $0x18] sm:$0xff] }
 0x34f   :  { %v715_v20 = vpop.xlane.xlu0 %714 }
 0x350   :  { %4730 = vrcp.f32 %v715_v20 }
 0x356   :  { %v4731_v21 = vpop.eup %4730 }
 0x357   :  { %v741_v22 = vmul.f32 %v4731_v21, %v4715_v51  ;;  %v721_v23 = vpop.xlane.xlu1 %720  ;;  %v1071_v21 = vld [vmem:[%s6504_s14 + $0x8] sm:$0xff] }
 0x358   :  { %4732 = vrcp.f32 %v721_v23  ;;  %v724_v25 = vpop.xlane.xlu0 %723 }
 0x359   :  { %v718_v24 = vpop.xlane.xlu2 %717  ;;  %4317 = vmatmul.msk.f32.vlgmr.msra.gmra.mxu2 %vm657_vm13, %v741_v22  ;;  %v1070_v22 = vld [vmem:[%s6504_s14] sm:$0xff] }
 0x35a   :  { %4734 = vrcp.f32 %v718_v24 }
 0x35b   :  { %4736 = vrcp.f32 %v724_v25 }
 0x35e   :  { %v4733_v26 = vpop.eup %4732 }
 0x35f   :  { %v743_v27 = vmul.f32 %v4733_v26, %v4717_v61 }
 0x360   :  { %v4735_v28 = vpop.eup %4734  ;;  %v709_v30 = vpop.xlane.xlu1 %708 }
 0x361   :  { %v727_v31 = vpop.xlane.xlu2 %726  ;;  %4738 = vrcp.f32 %v709_v30  ;;  %v742_v32 = vmul.f32 %v4735_v28, %v4721_v4  ;;  %4320 = vmatmul.msk.f32.vlgmr.msra.gmra.mxu3 %vm657_vm13, %v743_v27  ;;  %v4737_v33 = vpop.eup %4736 }
 0x362   :  { %4740 = vrcp.f32 %v727_v31  ;;  %v712_v34 = vpop.xlane.xlu0 %711  ;;  %v744_v36 = vmul.f32 %v4737_v33, %v4719_v0  ;;  %v1115_v33 = vld [vmem:[%s6505_s16 + $0x30] sm:$0xff] }
 0x363   :  { %4318 = vmatmul.msk.f32.gmra.mxu2 %vm657_vm13, %v742_v32  ;;  %4742 = vrcp.f32 %v712_v34  ;;  %v1116_v32 = vld [vmem:[%s6505_s16 + $0x38] sm:$0xff] }
 0x364   :  { %1136 = vmatpush.msra.mxu2 %v1116_v32  ;;  %v4349_v32 = vld [vmem:[%s6496_s7 + $0xd0] sm:$0xff] }
 0x366   :  { %1137 = vmatpush.msra.mxu2 %v1115_v33  ;;  %v4353_v33 = vld [vmem:[%s6496_s7 + $0xf0] sm:$0xff] }
 0x367   :  { %v4739_v35 = vpop.eup %4738 }
 0x368   :  { %v4741_v37 = vpop.eup %4740  ;;  %v739_v38 = vmul.f32 %v4739_v35, %v4725_v13  ;;  %v730_v39 = vpop.xlane.xlu1 %729 }
 0x369   :  { %v745_v40 = vmul.f32 %v4741_v37, %v4723_v11  ;;  %4744 = vrcp.f32 %v730_v39  ;;  %4321 = vmatmul.msk.f32.gmra.mxu3 %vm657_vm13, %v744_v36  ;;  %v4743_v41 = vpop.eup %4742  ;;  %v1114_v37 = vld [vmem:[%s6505_s16 + $0x28] sm:$0xff]  ;;  %v1113_v39 = vld [vmem:[%s6505_s16 + $0x20] sm:$0xff] }
 0x36a   :  { %4314 = vmatmul.msk.f32.vlgmr.msrb.gmra.mxu1 %vm657_vm13, %v739_v38  ;;  %v740_v43 = vmul.f32 %v4743_v41, %v4727_v15  ;;  %1138 = vmatpush.msra.mxu2 %v1114_v37  ;;  %v4348_v37 = vld [vmem:[%s6496_s7 + $0xc8] sm:$0xff] }
 0x36b   :  { %4323 = vmatmul.msk.f32.vlgmr.msrb.gmra.mxu0 %vm657_vm13, %v745_v40  ;;  %1096 = vmatpush.msrb.mxu1 %v1073_v19 }
 0x36c   :  { %1139 = vmatpush.msra.mxu2 %v1113_v39  ;;  %v4352_v39 = vld [vmem:[%s6496_s7 + $0xe8] sm:$0xff] }
 0x36f   :  { %v4745_v42 = vpop.eup %4744 }
 0x370   :  { %v746_v44 = vmul.f32 %v4745_v42, %v4729_v18  ;;  %v1112_v42 = vld [vmem:[%s6505_s16 + $0x18] sm:$0xff] }
 0x371   :  { %1140 = vmatpush.msra.mxu2 %v1112_v42  ;;  %v4343_v42 = vld [vmem:[%s6496_s7 + $0xa0] sm:$0xff] }
 0x372   :  { %4315 = vmatmul.msk.f32.gmra.mxu1 %vm657_vm13, %v740_v43 }
 0x373   :  { %4324 = vmatmul.msk.f32.gmra.mxu0 %vm657_vm13, %v746_v44 }
 0x3dc   :  { %v806_v49 = vpop.f32.mrf.mxu2 }
 0x3dd   :  { %4327 = vmatmul.msk.f32.vlgmr.msrb.gmra.mxu2 %vm508_vm11, %v806_v49 }
 0x3e4   :  { %v838_v50 = vpop.f32.mrf.mxu3 }
 0x3e5   :  { %4329 = vmatmul.msk.f32.vlgmr.msrb.gmra.mxu3 %vm508_vm11, %v838_v50 }
 0x3e6   :  { %v809_v51 = vpop.f32.mrf.mxu2 }
 0x3e7   :  { %4328 = vmatmul.msk.f32.gmra.mxu2 %vm508_vm11, %v809_v51  ;;  %v774_v52 = vpop.f32.mrf.mxu1  ;;  %v4683_v51 = vld [vmem:[%s6501_s12] ss:$0 sm:$0xff] }
 0x3e8   :  { %v870_v53 = vpop.f32.mrf.mxu0  ;;  %4325 = vmatmul.msk.f32.vlgmr.msra.gmra.mxu1 %vm508_vm11, %v774_v52 }
 0x3e9   :  { %4331 = vmatmul.msk.f32.vlgmr.msra.gmra.mxu0 %vm508_vm11, %v870_v53 }
 0x3ec   :  { %v841_v54 = vpop.f32.mrf.mxu3 }
 0x3ed   :  { %4330 = vmatmul.msk.f32.gmra.mxu3 %vm508_vm11, %v841_v54 }
 0x3ef   :  { %v777_v55 = vpop.f32.mrf.mxu1 }
 0x3f0   :  { %v873_v56 = vpop.f32.mrf.mxu0  ;;  %4326 = vmatmul.msk.f32.gmra.mxu1 %vm508_vm11, %v777_v55  ;;  %v4684_v55 = vld [vmem:[%s6502_s13] ss:$0 sm:$0xff] }
 0x3f1   :  { %4332 = vmatmul.msk.f32.gmra.mxu0 %vm508_vm11, %v873_v56 }
 0x460   :  { %v932_v57 = vpop.f32.mrf.mxu2 }
 0x465   :  { %v903_v58 = vpop.f32.mrf.mxu1 }
 0x466   :  { %v996_v3 = vadd.f32 %v932_v57, %v903_v58  ;;  %v990_v59 = vpop.f32.mrf.mxu0 }
 0x468   :  { %v961_v60 = vpop.f32.mrf.mxu3 }
 0x469   :  { %v998_v61 = vadd.f32 %v996_v3, %v961_v60 }
 0x46a   :  { %v935_v2 = vpop.f32.mrf.mxu2 }
 0x46b   :  { %v1000_v62 = vadd.f32 %v998_v61, %v990_v59 }
 0x46d   :  { %v1002_v0 = vadd.f32 %v1000_v62, %v5001_v9  ;;  %v906_v1 = vpop.f32.mrf.mxu1 }
 0x46e   :  { %v997_v5 = vadd.f32 %v935_v2, %v906_v1  ;;  %v993_v12 = vpop.f32.mrf.mxu0  ;;  %v1111_v1 = vld [vmem:[%s6505_s16 + $0x10] sm:$0xff]  ;;  %v1110_v2 = vld [vmem:[%s6505_s16 + $0x8] sm:$0xff] }
 0x46f   :  { %v5292_v4 = vadd.f32 %v4682_v63, %v1002_v0  ;;  %1141 = vmatpush.msra.mxu2 %v1111_v1  ;;  %v4376_v1 = vld [vmem:[%s6497_s8 + $0xe8] sm:$0xff] }
 0x470   :  { %v964_v6 = vpop.f32.mrf.mxu3 }
 0x471   :  { %v999_v7 = vadd.f32 %v997_v5, %v964_v6  ;;  %v1012_v10 = vsel %vm107_vm3, %v5292_v4, 0.0  ;;  %v1020_v11 = vmul.f32 %v5292_v4, %v5292_v4  ;;  %v1109_v5 = vld [vmem:[%s6505_s16] sm:$0xff]  ;;  %1142 = vmatpush.msra.mxu2 %v1110_v2 }
 0x472   :  { %1013 = vadd.xlane.f32.xlu2 %v1012_v10  ;;  %v4685_v6 = vld [vmem:[%s6503_s15] ss:$0 sm:$0xff] }
 0x473   :  { %v1001_v13 = vadd.f32 %v999_v7, %v993_v12  ;;  %v1022_v14 = vsel %vm107_vm3, %v1020_v11, 0.0  ;;  %1143 = vmatpush.msra.mxu2 %v1109_v5  ;;  %v4363_v2 = vld [vmem:[%s6497_s8 + $0x80] sm:$0xff] }
 0x474   :  { %1023 = vadd.xlane.f32.xlu0 %v1022_v14  ;;  %v4367_v5 = vld [vmem:[%s6497_s8 + $0xa0] sm:$0xff] }
 0x475   :  { %v1003_v9 = vadd.f32 %v1001_v13, %v4996_v8  ;;  %v1072_v8 = vld [vmem:[%s6504_s14 + $0x10] sm:$0xff] }
 0x476   :  { %1097 = vmatpush.msrb.mxu1 %v1072_v8 }
 0x477   :  { %v5300_v15 = vadd.f32 %v4682_v63, %v1003_v9  ;;  %v4686_v9 = vld [vmem:[%s6506_s17] ss:$0 sm:$0xff] }
 0x478   :  { %1098 = vmatpush.msrb.mxu1 %v1071_v21 }
 0x479   :  { %v1015_v16 = vsel %vm105_vm2, %v5300_v15, 0.0  ;;  %v1021_v17 = vmul.f32 %v5300_v15, %v5300_v15 }
 0x47a   :  { %1016 = vadd.xlane.f32.xlu1 %v1015_v16  ;;  %1099 = vmatpush.msrb.mxu1 %v1070_v22 }
 0x47b   :  { %v1025_v18 = vsel %vm105_vm2, %v1021_v17, 0.0 }
 0x47c   :  { %1026 = vadd.xlane.f32.xlu2 %v1025_v18 }
 0x4e5   :  { %v1014_v20 = vpop.xlane.xlu2 %1013 }
 0x4e6   :  { %v1018_v23 = vmul.f32 %v1014_v20, %v5029_v29 }
 0x4e7   :  { %v1024_v24 = vpop.xlane.xlu0 %1023 }
 0x4e8   :  { %v1030_v25 = vmul.f32 %v1018_v23, %v1018_v23  ;;  %v1028_v26 = vmul.f32 %v1024_v24, %v5029_v29  ;;  %v1034_v50 = vsub.f32 %v5292_v4, %v1018_v23 }
 0x4ea   :  { %v1032_v27 = vsub.f32 %v1028_v26, %v1030_v25  ;;  %v4342_v26 = vld [vmem:[%s6496_s7 + $0x98] sm:$0xff] }
 0x4eb   :  { %1250 = vmatpush.msra.mxu3 %v4342_v26 }
 0x4ec   :  { %v1036_v28 = vadd.f32 1e-05, %v1032_v27  ;;  %v4346_v27 = vld [vmem:[%s6496_s7 + $0xb8] sm:$0xff] }
 0x4ed   :  { %v1017_v30 = vpop.xlane.xlu1 %1016  ;;  %1273 = vmatpush.msrb.mxu0 %v4346_v27 }
 0x4ee   :  { %4746 = vrsqrt.f32 %v1036_v28  ;;  %v1019_v31 = vmul.f32 %v1017_v30, %v5029_v29  ;;  %vm1044_vm0 = vweird.f32 %v1036_v28  ;;  %v4341_v30 = vld [vmem:[%s6496_s7 + $0x90] sm:$0xff] }
 0x4ef   :  { %v1027_v34 = vpop.xlane.xlu2 %1026  ;;  %1251 = vmatpush.msra.mxu3 %v4341_v30  ;;  %v4390_v30 = vld [vmem:[%s6498_s9 + $0x98] sm:$0xff] }
 0x4f0   :  { %v1031_v35 = vmul.f32 %v1019_v31, %v1019_v31  ;;  %v1029_v36 = vmul.f32 %v1027_v34, %v5029_v29  ;;  %v1035_v60 = vsub.f32 %v5300_v15, %v1019_v31  ;;  %v4345_v31 = vld [vmem:[%s6496_s7 + $0xb0] sm:$0xff] }
 0x4f1   :  { %1274 = vmatpush.msrb.mxu0 %v4345_v31  ;;  %v4394_v31 = vld [vmem:[%s6498_s9 + $0xb8] sm:$0xff] }
 0x4f2   :  { %v1033_v38 = vsub.f32 %v1029_v36, %v1031_v35  ;;  %v4340_v35 = vld [vmem:[%s6496_s7 + $0x88] sm:$0xff] }
 0x4f3   :  { %v4344_v36 = vld [vmem:[%s6496_s7 + $0xa8] sm:$0xff]  ;;  %1252 = vmatpush.msra.mxu3 %v4340_v35 }
 0x4f4   :  { %v4747_v40 = vpop.eup %4746  ;;  %v1037_v41 = vadd.f32 1e-05, %v1033_v38  ;;  %1275 = vmatpush.msrb.mxu0 %v4344_v36  ;;  %v4389_v36 = vld [vmem:[%s6498_s9 + $0x90] sm:$0xff] }
 0x4f5   :  { %v1039_v43 = vmul.f32 %v4747_v40, %v1036_v28  ;;  %vm1045_vm15 = vweird.f32 %v4747_v40  ;;  %v4354_v28 = vld [vmem:[%s6496_s7 + $0xf8] sm:$0xff] }
 0x4f6   :  { %4748 = vrsqrt.f32 %v1037_v41  ;;  %vm1046_vm1 = vmor %vm1044_vm0, %vm1045_vm15  ;;  %vm1054_vm5 = vweird.f32 %v1037_v41  ;;  %1319 = vmatpush.msrb.mxu2 %v4354_v28  ;;  %1276 = vmatpush.msrb.mxu0 %v4343_v42  ;;  %v4392_v42 = vld [vmem:[%s6498_s9 + $0xa8] sm:$0xff] }
 0x4f7   :  { %v1040_v44 = vmul.f32 %v4747_v40, %v1039_v43  ;;  %v4347_v43 = vld [vmem:[%s6496_s7 + $0xc0] sm:$0xff] }
 0x4f8   :  { %1320 = vmatpush.msrb.mxu2 %v4353_v33  ;;  %v4398_v33 = vld [vmem:[%s6498_s9 + $0xd8] sm:$0xff] }
 0x4f9   :  { %v1041_v45 = vmul.f32 0.5, %v1040_v44 }
 0x4fa   :  { %1321 = vmatpush.msrb.mxu2 %v4352_v39  ;;  %v4397_v39 = vld [vmem:[%s6498_s9 + $0xd0] sm:$0xff] }
 0x4fb   :  { %v1042_v46 = vsub.f32 1.5, %v1041_v45 }
 0x4fc   :  { %v4749_v47 = vpop.eup %4748 }
 0x4fd   :  { %v1043_v48 = vmul.f32 %v4747_v40, %v1042_v46  ;;  %v1049_v49 = vmul.f32 %v4749_v47, %v1037_v41  ;;  %vm1055_vm4 = vweird.f32 %v4749_v47  ;;  %v4339_v41 = vld [vmem:[%s6496_s7 + $0x80] sm:$0xff] }
 0x4fe   :  { %vm1056_vm6 = vmor %vm1054_vm5, %vm1055_vm4  ;;  %1253 = vmatpush.msra.mxu3 %v4339_v41  ;;  %v4351_v46 = vld [vmem:[%s6496_s7 + $0xe0] sm:$0xff]  ;;  %v4388_v41 = vld [vmem:[%s6498_s9 + $0x88] sm:$0xff] }
 0x4ff   :  { %v1047_v52 = vsel %vm1046_vm1, %v4747_v40, %v1043_v48  ;;  %v1050_v53 = vmul.f32 %v4749_v47, %v1049_v49  ;;  %1322 = vmatpush.msrb.mxu2 %v4351_v46 }
 0x500   :  { %v1058_v54 = vmul.f32 %v1047_v52, %v1034_v50  ;;  %v4366_v52 = vld [vmem:[%s6497_s8 + $0x98] sm:$0xff] }
 0x501   :  { %v1051_v56 = vmul.f32 0.5, %v1050_v53  ;;  %v4370_v53 = vld [vmem:[%s6497_s8 + $0xb8] sm:$0xff]  ;;  %1359 = vmatpush.msrb.mxu3 %v4366_v52 }
 0x502   :  { %v1063_v57 = vmul.f32 %v4683_v51, %v1058_v54  ;;  %v4374_v54 = vld [vmem:[%s6497_s8 + $0xd8] sm:$0xff]  ;;  %1382 = vmatpush.msra.mxu0 %v4370_v53 }
 0x503   :  { %v1052_v58 = vsub.f32 1.5, %v1051_v56 }
 0x504   :  { %v1068_v3 = vadd.f32 %v4684_v55, %v1063_v57  ;;  %v4378_v57 = vld [vmem:[%s6497_s8 + $0xf8] sm:$0xff] }
 0x505   :  { %v1053_v59 = vmul.f32 %v4749_v47, %v1052_v58  ;;  %v4365_v58 = vld [vmem:[%s6497_s8 + $0x90] sm:$0xff] }
 0x506   :  { %4333 = vmatmul.msk.f32.vlgmr.msrb.gmra.mxu1 %vm107_vm3, %v1068_v3  ;;  %v4369_v3 = vld [vmem:[%s6497_s8 + $0xb0] sm:$0xff]  ;;  %1360 = vmatpush.msrb.mxu3 %v4365_v58 }
 0x507   :  { %v1057_v61 = vsel %vm1056_vm6, %v4749_v47, %v1053_v59  ;;  %v4373_v59 = vld [vmem:[%s6497_s8 + $0xd0] sm:$0xff]  ;;  %1383 = vmatpush.msra.mxu0 %v4369_v3 }
 0x508   :  { %v1059_v62 = vmul.f32 %v1057_v61, %v1035_v60  ;;  %v4377_v60 = vld [vmem:[%s6497_s8 + $0xf0] sm:$0xff]  ;;  %v4364_v61 = vld [vmem:[%s6497_s8 + $0x88] sm:$0xff] }
 0x509   :  { %1361 = vmatpush.msrb.mxu3 %v4364_v61 }
 0x50a   :  { %v1064_v63 = vmul.f32 %v4683_v51, %v1059_v62 }
 0x50b   :  { %1362 = vmatpush.msrb.mxu3 %v4363_v2 }
 0x50c   :  { %v1069_v0 = vadd.f32 %v4684_v55, %v1064_v63  ;;  %v4368_v63 = vld [vmem:[%s6497_s8 + $0xa8] sm:$0xff] }
 0x50d   :  { %1384 = vmatpush.msra.mxu0 %v4368_v63 }
 0x50e   :  { %4334 = vmatmul.msk.f32.gmra.mxu1 %vm107_vm3, %v1069_v0  ;;  %v4372_v0 = vld [vmem:[%s6497_s8 + $0xc8] sm:$0xff] }
 0x50f   :  { %1385 = vmatpush.msra.mxu0 %v4367_v5 }
 0x583   :  { %v1101_v7 = vpop.f32.mrf.mxu1 }
 0x584   :  { %v1102_v10 = vadd.f32 %v4685_v6, %v1101_v7 }
 0x586   :  { %v1107_v11 = vmax.f32 %v1102_v10, 0.0  ;;  %v4371_v10 = vld [vmem:[%s6497_s8 + $0xc0] sm:$0xff] }
 0x588   :  { %4335 = vmatmul.msk.f32.vlgmr.msra.gmra.mxu2 %vm1121_vm7, %v1107_v11  ;;  %v4375_v11 = vld [vmem:[%s6497_s8 + $0xe0] sm:$0xff] }
 0x589   :  { %1428 = vmatpush.msra.mxu2 %v4378_v57 }
 0x58b   :  { %v1104_v12 = vpop.f32.mrf.mxu1  ;;  %1429 = vmatpush.msra.mxu2 %v4377_v60 }
 0x58c   :  { %v1105_v13 = vadd.f32 %v4685_v6, %v1104_v12 }
 0x58d   :  { %1430 = vmatpush.msra.mxu2 %v4376_v1 }
 0x58e   :  { %v1108_v14 = vmax.f32 %v1105_v13, 0.0 }
 0x58f   :  { %1431 = vmatpush.msra.mxu2 %v4375_v11 }
 0x590   :  { %4336 = vmatmul.msk.f32.gmra.mxu2 %vm1121_vm7, %v1108_v14 }
 0x60b   :  { %v1145_v16 = vpop.f32.mrf.mxu2 }
 0x60c   :  { %v1146_v17 = vadd.f32 %v4686_v9, %v1145_v16 }
 0x60e   :  { %v5366_v18 = vadd.f32 %v1146_v17, %v5292_v4 }
 0x610   :  { %v1157_v19 = vsel %vm107_vm3, %v5366_v18, 0.0  ;;  %v1165_v8 = vmul.f32 %v5366_v18, %v5366_v18 }
 0x611   :  { %1158 = vadd.xlane.f32.xlu0 %v1157_v19 }
 0x612   :  { %v1167_v20 = vsel %vm107_vm3, %v1165_v8, 0.0 }
 0x613   :  { %1168 = vadd.xlane.f32.xlu1 %v1167_v20  ;;  %v1148_v21 = vpop.f32.mrf.mxu2  ;;  %v4687_v20 = vld [vmem:[%s6494_s5 + $0x1] ss:$0 sm:$0xff] }
 0x614   :  { %v1149_v22 = vadd.f32 %v4686_v9, %v1148_v21 }
 0x616   :  { %v5374_v23 = vadd.f32 %v1149_v22, %v5300_v15  ;;  %v4350_v15 = vld [vmem:[%s6496_s7 + $0xd8] sm:$0xff] }
 0x617   :  { %1296 = vmatpush.msra.mxu1 %v4350_v15 }
 0x618   :  { %v1160_v24 = vsel %vm105_vm2, %v5374_v23, 0.0  ;;  %v1166_v4 = vmul.f32 %v5374_v23, %v5374_v23 }
 0x619   :  { %1161 = vadd.xlane.f32.xlu2 %v1160_v24  ;;  %1297 = vmatpush.msra.mxu1 %v4349_v32  ;;  %v4688_v24 = vld [vmem:[%s6495_s6 + $0x1] ss:$0 sm:$0xff] }
 0x61a   :  { %v1170_v25 = vsel %vm105_vm2, %v1166_v4, 0.0 }
 0x61b   :  { %1171 = vadd.xlane.f32.xlu0 %v1170_v25  ;;  %1298 = vmatpush.msra.mxu1 %v4348_v37  ;;  %v4393_v37 = vld [vmem:[%s6498_s9 + $0xb0] sm:$0xff] }
 0x61d   :  { %1299 = vmatpush.msra.mxu1 %v4347_v43 }
 0x61f   :  { %1405 = vmatpush.msrb.mxu1 %v4374_v54 }
 0x621   :  { %1406 = vmatpush.msrb.mxu1 %v4373_v59 }
 0x623   :  { %1407 = vmatpush.msrb.mxu1 %v4372_v0 }
 0x625   :  { %1408 = vmatpush.msrb.mxu1 %v4371_v10 }
 0x684   :  { %v1159_v34 = vpop.xlane.xlu0 %1158 }
 0x685   :  { %v5415_v38 = vmul.f32 %v1159_v34, %v5029_v29  ;;  %v4402_v34 = vld [vmem:[%s6498_s9 + $0xf8] sm:$0xff] }
 0x686   :  { %v1169_v40 = vpop.xlane.xlu1 %1168 }
 0x687   :  { %v1175_v44 = vmul.f32 %v5415_v38, %v5415_v38  ;;  %v1173_v45 = vmul.f32 %v1169_v40, %v5029_v29  ;;  %v1179_v8 = vsub.f32 %v5366_v18, %v5415_v38  ;;  %v4401_v40 = vld [vmem:[%s6498_s9 + $0xf0] sm:$0xff] }
 0x689   :  { %v1177_v47 = vsub.f32 %v1173_v45, %v1175_v44  ;;  %v4396_v44 = vld [vmem:[%s6498_s9 + $0xc8] sm:$0xff] }
 0x68a   :  { %v4400_v45 = vld [vmem:[%s6498_s9 + $0xe8] sm:$0xff] }
 0x68b   :  { %v1181_v48 = vadd.f32 1e-05, %v1177_v47  ;;  %v4387_v47 = vld [vmem:[%s6498_s9 + $0x80] sm:$0xff] }
 0x68c   :  { %v1162_v49 = vpop.xlane.xlu2 %1161 }
 0x68d   :  { %4750 = vrsqrt.f32 %v1181_v48  ;;  %v5436_v50 = vmul.f32 %v1162_v49, %v5029_v29  ;;  %vm1189_vm9 = vweird.f32 %v1181_v48  ;;  %v4395_v49 = vld [vmem:[%s6498_s9 + $0xc0] sm:$0xff] }
 0x68e   :  { %v1172_v51 = vpop.xlane.xlu0 %1171 }
 0x68f   :  { %v1176_v55 = vmul.f32 %v5436_v50, %v5436_v50  ;;  %v1174_v56 = vmul.f32 %v1172_v51, %v5029_v29  ;;  %v1180_v32 = vsub.f32 %v5374_v23, %v5436_v50  ;;  %v4399_v50 = vld [vmem:[%s6498_s9 + $0xe0] sm:$0xff] }
 0x691   :  { %v1178_v62 = vsub.f32 %v1174_v56, %v1176_v55 }
 0x693   :  { %v4751_v6 = vpop.eup %4750  ;;  %v1182_v7 = vadd.f32 1e-05, %v1178_v62 }
 0x694   :  { %v1184_v12 = vmul.f32 %v4751_v6, %v1181_v48  ;;  %vm1190_vm8 = vweird.f32 %v4751_v6  ;;  %v4391_v48 = vld [vmem:[%s6498_s9 + $0xa0] sm:$0xff] }
 0x695   :  { %4752 = vrsqrt.f32 %v1182_v7  ;;  %vm1191_vm10 = vmor %vm1189_vm9, %vm1190_vm8  ;;  %vm1199_vm0 = vweird.f32 %v1182_v7 }
 0x696   :  { %v1185_v13 = vmul.f32 %v4751_v6, %v1184_v12 }
 0x698   :  { %v1186_v14 = vmul.f32 0.5, %v1185_v13 }
 0x69a   :  { %v1187_v9 = vsub.f32 1.5, %v1186_v14 }
 0x69b   :  { %v4753_v16 = vpop.eup %4752 }
 0x69c   :  { %v1188_v17 = vmul.f32 %v4751_v6, %v1187_v9  ;;  %v1194_v19 = vmul.f32 %v4753_v16, %v1182_v7  ;;  %vm1200_vm15 = vweird.f32 %v4753_v16 }
 0x69d   :  { %vm1201_vm1 = vmor %vm1199_vm0, %vm1200_vm15 }
 0x69e   :  { %v1192_v21 = vsel %vm1191_vm10, %v4751_v6, %v1188_v17  ;;  %v1195_v22 = vmul.f32 %v4753_v16, %v1194_v19 }
 0x69f   :  { %v1203_v4 = vmul.f32 %v1192_v21, %v1179_v8 }
 0x6a0   :  { %v1196_v25 = vmul.f32 0.5, %v1195_v22 }
 0x6a1   :  { %v1208_v26 = vmul.f32 %v4687_v20, %v1203_v4 }
 0x6a2   :  { %v1197_v27 = vsub.f32 1.5, %v1196_v25 }
 0x6a3   :  { %v1213_v15 = vadd.f32 %v4688_v24, %v1208_v26 }
 0x6a4   :  { %v1198_v28 = vmul.f32 %v4753_v16, %v1197_v27 }
 0x6a5   :  { %4355 = vmatmul.msk.f32.vlgmr.msra.gmra.mxu3 %vm107_vm3, %v1213_v15  ;;  %4357 = vmatmul.msk.f32.vlgmr.msrb.gmra.mxu0 %vm107_vm3, %v1213_v15 }
 0x6a6   :  { %v1202_v35 = vsel %vm1201_vm1, %v4753_v16, %v1198_v28  ;;  %4359 = vmatmul.msk.f32.vlgmr.msra.gmra.mxu1 %vm107_vm3, %v1213_v15  ;;  %4361 = vmatmul.msk.f32.vlgmr.msrb.gmra.mxu2 %vm107_vm3, %v1213_v15 }
 0x6a7   :  { %v1204_v38 = vmul.f32 %v1202_v35, %v1180_v32  ;;  %1468 = vmatpush.msra.mxu3 %v4390_v30  ;;  %1491 = vmatpush.msrb.mxu0 %v4394_v31 }
 0x6a8   :  { %1514 = vmatpush.msra.mxu1 %v4398_v33  ;;  %1537 = vmatpush.msrb.mxu2 %v4402_v34 }
 0x6a9   :  { %v1209_v43 = vmul.f32 %v4687_v20, %v1204_v38  ;;  %1469 = vmatpush.msra.mxu3 %v4389_v36  ;;  %1492 = vmatpush.msrb.mxu0 %v4393_v37 }
 0x6aa   :  { %1515 = vmatpush.msra.mxu1 %v4397_v39  ;;  %1538 = vmatpush.msrb.mxu2 %v4401_v40 }
 0x6ab   :  { %v1214_v46 = vadd.f32 %v4688_v24, %v1209_v43  ;;  %1470 = vmatpush.msra.mxu3 %v4388_v41  ;;  %1493 = vmatpush.msrb.mxu0 %v4392_v42 }
 0x6ac   :  { %1516 = vmatpush.msra.mxu1 %v4396_v44  ;;  %1539 = vmatpush.msrb.mxu2 %v4400_v45 }
 0x6ad   :  { %4356 = vmatmul.msk.f32.gmra.mxu3 %vm107_vm3, %v1214_v46  ;;  %4358 = vmatmul.msk.f32.gmra.mxu0 %vm107_vm3, %v1214_v46 }
 0x6ae   :  { %4360 = vmatmul.msk.f32.gmra.mxu1 %vm107_vm3, %v1214_v46  ;;  %4362 = vmatmul.msk.f32.gmra.mxu2 %vm107_vm3, %v1214_v46 }
 0x6af   :  { %1471 = vmatpush.msra.mxu3 %v4387_v47  ;;  %1494 = vmatpush.msrb.mxu0 %v4391_v48 }
 0x6b0   :  { %1517 = vmatpush.msra.mxu1 %v4395_v49  ;;  %1540 = vmatpush.msrb.mxu2 %v4399_v50 }
 0x6b5   :  { %4379 = vmatmul.msk.f32.vlgmr.msrb.gmra.mxu3 %vm107_vm3, %v1213_v15  ;;  %4381 = vmatmul.msk.f32.vlgmr.msra.gmra.mxu0 %vm107_vm3, %v1213_v15 }
 0x6b6   :  { %4383 = vmatmul.msk.f32.vlgmr.msrb.gmra.mxu1 %vm107_vm3, %v1213_v15  ;;  %4385 = vmatmul.msk.f32.vlgmr.msra.gmra.mxu2 %vm107_vm3, %v1213_v15 }
 0x6bd   :  { %4380 = vmatmul.msk.f32.gmra.mxu3 %vm107_vm3, %v1214_v46  ;;  %4382 = vmatmul.msk.f32.gmra.mxu0 %vm107_vm3, %v1214_v46 }
 0x6be   :  { %4384 = vmatmul.msk.f32.gmra.mxu1 %vm107_vm3, %v1214_v46  ;;  %4386 = vmatmul.msk.f32.gmra.mxu2 %vm107_vm3, %v1214_v46 }
 0x6c5   :  { %4403 = vmatmul.msk.f32.vlgmr.msra.gmra.mxu3 %vm107_vm3, %v1213_v15  ;;  %4405 = vmatmul.msk.f32.vlgmr.msrb.gmra.mxu0 %vm107_vm3, %v1213_v15 }
 0x6c6   :  { %4407 = vmatmul.msk.f32.vlgmr.msra.gmra.mxu1 %vm107_vm3, %v1213_v15  ;;  %4409 = vmatmul.msk.f32.vlgmr.msrb.gmra.mxu2 %vm107_vm3, %v1213_v15 }
 0x6cd   :  { %4404 = vmatmul.msk.f32.gmra.mxu3 %vm107_vm3, %v1214_v46  ;;  %4406 = vmatmul.msk.f32.gmra.mxu0 %vm107_vm3, %v1214_v46 }
 0x6ce   :  { %4408 = vmatmul.msk.f32.gmra.mxu1 %vm107_vm3, %v1214_v46  ;;  %4410 = vmatmul.msk.f32.gmra.mxu2 %vm107_vm3, %v1214_v46 }
 0x722   :  { %v1278_v51 = vpop.f32.mrf.mxu0 }
 0x723   :  { %v1301_v52 = vpop.f32.mrf.mxu1 }
 0x728   :  { %v1255_v53 = vpop.f32.mrf.mxu3 }
 0x729   :  { %v1324_v54 = vpop.f32.mrf.mxu2 }
 0x72a   :  { %v1281_v55 = vpop.f32.mrf.mxu0 }
 0x72b   :  { %v1304_v56 = vpop.f32.mrf.mxu1 }
 0x730   :  { %v1258_v57 = vpop.f32.mrf.mxu3 }
 0x731   :  { %v1327_v58 = vpop.f32.mrf.mxu2 }
 0x732   :  { %v1387_v3 = vpop.f32.mrf.mxu0 }
 0x733   :  { %v1410_v59 = vpop.f32.mrf.mxu1 }
 0x738   :  { %v1364_v60 = vpop.f32.mrf.mxu3 }
 0x739   :  { %v1433_v61 = vpop.f32.mrf.mxu2 }
 0x73a   :  { %v1390_v62 = vpop.f32.mrf.mxu0 }
 0x73b   :  { %v1413_v63 = vpop.f32.mrf.mxu1  ;;  %4415 = vmatpush.xpose.msk.msra.mxu0 %vm508_vm11, %v1390_v62 }
 0x73c   :  { %4419 = vmatpush.xpose.msk.msrb.mxu1 %vm508_vm11, %v1413_v63 }
 0x73f   :  { %4416 = vmatpush.xpose.msk.msra.mxu0 %vm508_vm11, %v1387_v3 }
 0x740   :  { %4420 = vmatpush.xpose.msk.msrb.mxu1 %vm508_vm11, %v1410_v59  ;;  %v1367_v0 = vpop.f32.mrf.mxu3 }
 0x741   :  { %v1436_v1 = vpop.f32.mrf.mxu2  ;;  %4411 = vmatpush.xpose.msk.msrb.mxu3 %vm508_vm11, %v1367_v0 }
 0x742   :  { %4423 = vmatpush.xpose.msk.msra.mxu2 %vm508_vm11, %v1436_v1  ;;  %v1496_v2 = vpop.f32.mrf.mxu0  ;;  %4417 = vmatmul.msk.f32.vlgmr.msra.gmra.mxu0 %vm508_vm11, %v1278_v51 }
 0x743   :  { %v1519_v5 = vpop.f32.mrf.mxu1  ;;  %4421 = vmatmul.msk.f32.vlgmr.msrb.gmra.mxu1 %vm508_vm11, %v1301_v52 }
 0x745   :  { %4412 = vmatpush.xpose.msk.msrb.mxu3 %vm508_vm11, %v1364_v60 }
 0x746   :  { %4424 = vmatpush.xpose.msk.msra.mxu2 %vm508_vm11, %v1433_v61 }
 0x748   :  { %v1473_v6 = vpop.f32.mrf.mxu3  ;;  %4413 = vmatmul.msk.f32.vlgmr.msrb.gmra.mxu3 %vm508_vm11, %v1255_v53 }
 0x749   :  { %v1542_v7 = vpop.f32.mrf.mxu2  ;;  %4425 = vmatmul.msk.f32.vlgmr.msra.gmra.mxu2 %vm508_vm11, %v1324_v54 }
 0x74a   :  { %v1499_v10 = vpop.f32.mrf.mxu0  ;;  %4418 = vmatmul.msk.f32.gmra.mxu0 %vm508_vm11, %v1281_v55 }
 0x74b   :  { %v1522_v11 = vpop.f32.mrf.mxu1  ;;  %4422 = vmatmul.msk.f32.gmra.mxu1 %vm508_vm11, %v1304_v56  ;;  %4430 = vmatpush.msk.msrb.mxu0 %vm753_vm12, %v1499_v10 }
 0x74c   :  { %4433 = vmatpush.msk.msra.mxu1 %vm753_vm12, %v1522_v11 }
 0x74d   :  { %1840 = vmatpush.msrb.mxu0 %v1496_v2 }
 0x74e   :  { %1872 = vmatpush.msra.mxu1 %v1519_v5 }
 0x750   :  { %v1476_v12 = vpop.f32.mrf.mxu3  ;;  %4414 = vmatmul.msk.f32.gmra.mxu3 %vm508_vm11, %v1258_v57 }
 0x751   :  { %v1545_v13 = vpop.f32.mrf.mxu2  ;;  %4426 = vmatmul.msk.f32.gmra.mxu2 %vm508_vm11, %v1327_v58  ;;  %4427 = vmatpush.msk.msra.mxu3 %vm753_vm12, %v1476_v12 }
 0x752   :  { %4436 = vmatpush.msk.msrb.mxu2 %vm753_vm12, %v1545_v13 }
 0x753   :  { %1808 = vmatpush.msra.mxu3 %v1473_v6 }
 0x754   :  { %1904 = vmatpush.msrb.mxu2 %v1542_v7 }
 0x7bf   :  { %v1612_v17 = vpop.f32.mrf.mxu0 }
 0x7c0   :  { %v1647_v8 = vpop.f32.mrf.mxu1  ;;  %v1690_v22 = vmul.f32 0.17677669, %v1612_v17 }
 0x7c1   :  { %v1692_v32 = vmul.f32 0.17677669, %v1647_v8  ;;  %v4439_v8 = vld [vmem:[%s6499_s10 + $0x20] sm:$0xff] }
 0x7c2   :  { %v1702_v27 = vsel %vm657_vm13, %v1690_v22, -inf  ;;  %1938 = vmatpush.msrb.mxu3 %v4439_v8 }
 0x7c3   :  { %v1708_v36 = vsel %vm657_vm13, %v1692_v32, -inf }
 0x7c7   :  { %v1615_v28 = vpop.f32.mrf.mxu0 }
 0x7c8   :  { %v1650_v31 = vpop.f32.mrf.mxu1  ;;  %v1691_v33 = vmul.f32 0.17677669, %v1615_v28 }
 0x7c9   :  { %v1693_v34 = vmul.f32 0.17677669, %v1650_v31 }
 0x7ca   :  { %v1705_v35 = vsel %vm661_vm14, %v1691_v33, -inf }
 0x7cb   :  { %v1577_v14 = vpop.f32.mrf.mxu3  ;;  %v1711_v37 = vsel %vm661_vm14, %v1693_v34, -inf }
 0x7cc   :  { %v1688_v9 = vmul.f32 0.17677669, %v1577_v14  ;;  %v1682_v16 = vpop.f32.mrf.mxu2 }
 0x7cd   :  { %v1694_v19 = vmul.f32 0.17677669, %v1682_v16 }
 0x7ce   :  { %v1696_v20 = vsel %vm657_vm13, %v1688_v9, -inf }
 0x7cf   :  { %v1714_v21 = vsel %vm657_vm13, %v1694_v19, -inf  ;;  %1697 = vmax.xlane.f32.xlu1 %v1696_v20 }
 0x7d0   :  { %1715 = vmax.xlane.f32.xlu2 %v1714_v21 }
 0x7d3   :  { %v1580_v24 = vpop.f32.mrf.mxu3 }
 0x7d4   :  { %v1689_v4 = vmul.f32 0.17677669, %v1580_v24  ;;  %v1685_v25 = vpop.f32.mrf.mxu2 }
 0x7d5   :  { %v1695_v26 = vmul.f32 0.17677669, %v1685_v25 }
 0x7d6   :  { %v1699_v15 = vsel %vm661_vm14, %v1689_v4, -inf }
 0x7d7   :  { %v1717_v30 = vsel %vm661_vm14, %v1695_v26, -inf  ;;  %1703 = vmax.xlane.f32.xlu1 %v1702_v27  ;;  %1700 = vmax.xlane.f32.xlu0 %v1699_v15 }
 0x7d8   :  { %1718 = vmax.xlane.f32.xlu2 %v1717_v30 }
 0x7df   :  { %1706 = vmax.xlane.f32.xlu1 %v1705_v35  ;;  %1709 = vmax.xlane.f32.xlu0 %v1708_v36 }
 0x7e0   :  { %1712 = vmax.xlane.f32.xlu2 %v1711_v37 }
 0x842   :  { %v1698_v38 = vpop.xlane.xlu1 %1697 }
 0x843   :  { %v1716_v39 = vpop.xlane.xlu2 %1715  ;;  %v1720_v40 = vsub.f32 %v1688_v9, %v1698_v38 }
 0x844   :  { %v1726_v41 = vsub.f32 %v1694_v19, %v1716_v39 }
 0x845   :  { %v1728_v42 = vmul.f32 1.442695, %v1720_v40 }
 0x846   :  { %v1740_v43 = vmul.f32 1.442695, %v1726_v41 }
 0x847   :  { %4754 = vpow2.f32 %v1728_v42  ;;  %v4442_v42 = vld [vmem:[%s6499_s10 + $0x38] sm:$0xff] }
 0x848   :  { %4756 = vpow2.f32 %v1740_v43  ;;  %2025 = vmatpush.msra.mxu2 %v4442_v42  ;;  %v4440_v43 = vld [vmem:[%s6499_s10 + $0x28] sm:$0xff]  ;;  %v2275_v42 = vld [vmem:[%s6496_s7 + $0x58] sm:$0xff] }
 0x849   :  { %1967 = vmatpush.msra.mxu0 %v4440_v43 }
 0x84a   :  { %v1704_v44 = vpop.xlane.xlu1 %1703  ;;  %v1701_v45 = vpop.xlane.xlu0 %1700 }
 0x84b   :  { %v1719_v46 = vpop.xlane.xlu2 %1718  ;;  %v1722_v47 = vsub.f32 %v1690_v22, %v1704_v44  ;;  %v1721_v48 = vsub.f32 %v1689_v4, %v1701_v45  ;;  %v4441_v44 = vld [vmem:[%s6499_s10 + $0x30] sm:$0xff] }
 0x84c   :  { %v1727_v49 = vsub.f32 %v1695_v26, %v1719_v46  ;;  %1996 = vmatpush.msrb.mxu1 %v4441_v44 }
 0x84d   :  { %v4755_v50 = vpop.eup %4754  ;;  %v1732_v51 = vmul.f32 1.442695, %v1722_v47  ;;  %v1730_v52 = vmul.f32 1.442695, %v1721_v48 }
 0x84e   :  { %v4757_v53 = vpop.eup %4756  ;;  %v1742_v54 = vmul.f32 1.442695, %v1727_v49  ;;  %v1744_v55 = vsel %vm657_vm13, %v4755_v50, 0.0 }
 0x84f   :  { %4758 = vpow2.f32 %v1732_v51  ;;  %v1762_v56 = vsel %vm657_vm13, %v4757_v53, 0.0  ;;  %1745 = vadd.xlane.f32.xlu0 %v1744_v55 }
 0x850   :  { %4760 = vpow2.f32 %v1742_v54  ;;  %1763 = vadd.xlane.f32.xlu1 %v1762_v56 }
 0x851   :  { %4762 = vpow2.f32 %v1730_v52 }
 0x852   :  { %v1707_v57 = vpop.xlane.xlu1 %1706  ;;  %v1710_v58 = vpop.xlane.xlu0 %1709 }
 0x853   :  { %v1713_v3 = vpop.xlane.xlu2 %1712  ;;  %v1723_v59 = vsub.f32 %v1691_v33, %v1707_v57  ;;  %v1724_v60 = vsub.f32 %v1692_v32, %v1710_v58 }
 0x854   :  { %v1725_v61 = vsub.f32 %v1693_v34, %v1713_v3 }
 0x855   :  { %v4759_v62 = vpop.eup %4758  ;;  %v1734_v63 = vmul.f32 1.442695, %v1723_v59  ;;  %v1736_v0 = vmul.f32 1.442695, %v1724_v60  ;;  %v4689_v59 = vld [vmem:[%s6500_s11 + $0x1] ss:$0 sm:$0xff] }
 0x856   :  { %v4761_v1 = vpop.eup %4760  ;;  %v1738_v2 = vmul.f32 1.442695, %v1725_v61  ;;  %v1750_v5 = vsel %vm657_vm13, %v4759_v62, 0.0 }
 0x857   :  { %v4763_v6 = vpop.eup %4762  ;;  %4764 = vpow2.f32 %v1734_v63  ;;  %v1765_v7 = vsel %vm661_vm14, %v4761_v1, 0.0  ;;  %1751 = vadd.xlane.f32.xlu0 %v1750_v5 }
 0x858   :  { %4766 = vpow2.f32 %v1738_v2  ;;  %1766 = vadd.xlane.f32.xlu1 %v1765_v7  ;;  %v1747_v10 = vsel %vm661_vm14, %v4763_v6, 0.0 }
 0x859   :  { %4768 = vpow2.f32 %v1736_v0  ;;  %1748 = vadd.xlane.f32.xlu2 %v1747_v10 }
 0x85d   :  { %v4765_v11 = vpop.eup %4764 }
 0x85e   :  { %v4767_v12 = vpop.eup %4766  ;;  %v1753_v13 = vsel %vm661_vm14, %v4765_v11, 0.0 }
 0x85f   :  { %v4769_v14 = vpop.eup %4768  ;;  %v1759_v9 = vsel %vm661_vm14, %v4767_v12, 0.0  ;;  %1754 = vadd.xlane.f32.xlu0 %v1753_v13  ;;  %v5652_v13 = vld [vmem:[%s6492_s18 + $0x10] sm:$0xff] }
 0x860   :  { %1760 = vadd.xlane.f32.xlu1 %v1759_v9  ;;  %v1756_v16 = vsel %vm657_vm13, %v4769_v14, 0.0 }
 0x861   :  { %1757 = vadd.xlane.f32.xlu2 %v1756_v16  ;;  %v2206_v16 = vsel %vm107_vm3, %v5652_v13, 0.0 }
 0x8c2   :  { %v1746_v17 = vpop.xlane.xlu0 %1745 }
 0x8c3   :  { %v1764_v19 = vpop.xlane.xlu1 %1763  ;;  %4770 = vrcp.f32 %v1746_v17 }
 0x8c4   :  { %4772 = vrcp.f32 %v1764_v19  ;;  %v2214_v19 = vmul.f32 %v5652_v13, %v5652_v13 }
 0x8c9   :  { %v4771_v20 = vpop.eup %4770 }
 0x8ca   :  { %v4773_v21 = vpop.eup %4772  ;;  %v1776_v22 = vmul.f32 %v4771_v20, %v4755_v50  ;;  %v1752_v24 = vpop.xlane.xlu0 %1751  ;;  %v2216_v20 = vsel %vm107_vm3, %v2214_v19, 0.0 }
 0x8cb   :  { %v1782_v4 = vmul.f32 %v4773_v21, %v4757_v53  ;;  %v1767_v25 = vpop.xlane.xlu1 %1766  ;;  %4774 = vrcp.f32 %v1752_v24  ;;  %v4457_v24 = vld [vmem:[%s6504_s14 + $0x38] sm:$0xff] }
 0x8cc   :  { %4776 = vrcp.f32 %v1767_v25  ;;  %v1749_v26 = vpop.xlane.xlu2 %1748  ;;  %4428 = vmatmul.msk.f32.vlgmr.msra.gmra.mxu3 %vm657_vm13, %v1776_v22  ;;  %v4455_v25 = vld [vmem:[%s6504_s14 + $0x28] sm:$0xff] }
 0x8cd   :  { %4778 = vrcp.f32 %v1749_v26  ;;  %4437 = vmatmul.msk.f32.vlgmr.msrb.gmra.mxu2 %vm657_vm13, %v1782_v4  ;;  %2138 = vmatpush.msra.mxu3 %v4457_v24  ;;  %v4456_v4 = vld [vmem:[%s6504_s14 + $0x30] sm:$0xff] }
 0x8cf   :  { %2139 = vmatpush.msra.mxu3 %v4456_v4  ;;  %v2379_v4 = vld [vmem:[%s6497_s8 + $0x8] sm:$0xff] }
 0x8d1   :  { %v4775_v27 = vpop.eup %4774  ;;  %2140 = vmatpush.msra.mxu3 %v4455_v25  ;;  %v2383_v25 = vld [vmem:[%s6497_s8 + $0x28] sm:$0xff] }
 0x8d2   :  { %v4777_v15 = vpop.eup %4776  ;;  %v1778_v28 = vmul.f32 %v4775_v27, %v4759_v62  ;;  %v1755_v30 = vpop.xlane.xlu0 %1754  ;;  %v4454_v27 = vld [vmem:[%s6504_s14 + $0x20] sm:$0xff] }
 0x8d3   :  { %v4779_v31 = vpop.eup %4778  ;;  %4780 = vrcp.f32 %v1755_v30  ;;  %v1783_v32 = vmul.f32 %v4777_v15, %v4761_v1  ;;  %v1761_v35 = vpop.xlane.xlu1 %1760  ;;  %2141 = vmatpush.msra.mxu3 %v4454_v27 }
 0x8d4   :  { %v1758_v33 = vpop.xlane.xlu2 %1757  ;;  %v1777_v34 = vmul.f32 %v4779_v31, %v4763_v6  ;;  %4431 = vmatmul.msk.f32.vlgmr.msrb.gmra.mxu0 %vm657_vm13, %v1778_v28 }
 0x8d5   :  { %4782 = vrcp.f32 %v1758_v33  ;;  %4438 = vmatmul.msk.f32.gmra.mxu2 %vm657_vm13, %v1783_v32 }
 0x8d6   :  { %4429 = vmatmul.msk.f32.gmra.mxu3 %vm657_vm13, %v1777_v34  ;;  %4784 = vrcp.f32 %v1761_v35  ;;  %v2267_v35 = vld [vmem:[%s6496_s7 + $0x18] sm:$0xff] }
 0x8d9   :  { %v4781_v36 = vpop.eup %4780 }
 0x8da   :  { %v1779_v37 = vmul.f32 %v4781_v36, %v4765_v11  ;;  %v2271_v36 = vld [vmem:[%s6496_s7 + $0x38] sm:$0xff] }
 0x8db   :  { %v4783_v38 = vpop.eup %4782  ;;  %2321 = vmatpush.msrb.mxu2 %v2271_v36  ;;  %v2389_v36 = vld [vmem:[%s6497_s8 + $0x58] sm:$0xff] }
 0x8dc   :  { %v1780_v39 = vmul.f32 %v4783_v38, %v4769_v14  ;;  %4432 = vmatmul.msk.f32.gmra.mxu0 %vm657_vm13, %v1779_v37  ;;  %v4785_v40 = vpop.eup %4784 }
 0x8dd   :  { %v1781_v41 = vmul.f32 %v4785_v40, %v4767_v12  ;;  %v2266_v40 = vld [vmem:[%s6496_s7 + $0x10] sm:$0xff] }
 0x8de   :  { %4434 = vmatmul.msk.f32.vlgmr.msra.gmra.mxu1 %vm657_vm13, %v1780_v39 }
 0x8df   :  { %2298 = vmatpush.msra.mxu1 %v2267_v35 }
 0x8e1   :  { %2299 = vmatpush.msra.mxu1 %v2266_v40 }
 0x8e6   :  { %4435 = vmatmul.msk.f32.gmra.mxu1 %vm657_vm13, %v1781_v41  ;;  %v2270_v41 = vld [vmem:[%s6496_s7 + $0x30] sm:$0xff] }
 0x8e7   :  { %2322 = vmatpush.msrb.mxu2 %v2270_v41 }
 0x94f   :  { %v1810_v45 = vpop.f32.mrf.mxu3 }
 0x950   :  { %v1906_v46 = vpop.f32.mrf.mxu2  ;;  %4443 = vmatmul.msk.f32.vlgmr.msrb.gmra.mxu3 %vm508_vm11, %v1810_v45  ;;  %v2265_v45 = vld [vmem:[%s6496_s7 + $0x8] sm:$0xff] }
 0x951   :  { %4449 = vmatmul.msk.f32.vlgmr.msra.gmra.mxu2 %vm508_vm11, %v1906_v46  ;;  %v1842_v47 = vpop.f32.mrf.mxu0  ;;  %2344 = vmatpush.msrb.mxu3 %v2275_v42  ;;  %v2269_v46 = vld [vmem:[%s6496_s7 + $0x28] sm:$0xff]  ;;  %v2388_v42 = vld [vmem:[%s6497_s8 + $0x50] sm:$0xff] }
 0x952   :  { %4445 = vmatmul.msk.f32.vlgmr.msra.gmra.mxu0 %vm508_vm11, %v1842_v47  ;;  %v2274_v47 = vld [vmem:[%s6496_s7 + $0x50] sm:$0xff]  ;;  %2300 = vmatpush.msra.mxu1 %v2265_v45 }
 0x953   :  { %2323 = vmatpush.msrb.mxu2 %v2269_v46  ;;  %2345 = vmatpush.msrb.mxu3 %v2274_v47  ;;  %v2387_v47 = vld [vmem:[%s6497_s8 + $0x48] sm:$0xff] }
 0x958   :  { %v1909_v48 = vpop.f32.mrf.mxu2 }
 0x959   :  { %v1813_v49 = vpop.f32.mrf.mxu3  ;;  %4450 = vmatmul.msk.f32.gmra.mxu2 %vm508_vm11, %v1909_v48  ;;  %v1845_v50 = vpop.f32.mrf.mxu0 }
 0x95a   :  { %4444 = vmatmul.msk.f32.gmra.mxu3 %vm508_vm11, %v1813_v49  ;;  %4446 = vmatmul.msk.f32.gmra.mxu0 %vm508_vm11, %v1845_v50  ;;  %v2264_v50 = vld [vmem:[%s6496_s7] sm:$0xff] }
 0x95b   :  { %v1874_v51 = vpop.f32.mrf.mxu1  ;;  %2301 = vmatpush.msra.mxu1 %v2264_v50 }
 0x95c   :  { %4447 = vmatmul.msk.f32.vlgmr.msrb.gmra.mxu1 %vm508_vm11, %v1874_v51  ;;  %v2268_v51 = vld [vmem:[%s6496_s7 + $0x20] sm:$0xff] }
 0x95d   :  { %2324 = vmatpush.msrb.mxu2 %v2268_v51  ;;  %v2386_v51 = vld [vmem:[%s6497_s8 + $0x40] sm:$0xff] }
 0x963   :  { %v1877_v52 = vpop.f32.mrf.mxu1 }
 0x964   :  { %4448 = vmatmul.msk.f32.gmra.mxu1 %vm508_vm11, %v1877_v52  ;;  %v2273_v52 = vld [vmem:[%s6496_s7 + $0x48] sm:$0xff] }
 0x965   :  { %2346 = vmatpush.msrb.mxu3 %v2273_v52 }
 0x9cf   :  { %v1969_v54 = vpop.f32.mrf.mxu0 }
 0x9d3   :  { %v1940_v53 = vpop.f32.mrf.mxu3 }
 0x9d4   :  { %v2033_v55 = vadd.f32 %v1969_v54, %v1940_v53  ;;  %v2027_v56 = vpop.f32.mrf.mxu2 }
 0x9d7   :  { %v1972_v62 = vpop.f32.mrf.mxu0 }
 0x9d9   :  { %v1998_v57 = vpop.f32.mrf.mxu1 }
 0x9da   :  { %v2035_v58 = vadd.f32 %v2033_v55, %v1998_v57  ;;  %v2272_v57 = vld [vmem:[%s6496_s7 + $0x40] sm:$0xff] }
 0x9db   :  { %2347 = vmatpush.msrb.mxu3 %v2272_v57 }
 0x9dc   :  { %v2037_v3 = vadd.f32 %v2035_v58, %v2027_v56  ;;  %v2030_v7 = vpop.f32.mrf.mxu2 }
 0x9dd   :  { %v1943_v60 = vpop.f32.mrf.mxu3 }
 0x9de   :  { %v2039_v61 = vadd.f32 %v2037_v3, %v5366_v18  ;;  %v2034_v0 = vadd.f32 %v1972_v62, %v1943_v60 }
 0x9e0   :  { %v5639_v63 = vadd.f32 %v4689_v59, %v2039_v61 }
 0x9e1   :  { %v2001_v1 = vpop.f32.mrf.mxu1 }
 0x9e2   :  { %v2036_v2 = vadd.f32 %v2034_v0, %v2001_v1  ;;  %v2052_v5 = vsel %vm107_vm3, %v5639_v63, 0.0  ;;  %v2060_v6 = vmul.f32 %v5639_v63, %v5639_v63 }
 0x9e3   :  { %2053 = vadd.xlane.f32.xlu2 %v2052_v5 }
 0x9e4   :  { %v2038_v10 = vadd.f32 %v2036_v2, %v2030_v7  ;;  %v2062_v11 = vsel %vm107_vm3, %v2060_v6, 0.0 }
 0x9e5   :  { %2063 = vadd.xlane.f32.xlu0 %v2062_v11 }
 0x9e6   :  { %v2040_v18 = vadd.f32 %v2038_v10, %v5374_v23  ;;  %v5664_v23 = vld [vmem:[%s6492_s18 + $0x18] sm:$0x1] }
 0x9e7   :  { %v2215_v8 = vmul.f32 %v5664_v23, %v5664_v23  ;;  %v2209_v22 = vsel %vm105_vm2, %v5664_v23, 0.0 }
 0x9e8   :  { %v5647_v12 = vadd.f32 %v4689_v59, %v2040_v18  ;;  %v2381_v18 = vld [vmem:[%s6497_s8 + $0x18] sm:$0xff] }
 0x9e9   :  { %v2219_v21 = vsel %vm105_vm2, %v2215_v8, 0.0  ;;  %2406 = vmatpush.msrb.mxu1 %v2381_v18  ;;  %v2487_v18 = vld [vmem:[%s6498_s9 + $0x8] sm:$0xff] }
 0x9ea   :  { %v2055_v14 = vsel %vm105_vm2, %v5647_v12, 0.0  ;;  %v2061_v9 = vmul.f32 %v5647_v12, %v5647_v12 }
 0x9eb   :  { %2056 = vadd.xlane.f32.xlu1 %v2055_v14  ;;  %v2385_v14 = vld [vmem:[%s6497_s8 + $0x38] sm:$0xff] }
 0x9ec   :  { %v2065_v17 = vsel %vm105_vm2, %v2061_v9, 0.0  ;;  %v4690_v9 = vld [vmem:[%s6501_s12 + $0x1] ss:$0 sm:$0xff]  ;;  %2429 = vmatpush.msra.mxu2 %v2385_v14  ;;  %v2491_v14 = vld [vmem:[%s6498_s9 + $0x28] sm:$0xff] }
 0x9ed   :  { %2207 = vadd.xlane.f32.xlu0 %v2206_v16  ;;  %2066 = vadd.xlane.f32.xlu2 %v2065_v17 }
 0x9f3   :  { %2217 = vadd.xlane.f32.xlu1 %v2216_v20  ;;  %v2380_v20 = vld [vmem:[%s6497_s8 + $0x10] sm:$0xff] }
 0x9f4   :  { %2407 = vmatpush.msrb.mxu1 %v2380_v20  ;;  %v2494_v20 = vld [vmem:[%s6498_s9 + $0x40] sm:$0xff] }
 0x9f5   :  { %2220 = vadd.xlane.f32.xlu0 %v2219_v21  ;;  %2210 = vadd.xlane.f32.xlu2 %v2209_v22  ;;  %v2384_v21 = vld [vmem:[%s6497_s8 + $0x30] sm:$0xff] }
 0x9f6   :  { %2430 = vmatpush.msra.mxu2 %v2384_v21  ;;  %2408 = vmatpush.msrb.mxu1 %v2379_v4  ;;  %v4468_v21 = vld [vmem:[%s6505_s16 + $0x78] sm:$0xff]  ;;  %v4465_v4 = vld [vmem:[%s6505_s16 + $0x60] sm:$0xff] }
 0x9f7   :  { %2179 = vmatpush.msrb.mxu0 %v4468_v21 }
 0x9f8   :  { %2431 = vmatpush.msra.mxu2 %v2383_v25  ;;  %v4464_v25 = vld [vmem:[%s6505_s16 + $0x58] sm:$0xff] }
 0xa56   :  { %v2054_v26 = vpop.xlane.xlu2 %2053 }
 0xa57   :  { %v5687_v15 = vmul.f32 %v2054_v26, %v5029_v29  ;;  %v4691_v26 = vld [vmem:[%s6502_s13 + $0x1] ss:$0 sm:$0xff] }
 0xa58   :  { %v2064_v28 = vpop.xlane.xlu0 %2063 }
 0xa59   :  { %v2070_v30 = vmul.f32 %v5687_v15, %v5687_v15  ;;  %v2068_v31 = vmul.f32 %v2064_v28, %v5029_v29  ;;  %v2074_v19 = vsub.f32 %v5639_v63, %v5687_v15  ;;  %v2378_v15 = vld [vmem:[%s6497_s8] sm:$0xff] }
 0xa5a   :  { %v2382_v28 = vld [vmem:[%s6497_s8 + $0x20] sm:$0xff]  ;;  %2409 = vmatpush.msrb.mxu1 %v2378_v15 }
 0xa5b   :  { %v2072_v32 = vsub.f32 %v2068_v31, %v2070_v30  ;;  %2432 = vmatpush.msra.mxu2 %v2382_v28  ;;  %v4461_v15 = vld [vmem:[%s6505_s16 + $0x40] sm:$0xff]  ;;  %v2279_v28 = vld [vmem:[%s6496_s7 + $0x78] sm:$0xff] }
 0xa5d   :  { %v5692_v33 = vadd.f32 1e-05, %v2072_v32 }
 0xa5e   :  { %v2057_v34 = vpop.xlane.xlu1 %2056 }
 0xa5f   :  { %4786 = vrsqrt.f32 %v5692_v33  ;;  %v5702_v37 = vmul.f32 %v2057_v34, %v5029_v29  ;;  %vm2084_vm5 = vweird.f32 %v5692_v33 }
 0xa60   :  { %v2208_v38 = vpop.xlane.xlu0 %2207  ;;  %v2067_v39 = vpop.xlane.xlu2 %2066 }
 0xa61   :  { %v2071_v43 = vmul.f32 %v5702_v37, %v5702_v37  ;;  %v2069_v44 = vmul.f32 %v2067_v39, %v5029_v29  ;;  %v5726_v48 = vmul.f32 %v2208_v38, %v5029_v29  ;;  %v2075_v41 = vsub.f32 %v5647_v12, %v5702_v37 }
 0xa63   :  { %v2073_v49 = vsub.f32 %v2069_v44, %v2071_v43  ;;  %v2224_v58 = vmul.f32 %v5726_v48, %v5726_v48 }
 0xa65   :  { %v4787_v53 = vpop.eup %4786  ;;  %v5737_v54 = vadd.f32 1e-05, %v2073_v49 }
 0xa66   :  { %v2079_v55 = vmul.f32 %v4787_v53, %v5692_v33  ;;  %v2218_v56 = vpop.xlane.xlu1 %2217  ;;  %vm2085_vm4 = vweird.f32 %v4787_v53 }
 0xa67   :  { %4788 = vrsqrt.f32 %v5737_v54  ;;  %v2222_v3 = vmul.f32 %v2218_v56, %v5029_v29  ;;  %vm2086_vm6 = vmor %vm2084_vm5, %vm2085_vm4  ;;  %vm2094_vm9 = vweird.f32 %v5737_v54 }
 0xa68   :  { %v2080_v59 = vmul.f32 %v4787_v53, %v2079_v55  ;;  %v2221_v60 = vpop.xlane.xlu0 %2220  ;;  %v2211_v61 = vpop.xlane.xlu2 %2210  ;;  %v4692_v55 = vld [vmem:[%s6494_s5] ss:$0 sm:$0xff] }
 0xa69   :  { %v2226_v62 = vsub.f32 %v2222_v3, %v2224_v58  ;;  %v5748_v0 = vmul.f32 %v2211_v61, %v5029_v29  ;;  %v2223_v5 = vmul.f32 %v2221_v60, %v5029_v29 }
 0xa6a   :  { %v2081_v1 = vmul.f32 0.5, %v2080_v59  ;;  %v4693_v59 = vld [vmem:[%s6495_s6] ss:$0 sm:$0xff] }
 0xa6b   :  { %v5750_v2 = vadd.f32 1e-05, %v2226_v62  ;;  %v2225_v6 = vmul.f32 %v5748_v0, %v5748_v0 }
 0xa6c   :  { %v2082_v7 = vsub.f32 1.5, %v2081_v1 }
 0xa6d   :  { %v4789_v10 = vpop.eup %4788  ;;  %4790 = vrsqrt.f32 %v5750_v2  ;;  %v2227_v11 = vsub.f32 %v2223_v5, %v2225_v6  ;;  %vm2238_vm0 = vweird.f32 %v5750_v2  ;;  %v2489_v5 = vld [vmem:[%s6498_s9 + $0x18] sm:$0xff] }
 0xa6e   :  { %v2083_v16 = vmul.f32 %v4787_v53, %v2082_v7  ;;  %v2089_v17 = vmul.f32 %v4789_v10, %v5737_v54  ;;  %vm2095_vm8 = vweird.f32 %v4789_v10  ;;  %v2228_v54 = vsub.f32 %v5652_v13, %v5726_v48  ;;  %v2493_v6 = vld [vmem:[%s6498_s9 + $0x38] sm:$0xff]  ;;  %v2492_v7 = vld [vmem:[%s6498_s9 + $0x30] sm:$0xff] }
 0xa6f   :  { %v5769_v8 = vadd.f32 1e-05, %v2227_v11  ;;  %vm2096_vm10 = vmor %vm2094_vm9, %vm2095_vm8  ;;  %v2229_v48 = vsub.f32 %v5664_v23, %v5748_v0  ;;  %v2488_v0 = vld [vmem:[%s6498_s9 + $0x10] sm:$0xff] }
 0xa70   :  { %v2087_v22 = vsel %vm2086_vm6, %v4787_v53, %v2083_v16  ;;  %v2090_v24 = vmul.f32 %v4789_v10, %v2089_v17  ;;  %v2486_v16 = vld [vmem:[%s6498_s9] sm:$0xff] }
 0xa71   :  { %v2098_v27 = vmul.f32 %v2087_v22, %v2074_v19  ;;  %4792 = vrsqrt.f32 %v5769_v8  ;;  %vm2248_vm5 = vweird.f32 %v5769_v8  ;;  %v2490_v17 = vld [vmem:[%s6498_s9 + $0x20] sm:$0xff]  ;;  %v4467_v22 = vld [vmem:[%s6505_s16 + $0x70] sm:$0xff] }
 0xa72   :  { %v2091_v30 = vmul.f32 0.5, %v2090_v24  ;;  %v4466_v24 = vld [vmem:[%s6505_s16 + $0x68] sm:$0xff]  ;;  %2180 = vmatpush.msrb.mxu0 %v4467_v22 }
 0xa73   :  { %v4791_v31 = vpop.eup %4790  ;;  %v2103_v32 = vmul.f32 %v4690_v9, %v2098_v27  ;;  %v4462_v27 = vld [vmem:[%s6505_s16 + $0x48] sm:$0xff] }
 0xa74   :  { %v2092_v33 = vsub.f32 1.5, %v2091_v30  ;;  %v2233_v34 = vmul.f32 %v4791_v31, %v5750_v2  ;;  %vm2239_vm15 = vweird.f32 %v4791_v31  ;;  %2181 = vmatpush.msrb.mxu0 %v4466_v24  ;;  %v2278_v30 = vld [vmem:[%s6496_s7 + $0x70] sm:$0xff] }
 0xa75   :  { %v2108_v35 = vadd.f32 %v4691_v26, %v2103_v32  ;;  %vm2240_vm1 = vmor %vm2238_vm0, %vm2239_vm15  ;;  %v2276_v32 = vld [vmem:[%s6496_s7 + $0x60] sm:$0xff] }
 0xa76   :  { %v2093_v38 = vmul.f32 %v4789_v10, %v2092_v33  ;;  %v2234_v39 = vmul.f32 %v4791_v31, %v2233_v34  ;;  %2182 = vmatpush.msrb.mxu0 %v4465_v4  ;;  %v4694_v33 = vld [vmem:[%s6503_s15 + $0x1] ss:$0 sm:$0xff] }
 0xa77   :  { %v4793_v40 = vpop.eup %4792  ;;  %4459 = vmatmul.msk.f32.vlgmr.msra.gmra.mxu3 %vm107_vm3, %v2108_v35 }
 0xa78   :  { %v2097_v43 = vsel %vm2096_vm10, %v4789_v10, %v2093_v38  ;;  %v2235_v44 = vmul.f32 0.5, %v2234_v39  ;;  %v2243_v45 = vmul.f32 %v4793_v40, %v5769_v8  ;;  %2452 = vmatpush.msra.mxu3 %v2389_v36  ;;  %vm2249_vm4 = vweird.f32 %v4793_v40  ;;  %v2497_v10 = vld [vmem:[%s6498_s9 + $0x58] sm:$0xff]  ;;  %v2495_v8 = vld [vmem:[%s6498_s9 + $0x48] sm:$0xff]  ;;  %2183 = vmatpush.msrb.mxu0 %v4464_v25  ;;  %v2392_v39 = vld [vmem:[%s6497_s8 + $0x70] sm:$0xff] }
 0xa79   :  { %v2099_v46 = vmul.f32 %v2097_v43, %v2075_v41  ;;  %vm2250_vm6 = vmor %vm2248_vm5, %vm2249_vm4  ;;  %v2393_v38 = vld [vmem:[%s6497_s8 + $0x78] sm:$0xff] }
 0xa7a   :  { %v2236_v49 = vsub.f32 1.5, %v2235_v44  ;;  %v2244_v37 = vmul.f32 %v4793_v40, %v2243_v45  ;;  %2453 = vmatpush.msra.mxu3 %v2388_v42  ;;  %v2390_v44 = vld [vmem:[%s6497_s8 + $0x60] sm:$0xff] }
 0xa7b   :  { %v2104_v50 = vmul.f32 %v4690_v9, %v2099_v46  ;;  %v2496_v9 = vld [vmem:[%s6498_s9 + $0x50] sm:$0xff] }
 0xa7c   :  { %v2237_v52 = vmul.f32 %v4791_v31, %v2236_v49  ;;  %v2245_v53 = vmul.f32 0.5, %v2244_v37  ;;  %2454 = vmatpush.msra.mxu3 %v2387_v47  ;;  %v2501_v37 = vld [vmem:[%s6498_s9 + $0x78] sm:$0xff] }
 0xa7d   :  { %v2109_v56 = vadd.f32 %v4691_v26, %v2104_v50  ;;  %v4463_v26 = vld [vmem:[%s6505_s16 + $0x50] sm:$0xff] }
 0xa7e   :  { %v2241_v57 = vsel %vm2240_vm1, %v4791_v31, %v2237_v52  ;;  %v2246_v58 = vsub.f32 1.5, %v2245_v53  ;;  %2455 = vmatpush.msra.mxu3 %v2386_v51  ;;  %2184 = vmatpush.msrb.mxu0 %v4463_v26  ;;  %v2277_v31 = vld [vmem:[%s6496_s7 + $0x68] sm:$0xff]  ;;  %v2500_v50 = vld [vmem:[%s6498_s9 + $0x70] sm:$0xff] }
 0xa7f   :  { %v2252_v3 = vmul.f32 %v2241_v57, %v2228_v54  ;;  %4460 = vmatmul.msk.f32.gmra.mxu3 %vm107_vm3, %v2109_v56  ;;  %v2499_v52 = vld [vmem:[%s6498_s9 + $0x68] sm:$0xff] }
 0xa80   :  { %v2247_v60 = vmul.f32 %v4793_v40, %v2246_v58  ;;  %2185 = vmatpush.msrb.mxu0 %v4462_v27 }
 0xa81   :  { %v2257_v61 = vmul.f32 %v4692_v55, %v2252_v3 }
 0xa82   :  { %v2251_v62 = vsel %vm2250_vm6, %v4793_v40, %v2247_v60  ;;  %2186 = vmatpush.msrb.mxu0 %v4461_v15  ;;  %v2391_v40 = vld [vmem:[%s6497_s8 + $0x68] sm:$0xff] }
 0xa83   :  { %v2253_v1 = vmul.f32 %v2251_v62, %v2229_v48  ;;  %v5824_v2 = vadd.f32 %v4693_v59, %v2257_v61 }
 0xa84   :  { %2367 = vmatpush.msra.mxu0 %v2279_v28 }
 0xa85   :  { %4476 = vmatmul.msk.f32.vlgmr.msra.gmra.mxu1 %vm107_vm3, %v5824_v2  ;;  %4478 = vmatmul.msk.f32.vlgmr.msrb.gmra.mxu2 %vm107_vm3, %v5824_v2  ;;  %v2258_v11 = vmul.f32 %v4692_v55, %v2253_v1  ;;  %v2498_v55 = vld [vmem:[%s6498_s9 + $0x60] sm:$0xff] }
 0xa86   :  { %2514 = vmatpush.msra.mxu1 %v2489_v5  ;;  %2537 = vmatpush.msrb.mxu2 %v2493_v6  ;;  %v4695_v6 = vld [vmem:[%s6506_s17 + $0x1] ss:$0 sm:$0xff] }
 0xa87   :  { %4480 = vmatmul.msk.f32.vlgmr.msrb.gmra.mxu3 %vm107_vm3, %v5824_v2  ;;  %v5862_v19 = vadd.f32 %v4693_v59, %v2258_v11  ;;  %2368 = vmatpush.msra.mxu0 %v2278_v30 }
 0xa88   :  { %2515 = vmatpush.msra.mxu1 %v2488_v0  ;;  %2538 = vmatpush.msrb.mxu2 %v2492_v7 }
 0xa89   :  { %2560 = vmatpush.msrb.mxu3 %v2497_v10  ;;  %2369 = vmatpush.msra.mxu0 %v2277_v31 }
 0xa8a   :  { %2516 = vmatpush.msra.mxu1 %v2487_v18  ;;  %2539 = vmatpush.msrb.mxu2 %v2491_v14 }
 0xa8b   :  { %2561 = vmatpush.msrb.mxu3 %v2496_v9  ;;  %2370 = vmatpush.msra.mxu0 %v2276_v32 }
 0xa8c   :  { %2517 = vmatpush.msra.mxu1 %v2486_v16  ;;  %2540 = vmatpush.msrb.mxu2 %v2490_v17 }
 0xa8d   :  { %4477 = vmatmul.msk.f32.gmra.mxu1 %vm107_vm3, %v5862_v19  ;;  %4479 = vmatmul.msk.f32.gmra.mxu2 %vm107_vm3, %v5862_v19 }
 0xa8e   :  { %2562 = vmatpush.msrb.mxu3 %v2495_v8 }
 0xa8f   :  { %4481 = vmatmul.msk.f32.gmra.mxu3 %vm107_vm3, %v5862_v19 }
 0xa90   :  { %2563 = vmatpush.msrb.mxu3 %v2494_v20 }
 0xa95   :  { %4484 = vmatmul.msk.f32.vlgmr.msrb.gmra.mxu1 %vm107_vm3, %v5824_v2  ;;  %4486 = vmatmul.msk.f32.vlgmr.msra.gmra.mxu2 %vm107_vm3, %v5824_v2 }
 0xa97   :  { %4488 = vmatmul.msk.f32.vlgmr.msra.gmra.mxu3 %vm107_vm3, %v5824_v2 }
 0xa9d   :  { %4485 = vmatmul.msk.f32.gmra.mxu1 %vm107_vm3, %v5862_v19  ;;  %4487 = vmatmul.msk.f32.gmra.mxu2 %vm107_vm3, %v5862_v19 }
 0xa9f   :  { %4489 = vmatmul.msk.f32.gmra.mxu3 %vm107_vm3, %v5862_v19 }
 0xaa5   :  { %4492 = vmatmul.msk.f32.vlgmr.msra.gmra.mxu1 %vm107_vm3, %v5824_v2  ;;  %4494 = vmatmul.msk.f32.vlgmr.msrb.gmra.mxu2 %vm107_vm3, %v5824_v2 }
 0xaa7   :  { %4496 = vmatmul.msk.f32.vlgmr.msrb.gmra.mxu3 %vm107_vm3, %v5824_v2 }
 0xaad   :  { %4493 = vmatmul.msk.f32.gmra.mxu1 %vm107_vm3, %v5862_v19  ;;  %4495 = vmatmul.msk.f32.gmra.mxu2 %vm107_vm3, %v5862_v19 }
 0xaaf   :  { %4497 = vmatmul.msk.f32.gmra.mxu3 %vm107_vm3, %v5862_v19 }
 0xafa   :  { %v2143_v34 = vpop.f32.mrf.mxu3 }
 0xafb   :  { %v2144_v35 = vadd.f32 %v4694_v33, %v2143_v34 }
 0xafd   :  { %v2149_v36 = vmax.f32 %v2144_v35, 0.0 }
 0xaff   :  { %4470 = vmatmul.msk.f32.vlgmr.msrb.gmra.mxu0 %vm1121_vm7, %v2149_v36 }
 0xb00   :  { %2475 = vmatpush.msrb.mxu0 %v2393_v38 }
 0xb02   :  { %v2146_v41 = vpop.f32.mrf.mxu3  ;;  %v2303_v42 = vpop.f32.mrf.mxu1  ;;  %2476 = vmatpush.msrb.mxu0 %v2392_v39 }
 0xb03   :  { %v2147_v43 = vadd.f32 %v4694_v33, %v2146_v41 }
 0xb04   :  { %2477 = vmatpush.msrb.mxu0 %v2391_v40 }
 0xb05   :  { %v2150_v45 = vmax.f32 %v2147_v43, 0.0 }
 0xb06   :  { %2478 = vmatpush.msrb.mxu0 %v2390_v44 }
 0xb07   :  { %4471 = vmatmul.msk.f32.gmra.mxu0 %vm1121_vm7, %v2150_v45 }
 0xb08   :  { %v2326_v46 = vpop.f32.mrf.mxu2 }
 0xb0a   :  { %v2306_v47 = vpop.f32.mrf.mxu1  ;;  %v2349_v49 = vpop.f32.mrf.mxu3 }
 0xb0f   :  { %4482 = vmatmul.msk.f32.vlgmr.msra.gmra.mxu0 %vm107_vm3, %v5824_v2 }
 0xb10   :  { %v2329_v51 = vpop.f32.mrf.mxu2  ;;  %2583 = vmatpush.msra.mxu0 %v2501_v37 }
 0xb12   :  { %v2352_v53 = vpop.f32.mrf.mxu3  ;;  %v2411_v54 = vpop.f32.mrf.mxu1  ;;  %2584 = vmatpush.msra.mxu0 %v2500_v50 }
 0xb14   :  { %2585 = vmatpush.msra.mxu0 %v2499_v52 }
 0xb16   :  { %2586 = vmatpush.msra.mxu0 %v2498_v55 }
 0xb17   :  { %4483 = vmatmul.msk.f32.gmra.mxu0 %vm107_vm3, %v5862_v19 }
 0xb18   :  { %v2434_v56 = vpop.f32.mrf.mxu2 }
 0xb1a   :  { %v2414_v57 = vpop.f32.mrf.mxu1  ;;  %v2457_v58 = vpop.f32.mrf.mxu3 }
 0xb1b   :  { %4500 = vmatpush.xpose.msk.msrb.mxu1 %vm508_vm11, %v2414_v57 }
 0xb1f   :  { %4490 = vmatmul.msk.f32.vlgmr.msrb.gmra.mxu0 %vm107_vm3, %v5824_v2  ;;  %4501 = vmatpush.xpose.msk.msrb.mxu1 %vm508_vm11, %v2411_v54 }
 0xb20   :  { %v2437_v3 = vpop.f32.mrf.mxu2 }
 0xb21   :  { %4504 = vmatpush.xpose.msk.msra.mxu2 %vm508_vm11, %v2437_v3 }
 0xb22   :  { %v2460_v59 = vpop.f32.mrf.mxu3  ;;  %v2519_v60 = vpop.f32.mrf.mxu1  ;;  %4502 = vmatmul.msk.f32.vlgmr.msrb.gmra.mxu1 %vm508_vm11, %v2303_v42 }
 0xb23   :  { %4508 = vmatpush.xpose.msk.msra.mxu3 %vm508_vm11, %v2460_v59 }
 0xb25   :  { %4505 = vmatpush.xpose.msk.msra.mxu2 %vm508_vm11, %v2434_v56 }
 0xb27   :  { %4491 = vmatmul.msk.f32.gmra.mxu0 %vm107_vm3, %v5862_v19  ;;  %4509 = vmatpush.xpose.msk.msra.mxu3 %vm508_vm11, %v2457_v58 }
 0xb28   :  { %v2542_v48 = vpop.f32.mrf.mxu2  ;;  %4506 = vmatmul.msk.f32.vlgmr.msra.gmra.mxu2 %vm508_vm11, %v2326_v46 }
 0xb2a   :  { %v2522_v61 = vpop.f32.mrf.mxu1  ;;  %v2565_v62 = vpop.f32.mrf.mxu3  ;;  %4503 = vmatmul.msk.f32.gmra.mxu1 %vm508_vm11, %v2306_v47  ;;  %4510 = vmatmul.msk.f32.vlgmr.msra.gmra.mxu3 %vm508_vm11, %v2349_v49 }
 0xb2b   :  { %4516 = vmatpush.msk.msra.mxu1 %vm753_vm12, %v2522_v61 }
 0xb2d   :  { %2854 = vmatpush.msra.mxu1 %v2519_v60 }
 0xb2f   :  { %4498 = vmatmul.msk.f32.vlgmr.msra.gmra.mxu0 %vm107_vm3, %v5824_v2 }
 0xb30   :  { %v2545_v1 = vpop.f32.mrf.mxu2  ;;  %4507 = vmatmul.msk.f32.gmra.mxu2 %vm508_vm11, %v2329_v51 }
 0xb31   :  { %4519 = vmatpush.msk.msrb.mxu2 %vm753_vm12, %v2545_v1 }
 0xb32   :  { %v2568_v5 = vpop.f32.mrf.mxu3  ;;  %4511 = vmatmul.msk.f32.gmra.mxu3 %vm508_vm11, %v2352_v53 }
 0xb33   :  { %2886 = vmatpush.msrb.mxu2 %v2542_v48  ;;  %4522 = vmatpush.msk.msrb.mxu3 %vm753_vm12, %v2568_v5 }
 0xb35   :  { %2918 = vmatpush.msrb.mxu3 %v2565_v62 }
 0xb37   :  { %4499 = vmatmul.msk.f32.gmra.mxu0 %vm107_vm3, %v5862_v19 }
 0xb7c   :  { %v2188_v2 = vpop.f32.mrf.mxu0 }
 0xb7d   :  { %v2189_v0 = vadd.f32 %v4695_v6, %v2188_v2 }
 0xb7f   :  { %v2194_v7 = vadd.f32 %v2189_v0, %v5639_v63 }
 0xb81   :  { %2196 = vst.msk [vmem:[%s6492_s18] sm:$0xff] %vm107_vm3, %v2194_v7 }
 0xb84   :  { %v2191_v10 = vpop.f32.mrf.mxu0 }
 0xb85   :  { %v2192_v11 = vadd.f32 %v4695_v6, %v2191_v10 }
 0xb87   :  { %v2195_v18 = vadd.f32 %v2192_v11, %v5647_v12 }
 0xb89   :  { %2197 = vst.msk [vmem:[%s6492_s18 + $0x8] sm:$0x1] %vm105_vm2, %v2195_v18 }
 0xb8c   :  { %v2372_v14 = vpop.f32.mrf.mxu0 }
 0xb94   :  { %v2375_v9 = vpop.f32.mrf.mxu0 }
 0xb9c   :  { %v2480_v16 = vpop.f32.mrf.mxu0 }
 0xb9f   :  { %v2623_v22 = vpop.f32.mrf.mxu1 }
 0xba0   :  { %v2734_v25 = vmul.f32 0.17677669, %v2623_v22 }
 0xba2   :  { %v2742_v32 = vsel %vm657_vm13, %v2734_v25, -inf }
 0xba4   :  { %v2483_v17 = vpop.f32.mrf.mxu0 }
 0xba5   :  { %4512 = vmatpush.xpose.msk.msrb.mxu0 %vm508_vm11, %v2483_v17 }
 0xba7   :  { %v2626_v33 = vpop.f32.mrf.mxu1 }
 0xba8   :  { %v2735_v34 = vmul.f32 0.17677669, %v2626_v33 }
 0xba9   :  { %4513 = vmatpush.xpose.msk.msrb.mxu0 %vm508_vm11, %v2480_v16 }
 0xbaa   :  { %v2745_v35 = vsel %vm661_vm14, %v2735_v34, -inf }
 0xbab   :  { %v2658_v63 = vpop.f32.mrf.mxu2 }
 0xbac   :  { %v2736_v19 = vmul.f32 0.17677669, %v2658_v63  ;;  %v2588_v8 = vpop.f32.mrf.mxu0  ;;  %4514 = vmatmul.msk.f32.vlgmr.msrb.gmra.mxu0 %vm508_vm11, %v2372_v14 }
 0xbad   :  { %v2693_v20 = vpop.f32.mrf.mxu3 }
 0xbae   :  { %v2738_v12 = vmul.f32 0.17677669, %v2693_v20  ;;  %v2748_v21 = vsel %vm657_vm13, %v2736_v19, -inf }
 0xbaf   :  { %2749 = vmax.xlane.f32.xlu1 %v2748_v21 }
 0xbb0   :  { %v2754_v24 = vsel %vm657_vm13, %v2738_v12, -inf }
 0xbb1   :  { %2755 = vmax.xlane.f32.xlu2 %v2754_v24 }
 0xbb3   :  { %v2661_v4 = vpop.f32.mrf.mxu2 }
 0xbb4   :  { %v2737_v26 = vmul.f32 0.17677669, %v2661_v4  ;;  %v2591_v27 = vpop.f32.mrf.mxu0  ;;  %4515 = vmatmul.msk.f32.gmra.mxu0 %vm508_vm11, %v2375_v9 }
 0xbb5   :  { %v2696_v15 = vpop.f32.mrf.mxu3  ;;  %4525 = vmatpush.msk.msra.mxu0 %vm753_vm12, %v2591_v27 }
 0xbb6   :  { %v2739_v28 = vmul.f32 0.17677669, %v2696_v15  ;;  %v2751_v30 = vsel %vm661_vm14, %v2737_v26, -inf }
 0xbb7   :  { %2950 = vmatpush.msra.mxu0 %v2588_v8  ;;  %2752 = vmax.xlane.f32.xlu0 %v2751_v30 }
 0xbb8   :  { %v2757_v31 = vsel %vm661_vm14, %v2739_v28, -inf }
 0xbb9   :  { %2758 = vmax.xlane.f32.xlu1 %v2757_v31  ;;  %2743 = vmax.xlane.f32.xlu2 %v2742_v32 }
 0xbc1   :  { %2746 = vmax.xlane.f32.xlu1 %v2745_v35 }
 0xc22   :  { %v2750_v36 = vpop.xlane.xlu1 %2749 }
 0xc23   :  { %v2768_v38 = vsub.f32 %v2736_v19, %v2750_v36 }
 0xc24   :  { %v2756_v39 = vpop.xlane.xlu2 %2755 }
 0xc25   :  { %v2770_v40 = vsub.f32 %v2738_v12, %v2756_v39  ;;  %v2778_v41 = vmul.f32 1.442695, %v2768_v38 }
 0xc27   :  { %v2782_v42 = vmul.f32 1.442695, %v2770_v40  ;;  %v2960_v40 = vld [vmem:[%s6499_s10 + $0x10] sm:$0xff] }
 0xc28   :  { %3041 = vmatpush.msra.mxu3 %v2960_v40  ;;  %v3195_v40 = vld [vmem:[%s6505_s16 + $0x20] sm:$0xff] }
 0xc29   :  { %4794 = vpow2.f32 %v2782_v42  ;;  %v2728_v43 = vpop.f32.mrf.mxu0  ;;  %v2959_v42 = vld [vmem:[%s6499_s10 + $0x8] sm:$0xff] }
 0xc2a   :  { %v2740_v44 = vmul.f32 0.17677669, %v2728_v43  ;;  %v2753_v45 = vpop.xlane.xlu0 %2752  ;;  %4796 = vpow2.f32 %v2778_v41  ;;  %v2958_v41 = vld [vmem:[%s6499_s10] sm:$0xff]  ;;  %3012 = vmatpush.msra.mxu2 %v2959_v42 }
 0xc2b   :  { %v2769_v46 = vsub.f32 %v2737_v26, %v2753_v45  ;;  %2983 = vmatpush.msrb.mxu1 %v2958_v41 }
 0xc2c   :  { %v2759_v47 = vpop.xlane.xlu1 %2758  ;;  %v2744_v49 = vpop.xlane.xlu2 %2743  ;;  %v2760_v37 = vsel %vm657_vm13, %v2740_v44, -inf }
 0xc2d   :  { %v2780_v50 = vmul.f32 1.442695, %v2769_v46  ;;  %v2771_v51 = vsub.f32 %v2739_v28, %v2759_v47  ;;  %v2766_v52 = vsub.f32 %v2734_v25, %v2744_v49  ;;  %2761 = vmax.xlane.f32.xlu0 %v2760_v37 }
 0xc2f   :  { %v4795_v53 = vpop.eup %4794  ;;  %v2784_v54 = vmul.f32 1.442695, %v2771_v51  ;;  %v2774_v55 = vmul.f32 1.442695, %v2766_v52  ;;  %4798 = vpow2.f32 %v2780_v50 }
 0xc30   :  { %v2802_v56 = vsel %vm657_vm13, %v4795_v53, 0.0  ;;  %v4797_v57 = vpop.eup %4796 }
 0xc31   :  { %v2731_v58 = vpop.f32.mrf.mxu0  ;;  %2803 = vadd.xlane.f32.xlu1 %v2802_v56  ;;  %4800 = vpow2.f32 %v2774_v55  ;;  %v2796_v60 = vsel %vm657_vm13, %v4797_v57, 0.0 }
 0xc32   :  { %v2741_v3 = vmul.f32 0.17677669, %v2731_v58  ;;  %4802 = vpow2.f32 %v2784_v54 }
 0xc34   :  { %v2747_v59 = vpop.xlane.xlu1 %2746  ;;  %v2763_v48 = vsel %vm661_vm14, %v2741_v3, -inf }
 0xc35   :  { %v2767_v61 = vsub.f32 %v2735_v34, %v2747_v59  ;;  %2797 = vadd.xlane.f32.xlu0 %v2796_v60  ;;  %2764 = vmax.xlane.f32.xlu2 %v2763_v48  ;;  %v4799_v62 = vpop.eup %4798 }
 0xc36   :  { %v2799_v7 = vsel %vm661_vm14, %v4799_v62, 0.0 }
 0xc37   :  { %v2776_v1 = vmul.f32 1.442695, %v2767_v61  ;;  %v4801_v5 = vpop.eup %4800 }
 0xc38   :  { %v4803_v6 = vpop.eup %4802  ;;  %v2790_v2 = vsel %vm657_vm13, %v4801_v5, 0.0 }
 0xc39   :  { %2791 = vadd.xlane.f32.xlu1 %v2790_v2  ;;  %4804 = vpow2.f32 %v2776_v1  ;;  %v2805_v0 = vsel %vm661_vm14, %v4803_v6, 0.0 }
 0xc3d   :  { %2806 = vadd.xlane.f32.xlu0 %v2805_v0  ;;  %2800 = vadd.xlane.f32.xlu2 %v2799_v7 }
 0xc3f   :  { %v4805_v10 = vpop.eup %4804 }
 0xc40   :  { %v2793_v11 = vsel %vm661_vm14, %v4805_v10, 0.0 }
 0xc45   :  { %2794 = vadd.xlane.f32.xlu0 %v2793_v11 }
 0xca0   :  { %v2762_v18 = vpop.xlane.xlu0 %2761 }
 0xca1   :  { %v2772_v14 = vsub.f32 %v2740_v44, %v2762_v18  ;;  %v2961_v44 = vld [vmem:[%s6499_s10 + $0x18] sm:$0xff] }
 0xca2   :  { %3070 = vmatpush.msrb.mxu0 %v2961_v44 }
 0xca3   :  { %v2786_v9 = vmul.f32 1.442695, %v2772_v14 }
 0xca4   :  { %v2804_v16 = vpop.xlane.xlu1 %2803 }
 0xca5   :  { %4806 = vpow2.f32 %v2786_v9 }
 0xca6   :  { %4808 = vrcp.f32 %v2804_v16 }
 0xca8   :  { %v2798_v17 = vpop.xlane.xlu0 %2797  ;;  %v2765_v63 = vpop.xlane.xlu2 %2764 }
 0xca9   :  { %4810 = vrcp.f32 %v2798_v17  ;;  %v2773_v19 = vsub.f32 %v2741_v3, %v2765_v63 }
 0xcab   :  { %v4807_v8 = vpop.eup %4806  ;;  %v2788_v20 = vmul.f32 1.442695, %v2773_v19 }
 0xcac   :  { %v4809_v12 = vpop.eup %4808  ;;  %v2808_v21 = vsel %vm657_vm13, %v4807_v8, 0.0  ;;  %v2792_v24 = vpop.xlane.xlu1 %2791 }
 0xcad   :  { %v2826_v22 = vmul.f32 %v4809_v12, %v4795_v53  ;;  %4812 = vpow2.f32 %v2788_v20  ;;  %2809 = vadd.xlane.f32.xlu2 %v2808_v21  ;;  %v3155_v12 = vld [vmem:[%s6504_s14 + $0x18] sm:$0xff]  ;;  %v3153_v21 = vld [vmem:[%s6504_s14 + $0x8] sm:$0xff] }
 0xcae   :  { %4814 = vrcp.f32 %v2792_v24  ;;  %v3152_v24 = vld [vmem:[%s6504_s14] sm:$0xff] }
 0xcaf   :  { %v4811_v4 = vpop.eup %4810  ;;  %4523 = vmatmul.msk.f32.vlgmr.msrb.gmra.mxu3 %vm657_vm13, %v2826_v22 }
 0xcb0   :  { %v2824_v25 = vmul.f32 %v4811_v4, %v4797_v57  ;;  %v2807_v26 = vpop.xlane.xlu0 %2806  ;;  %v2801_v27 = vpop.xlane.xlu2 %2800 }
 0xcb1   :  { %4816 = vrcp.f32 %v2807_v26 }
 0xcb2   :  { %4818 = vrcp.f32 %v2801_v27  ;;  %4520 = vmatmul.msk.f32.vlgmr.msrb.gmra.mxu2 %vm657_vm13, %v2824_v25 }
 0xcb3   :  { %v4813_v15 = vpop.eup %4812 }
 0xcb4   :  { %v4815_v28 = vpop.eup %4814  ;;  %v2811_v30 = vsel %vm661_vm14, %v4813_v15, 0.0 }
 0xcb5   :  { %v2822_v31 = vmul.f32 %v4815_v28, %v4801_v5  ;;  %2812 = vadd.xlane.f32.xlu1 %v2811_v30  ;;  %v4696_v5 = vld [vmem:[%s6500_s11] ss:$0 sm:$0xff] }
 0xcb7   :  { %v4817_v32 = vpop.eup %4816  ;;  %4517 = vmatmul.msk.f32.vlgmr.msra.gmra.mxu1 %vm657_vm13, %v2822_v31 }
 0xcb8   :  { %v4819_v33 = vpop.eup %4818  ;;  %v2795_v34 = vpop.xlane.xlu0 %2794  ;;  %v2827_v35 = vmul.f32 %v4817_v32, %v4803_v6  ;;  %3178 = vmatpush.msra.mxu1 %v3155_v12  ;;  %v3198_v32 = vld [vmem:[%s6505_s16 + $0x38] sm:$0xff] }
 0xcb9   :  { %4820 = vrcp.f32 %v2795_v34  ;;  %v2825_v36 = vmul.f32 %v4819_v33, %v4799_v62  ;;  %v3197_v33 = vld [vmem:[%s6505_s16 + $0x30] sm:$0xff]  ;;  %3217 = vmatpush.msrb.mxu2 %v3198_v32 }
 0xcba   :  { %4524 = vmatmul.msk.f32.gmra.mxu3 %vm657_vm13, %v2827_v35  ;;  %v4552_v32 = vld [vmem:[%s6496_s7 + $0xd0] sm:$0xff] }
 0xcbb   :  { %4521 = vmatmul.msk.f32.gmra.mxu2 %vm657_vm13, %v2825_v36 }
 0xcbc   :  { %3218 = vmatpush.msrb.mxu2 %v3197_v33  ;;  %v4556_v33 = vld [vmem:[%s6496_s7 + $0xf0] sm:$0xff] }
 0xcbf   :  { %v4821_v38 = vpop.eup %4820 }
 0xcc0   :  { %v2823_v39 = vmul.f32 %v4821_v38, %v4805_v10  ;;  %v3196_v38 = vld [vmem:[%s6505_s16 + $0x28] sm:$0xff] }
 0xcc1   :  { %3219 = vmatpush.msrb.mxu2 %v3196_v38  ;;  %v4555_v38 = vld [vmem:[%s6496_s7 + $0xe8] sm:$0xff] }
 0xcc2   :  { %4518 = vmatmul.msk.f32.gmra.mxu1 %vm657_vm13, %v2823_v39 }
 0xcc3   :  { %3220 = vmatpush.msrb.mxu2 %v3195_v40  ;;  %v4542_v40 = vld [vmem:[%s6496_s7 + $0x80] sm:$0xff] }
 0xd20   :  { %v2810_v43 = vpop.xlane.xlu2 %2809 }
 0xd21   :  { %4822 = vrcp.f32 %v2810_v43  ;;  %v3194_v43 = vld [vmem:[%s6505_s16 + $0x18] sm:$0xff] }
 0xd22   :  { %3221 = vmatpush.msrb.mxu2 %v3194_v43 }
 0xd27   :  { %v4823_v45 = vpop.eup %4822 }
 0xd28   :  { %v2828_v46 = vmul.f32 %v4823_v45, %v4807_v8  ;;  %v2813_v47 = vpop.xlane.xlu1 %2812 }
 0xd29   :  { %4824 = vrcp.f32 %v2813_v47 }
 0xd2a   :  { %4526 = vmatmul.msk.f32.vlgmr.msra.gmra.mxu0 %vm657_vm13, %v2828_v46 }
 0xd2f   :  { %v4825_v49 = vpop.eup %4824 }
 0xd30   :  { %v2829_v37 = vmul.f32 %v4825_v49, %v4813_v15 }
 0xd32   :  { %v2920_v50 = vpop.f32.mrf.mxu3  ;;  %4527 = vmatmul.msk.f32.gmra.mxu0 %vm657_vm13, %v2829_v37 }
 0xd33   :  { %4532 = vmatmul.msk.f32.vlgmr.msra.gmra.mxu3 %vm508_vm11, %v2920_v50 }
 0xd34   :  { %v2856_v51 = vpop.f32.mrf.mxu1 }
 0xd35   :  { %4528 = vmatmul.msk.f32.vlgmr.msrb.gmra.mxu1 %vm508_vm11, %v2856_v51  ;;  %v2888_v52 = vpop.f32.mrf.mxu2 }
 0xd36   :  { %4530 = vmatmul.msk.f32.vlgmr.msra.gmra.mxu2 %vm508_vm11, %v2888_v52  ;;  %v4697_v52 = vld [vmem:[%s6501_s12] ss:$0 sm:$0xff] }
 0xd3d   :  { %v2923_v53 = vpop.f32.mrf.mxu3 }
 0xd3e   :  { %v2891_v54 = vpop.f32.mrf.mxu2  ;;  %4533 = vmatmul.msk.f32.gmra.mxu3 %vm508_vm11, %v2923_v53 }
 0xd3f   :  { %4531 = vmatmul.msk.f32.gmra.mxu2 %vm508_vm11, %v2891_v54  ;;  %v2859_v55 = vpop.f32.mrf.mxu1 }
 0xd40   :  { %4529 = vmatmul.msk.f32.gmra.mxu1 %vm508_vm11, %v2859_v55  ;;  %v4698_v55 = vld [vmem:[%s6502_s13] ss:$0 sm:$0xff] }
 0xda7   :  { %v2952_v56 = vpop.f32.mrf.mxu0 }
 0xda8   :  { %4534 = vmatmul.msk.f32.vlgmr.msrb.gmra.mxu0 %vm508_vm11, %v2952_v56 }
 0xdaf   :  { %v2955_v57 = vpop.f32.mrf.mxu0 }
 0xdb0   :  { %4535 = vmatmul.msk.f32.gmra.mxu0 %vm508_vm11, %v2955_v57 }
 0xdb2   :  { %v2985_v3 = vpop.f32.mrf.mxu1 }
 0xdb6   :  { %v3043_v60 = vpop.f32.mrf.mxu3 }
 0xdb9   :  { %v3014_v58 = vpop.f32.mrf.mxu2 }
 0xdba   :  { %v3078_v59 = vadd.f32 %v3014_v58, %v2985_v3 }
 0xdbc   :  { %v3080_v48 = vadd.f32 %v3078_v59, %v3043_v60 }
 0xdbd   :  { %v2988_v6 = vpop.f32.mrf.mxu1 }
 0xdc1   :  { %v3046_v10 = vpop.f32.mrf.mxu3 }
 0xdc2   :  { %v3017_v61 = vpop.f32.mrf.mxu2 }
 0xdc3   :  { %v3079_v2 = vadd.f32 %v3017_v61, %v2988_v6  ;;  %v3193_v6 = vld [vmem:[%s6505_s16 + $0x10] sm:$0xff] }
 0xdc4   :  { %3222 = vmatpush.msrb.mxu2 %v3193_v6  ;;  %v4579_v6 = vld [vmem:[%s6497_s8 + $0xe8] sm:$0xff] }
 0xdc5   :  { %v3081_v11 = vadd.f32 %v3079_v2, %v3046_v10  ;;  %v3192_v2 = vld [vmem:[%s6505_s16 + $0x8] sm:$0xff]  ;;  %v4699_v10 = vld [vmem:[%s6503_s15] ss:$0 sm:$0xff] }
 0xdc6   :  { %3223 = vmatpush.msrb.mxu2 %v3192_v2  ;;  %v4566_v2 = vld [vmem:[%s6497_s8 + $0x80] sm:$0xff] }
 0xe25   :  { %v3072_v62 = vpop.f32.mrf.mxu0 }
 0xe26   :  { %v3082_v1 = vadd.f32 %v3080_v48, %v3072_v62 }
 0xe28   :  { %v3084_v0 = vadd.f32 %v5652_v13, %v3082_v1 }
 0xe2a   :  { %v6058_v7 = vadd.f32 %v4696_v5, %v3084_v0  ;;  %v3191_v0 = vld [vmem:[%s6505_s16] sm:$0xff] }
 0xe2b   :  { %3224 = vmatpush.msrb.mxu2 %v3191_v0  ;;  %v4570_v0 = vld [vmem:[%s6497_s8 + $0xa0] sm:$0xff] }
 0xe2c   :  { %v3094_v18 = vsel %vm107_vm3, %v6058_v7, 0.0  ;;  %v3102_v14 = vmul.f32 %v6058_v7, %v6058_v7 }
 0xe2d   :  { %3095 = vadd.xlane.f32.xlu2 %v3094_v18  ;;  %v3075_v9 = vpop.f32.mrf.mxu0 }
 0xe2e   :  { %v3083_v16 = vadd.f32 %v3081_v11, %v3075_v9  ;;  %v3104_v17 = vsel %vm107_vm3, %v3102_v14, 0.0 }
 0xe2f   :  { %3105 = vadd.xlane.f32.xlu0 %v3104_v17 }
 0xe30   :  { %v3085_v63 = vadd.f32 %v5664_v23, %v3083_v16  ;;  %v3154_v23 = vld [vmem:[%s6504_s14 + $0x10] sm:$0xff] }
 0xe31   :  { %3179 = vmatpush.msra.mxu1 %v3154_v23 }
 0xe32   :  { %v6066_v19 = vadd.f32 %v4696_v5, %v3085_v63  ;;  %v4700_v63 = vld [vmem:[%s6506_s17] ss:$0 sm:$0xff] }
 0xe33   :  { %3180 = vmatpush.msra.mxu1 %v3153_v21 }
 0xe34   :  { %v3097_v13 = vsel %vm105_vm2, %v6066_v19, 0.0  ;;  %v3103_v8 = vmul.f32 %v6066_v19, %v6066_v19 }
 0xe35   :  { %3098 = vadd.xlane.f32.xlu1 %v3097_v13  ;;  %3181 = vmatpush.msra.mxu1 %v3152_v24 }
 0xe36   :  { %v3107_v20 = vsel %vm105_vm2, %v3103_v8, 0.0 }
 0xe37   :  { %3108 = vadd.xlane.f32.xlu2 %v3107_v20 }
 0xea0   :  { %v3096_v22 = vpop.xlane.xlu2 %3095 }
 0xea1   :  { %v3100_v4 = vmul.f32 %v3096_v22, %v5029_v29 }
 0xea2   :  { %v3106_v25 = vpop.xlane.xlu0 %3105 }
 0xea3   :  { %v3112_v26 = vmul.f32 %v3100_v4, %v3100_v4  ;;  %v3110_v27 = vmul.f32 %v3106_v25, %v5029_v29  ;;  %v3116_v51 = vsub.f32 %v6058_v7, %v3100_v4 }
 0xea5   :  { %v3114_v15 = vsub.f32 %v3110_v27, %v3112_v26  ;;  %v4545_v27 = vld [vmem:[%s6496_s7 + $0x98] sm:$0xff] }
 0xea6   :  { %3328 = vmatpush.msrb.mxu3 %v4545_v27 }
 0xea7   :  { %v3118_v28 = vadd.f32 1e-05, %v3114_v15  ;;  %v4549_v15 = vld [vmem:[%s6496_s7 + $0xb8] sm:$0xff] }
 0xea8   :  { %v3099_v30 = vpop.xlane.xlu1 %3098  ;;  %3351 = vmatpush.msra.mxu0 %v4549_v15 }
 0xea9   :  { %4826 = vrsqrt.f32 %v3118_v28  ;;  %v3101_v31 = vmul.f32 %v3099_v30, %v5029_v29  ;;  %vm3126_vm9 = vweird.f32 %v3118_v28  ;;  %v4544_v30 = vld [vmem:[%s6496_s7 + $0x90] sm:$0xff] }
 0xeaa   :  { %v3109_v34 = vpop.xlane.xlu2 %3108  ;;  %3329 = vmatpush.msrb.mxu3 %v4544_v30  ;;  %v4593_v30 = vld [vmem:[%s6498_s9 + $0x98] sm:$0xff] }
 0xeab   :  { %v3113_v35 = vmul.f32 %v3101_v31, %v3101_v31  ;;  %v3111_v36 = vmul.f32 %v3109_v34, %v5029_v29  ;;  %v3117_v48 = vsub.f32 %v6066_v19, %v3101_v31  ;;  %v4548_v31 = vld [vmem:[%s6496_s7 + $0xb0] sm:$0xff]  ;;  %v4543_v34 = vld [vmem:[%s6496_s7 + $0x88] sm:$0xff] }
 0xeac   :  { %3352 = vmatpush.msra.mxu0 %v4548_v31  ;;  %3330 = vmatpush.msrb.mxu3 %v4543_v34  ;;  %v4597_v31 = vld [vmem:[%s6498_s9 + $0xb8] sm:$0xff] }
 0xead   :  { %v3115_v39 = vsub.f32 %v3111_v36, %v3113_v35  ;;  %v4547_v35 = vld [vmem:[%s6496_s7 + $0xa8] sm:$0xff]  ;;  %v4605_v34 = vld [vmem:[%s6498_s9 + $0xf8] sm:$0xff] }
 0xeae   :  { %v4551_v36 = vld [vmem:[%s6496_s7 + $0xc8] sm:$0xff]  ;;  %3353 = vmatpush.msra.mxu0 %v4547_v35  ;;  %3331 = vmatpush.msrb.mxu3 %v4542_v40  ;;  %v4600_v40 = vld [vmem:[%s6498_s9 + $0xd0] sm:$0xff] }
 0xeaf   :  { %v4827_v41 = vpop.eup %4826  ;;  %v3119_v42 = vadd.f32 1e-05, %v3115_v39 }
 0xeb0   :  { %v3121_v44 = vmul.f32 %v4827_v41, %v3118_v28  ;;  %vm3127_vm8 = vweird.f32 %v4827_v41  ;;  %v4557_v28 = vld [vmem:[%s6496_s7 + $0xf8] sm:$0xff] }
 0xeb1   :  { %4828 = vrsqrt.f32 %v3119_v42  ;;  %vm3128_vm10 = vmor %vm3126_vm9, %vm3127_vm8  ;;  %vm3136_vm0 = vweird.f32 %v3119_v42  ;;  %3397 = vmatpush.msra.mxu2 %v4557_v28 }
 0xeb2   :  { %v3122_v45 = vmul.f32 %v4827_v41, %v3121_v44  ;;  %v4554_v44 = vld [vmem:[%s6496_s7 + $0xe0] sm:$0xff] }
 0xeb3   :  { %3398 = vmatpush.msra.mxu2 %v4556_v33  ;;  %v4601_v33 = vld [vmem:[%s6498_s9 + $0xd8] sm:$0xff] }
 0xeb4   :  { %v3123_v46 = vmul.f32 0.5, %v3122_v45 }
 0xeb5   :  { %3399 = vmatpush.msra.mxu2 %v4555_v38  ;;  %v4596_v38 = vld [vmem:[%s6498_s9 + $0xb0] sm:$0xff] }
 0xeb6   :  { %v3124_v47 = vsub.f32 1.5, %v3123_v46 }
 0xeb7   :  { %v4829_v49 = vpop.eup %4828  ;;  %3400 = vmatpush.msra.mxu2 %v4554_v44 }
 0xeb8   :  { %v3125_v37 = vmul.f32 %v4827_v41, %v3124_v47  ;;  %v3131_v50 = vmul.f32 %v4829_v49, %v3119_v42  ;;  %vm3137_vm15 = vweird.f32 %v4829_v49  ;;  %v4550_v42 = vld [vmem:[%s6496_s7 + $0xc0] sm:$0xff] }
 0xeb9   :  { %vm3138_vm1 = vmor %vm3136_vm0, %vm3137_vm15 }
 0xeba   :  { %v3129_v53 = vsel %vm3128_vm10, %v4827_v41, %v3125_v37  ;;  %v3132_v54 = vmul.f32 %v4829_v49, %v3131_v50  ;;  %v4546_v41 = vld [vmem:[%s6496_s7 + $0xa0] sm:$0xff] }
 0xebb   :  { %v3140_v56 = vmul.f32 %v3129_v53, %v3116_v51  ;;  %3354 = vmatpush.msra.mxu0 %v4546_v41  ;;  %v4569_v53 = vld [vmem:[%s6497_s8 + $0x98] sm:$0xff]  ;;  %v4604_v41 = vld [vmem:[%s6498_s9 + $0xf0] sm:$0xff] }
 0xebc   :  { %v3133_v57 = vmul.f32 0.5, %v3132_v54  ;;  %v4573_v54 = vld [vmem:[%s6497_s8 + $0xb8] sm:$0xff]  ;;  %3436 = vmatpush.msra.mxu3 %v4569_v53 }
 0xebd   :  { %v3145_v58 = vmul.f32 %v4697_v52, %v3140_v56  ;;  %3459 = vmatpush.msrb.mxu0 %v4573_v54 }
 0xebe   :  { %v3134_v3 = vsub.f32 1.5, %v3133_v57 }
 0xebf   :  { %v3150_v59 = vadd.f32 %v4698_v55, %v3145_v58  ;;  %v4581_v58 = vld [vmem:[%s6497_s8 + $0xf8] sm:$0xff] }
 0xec0   :  { %v3135_v60 = vmul.f32 %v4829_v49, %v3134_v3  ;;  %v4568_v3 = vld [vmem:[%s6497_s8 + $0x90] sm:$0xff] }
 0xec1   :  { %4536 = vmatmul.msk.f32.vlgmr.msra.gmra.mxu1 %vm107_vm3, %v3150_v59  ;;  %v4572_v59 = vld [vmem:[%s6497_s8 + $0xb0] sm:$0xff]  ;;  %3437 = vmatpush.msra.mxu3 %v4568_v3 }
 0xec2   :  { %v3139_v61 = vsel %vm3138_vm1, %v4829_v49, %v3135_v60  ;;  %v4576_v60 = vld [vmem:[%s6497_s8 + $0xd0] sm:$0xff]  ;;  %3460 = vmatpush.msrb.mxu0 %v4572_v59 }
 0xec3   :  { %v3141_v62 = vmul.f32 %v3139_v61, %v3117_v48  ;;  %v4580_v48 = vld [vmem:[%s6497_s8 + $0xf0] sm:$0xff]  ;;  %v4567_v61 = vld [vmem:[%s6497_s8 + $0x88] sm:$0xff] }
 0xec4   :  { %3438 = vmatpush.msra.mxu3 %v4567_v61 }
 0xec5   :  { %v3146_v1 = vmul.f32 %v4697_v52, %v3141_v62 }
 0xec6   :  { %3439 = vmatpush.msra.mxu3 %v4566_v2 }
 0xec7   :  { %v3151_v5 = vadd.f32 %v4698_v55, %v3146_v1  ;;  %v4577_v55 = vld [vmem:[%s6497_s8 + $0xd8] sm:$0xff]  ;;  %v4571_v1 = vld [vmem:[%s6497_s8 + $0xa8] sm:$0xff] }
 0xec8   :  { %3461 = vmatpush.msrb.mxu0 %v4571_v1 }
 0xec9   :  { %4537 = vmatmul.msk.f32.gmra.mxu1 %vm107_vm3, %v3151_v5  ;;  %v4575_v5 = vld [vmem:[%s6497_s8 + $0xc8] sm:$0xff] }
 0xeca   :  { %3462 = vmatpush.msrb.mxu0 %v4570_v0 }
 0xf3e   :  { %v3183_v11 = vpop.f32.mrf.mxu1 }
 0xf3f   :  { %v3184_v18 = vadd.f32 %v4699_v10, %v3183_v11 }
 0xf41   :  { %v3189_v14 = vmax.f32 %v3184_v18, 0.0  ;;  %v4574_v18 = vld [vmem:[%s6497_s8 + $0xc0] sm:$0xff] }
 0xf43   :  { %4538 = vmatmul.msk.f32.vlgmr.msrb.gmra.mxu2 %vm1121_vm7, %v3189_v14  ;;  %v4578_v14 = vld [vmem:[%s6497_s8 + $0xe0] sm:$0xff] }
 0xf44   :  { %3505 = vmatpush.msrb.mxu2 %v4581_v58 }
 0xf46   :  { %v3186_v9 = vpop.f32.mrf.mxu1  ;;  %3506 = vmatpush.msrb.mxu2 %v4580_v48 }
 0xf47   :  { %v3187_v16 = vadd.f32 %v4699_v10, %v3186_v9 }
 0xf48   :  { %3507 = vmatpush.msrb.mxu2 %v4579_v6 }
 0xf49   :  { %v3190_v17 = vmax.f32 %v3187_v16, 0.0 }
 0xf4a   :  { %3508 = vmatpush.msrb.mxu2 %v4578_v14 }
 0xf4b   :  { %4539 = vmatmul.msk.f32.gmra.mxu2 %vm1121_vm7, %v3190_v17 }
 0xfc6   :  { %v3226_v13 = vpop.f32.mrf.mxu2 }
 0xfc7   :  { %v3227_v8 = vadd.f32 %v4700_v63, %v3226_v13 }
 0xfc9   :  { %v6132_v20 = vadd.f32 %v3227_v8, %v6058_v7 }
 0xfcb   :  { %v3236_v12 = vsel %vm107_vm3, %v6132_v20, 0.0  ;;  %v3244_v23 = vmul.f32 %v6132_v20, %v6132_v20 }
 0xfcc   :  { %3237 = vadd.xlane.f32.xlu0 %v3236_v12 }
 0xfcd   :  { %v3246_v21 = vsel %vm107_vm3, %v3244_v23, 0.0 }
 0xfce   :  { %3247 = vadd.xlane.f32.xlu1 %v3246_v21  ;;  %v3229_v22 = vpop.f32.mrf.mxu2  ;;  %v4701_v21 = vld [vmem:[%s6494_s5 + $0x1] ss:$0 sm:$0xff] }
 0xfcf   :  { %v3230_v24 = vadd.f32 %v4700_v63, %v3229_v22 }
 0xfd1   :  { %v6140_v4 = vadd.f32 %v3230_v24, %v6066_v19  ;;  %v4553_v19 = vld [vmem:[%s6496_s7 + $0xd8] sm:$0xff] }
 0xfd2   :  { %3374 = vmatpush.msrb.mxu1 %v4553_v19 }
 0xfd3   :  { %v3239_v25 = vsel %vm105_vm2, %v6140_v4, 0.0  ;;  %v3245_v7 = vmul.f32 %v6140_v4, %v6140_v4 }
 0xfd4   :  { %3240 = vadd.xlane.f32.xlu2 %v3239_v25  ;;  %3375 = vmatpush.msrb.mxu1 %v4552_v32  ;;  %v4702_v25 = vld [vmem:[%s6495_s6 + $0x1] ss:$0 sm:$0xff] }
 0xfd5   :  { %v3249_v26 = vsel %vm105_vm2, %v3245_v7, 0.0 }
 0xfd6   :  { %3250 = vadd.xlane.f32.xlu0 %v3249_v26  ;;  %3376 = vmatpush.msrb.mxu1 %v4551_v36  ;;  %v4592_v36 = vld [vmem:[%s6498_s9 + $0x90] sm:$0xff] }
 0xfd8   :  { %3377 = vmatpush.msrb.mxu1 %v4550_v42  ;;  %v4591_v42 = vld [vmem:[%s6498_s9 + $0x88] sm:$0xff] }
 0xfda   :  { %3482 = vmatpush.msra.mxu1 %v4577_v55 }
 0xfdc   :  { %3483 = vmatpush.msra.mxu1 %v4576_v60 }
 0xfde   :  { %3484 = vmatpush.msra.mxu1 %v4575_v5 }
 0xfe0   :  { %3485 = vmatpush.msra.mxu1 %v4574_v18 }
0x103f   :  { %v3238_v39 = vpop.xlane.xlu0 %3237 }
0x1040   :  { %v6193_v43 = vmul.f32 %v3238_v39, %v5029_v29 }
0x1041   :  { %v3248_v45 = vpop.xlane.xlu1 %3247 }
0x1042   :  { %v3254_v46 = vmul.f32 %v6193_v43, %v6193_v43  ;;  %v3252_v47 = vmul.f32 %v3248_v45, %v5029_v29  ;;  %v3258_v23 = vsub.f32 %v6132_v20, %v6193_v43  ;;  %v4595_v43 = vld [vmem:[%s6498_s9 + $0xa8] sm:$0xff] }
0x1043   :  { %v4599_v45 = vld [vmem:[%s6498_s9 + $0xc8] sm:$0xff] }
0x1044   :  { %v3256_v49 = vsub.f32 %v3252_v47, %v3254_v46  ;;  %v4603_v46 = vld [vmem:[%s6498_s9 + $0xe8] sm:$0xff] }
0x1046   :  { %v3260_v37 = vadd.f32 1e-05, %v3256_v49  ;;  %v4590_v49 = vld [vmem:[%s6498_s9 + $0x80] sm:$0xff] }
0x1047   :  { %v3241_v50 = vpop.xlane.xlu2 %3240 }
0x1048   :  { %4830 = vrsqrt.f32 %v3260_v37  ;;  %v6202_v51 = vmul.f32 %v3241_v50, %v5029_v29  ;;  %vm3268_vm5 = vweird.f32 %v3260_v37  ;;  %v4598_v50 = vld [vmem:[%s6498_s9 + $0xc0] sm:$0xff] }
0x1049   :  { %v3251_v52 = vpop.xlane.xlu0 %3250 }
0x104a   :  { %v3255_v56 = vmul.f32 %v6202_v51, %v6202_v51  ;;  %v3253_v57 = vmul.f32 %v3251_v52, %v5029_v29  ;;  %v3259_v32 = vsub.f32 %v6140_v4, %v6202_v51  ;;  %v4602_v51 = vld [vmem:[%s6498_s9 + $0xe0] sm:$0xff] }
0x104c   :  { %v3257_v62 = vsub.f32 %v3253_v57, %v3255_v56 }
0x104e   :  { %v4831_v10 = vpop.eup %4830  ;;  %v3261_v11 = vadd.f32 1e-05, %v3257_v62 }
0x104f   :  { %v3263_v9 = vmul.f32 %v4831_v10, %v3260_v37  ;;  %vm3269_vm4 = vweird.f32 %v4831_v10  ;;  %v4594_v37 = vld [vmem:[%s6498_s9 + $0xa0] sm:$0xff] }
0x1050   :  { %4832 = vrsqrt.f32 %v3261_v11  ;;  %vm3270_vm6 = vmor %vm3268_vm5, %vm3269_vm4  ;;  %vm3278_vm9 = vweird.f32 %v3261_v11 }
0x1051   :  { %v3264_v16 = vmul.f32 %v4831_v10, %v3263_v9 }
0x1053   :  { %v3265_v17 = vmul.f32 0.5, %v3264_v16 }
0x1055   :  { %v3266_v63 = vsub.f32 1.5, %v3265_v17 }
0x1056   :  { %v4833_v13 = vpop.eup %4832 }
0x1057   :  { %v3267_v8 = vmul.f32 %v4831_v10, %v3266_v63  ;;  %v3273_v12 = vmul.f32 %v4833_v13, %v3261_v11  ;;  %vm3279_vm8 = vweird.f32 %v4833_v13 }
0x1058   :  { %vm3280_vm10 = vmor %vm3278_vm9, %vm3279_vm8 }
0x1059   :  { %v3271_v22 = vsel %vm3270_vm6, %v4831_v10, %v3267_v8  ;;  %v3274_v24 = vmul.f32 %v4833_v13, %v3273_v12 }
0x105a   :  { %v3282_v7 = vmul.f32 %v3271_v22, %v3258_v23 }
0x105b   :  { %v3275_v26 = vmul.f32 0.5, %v3274_v24 }
0x105c   :  { %v3287_v27 = vmul.f32 %v4701_v21, %v3282_v7 }
0x105d   :  { %v3276_v15 = vsub.f32 1.5, %v3275_v26 }
0x105e   :  { %v3292_v19 = vadd.f32 %v4702_v25, %v3287_v27 }
0x105f   :  { %v3277_v28 = vmul.f32 %v4833_v13, %v3276_v15 }
0x1060   :  { %4558 = vmatmul.msk.f32.vlgmr.msrb.gmra.mxu3 %vm107_vm3, %v3292_v19  ;;  %4560 = vmatmul.msk.f32.vlgmr.msra.gmra.mxu0 %vm107_vm3, %v3292_v19 }
0x1061   :  { %v3281_v35 = vsel %vm3280_vm10, %v4833_v13, %v3277_v28  ;;  %4562 = vmatmul.msk.f32.vlgmr.msrb.gmra.mxu1 %vm107_vm3, %v3292_v19  ;;  %4564 = vmatmul.msk.f32.vlgmr.msra.gmra.mxu2 %vm107_vm3, %v3292_v19 }
0x1062   :  { %v3283_v39 = vmul.f32 %v3281_v35, %v3259_v32  ;;  %3544 = vmatpush.msrb.mxu3 %v4593_v30  ;;  %3567 = vmatpush.msra.mxu0 %v4597_v31 }
0x1063   :  { %3590 = vmatpush.msrb.mxu1 %v4601_v33  ;;  %3613 = vmatpush.msra.mxu2 %v4605_v34 }
0x1064   :  { %v3288_v44 = vmul.f32 %v4701_v21, %v3283_v39  ;;  %3545 = vmatpush.msrb.mxu3 %v4592_v36  ;;  %3568 = vmatpush.msra.mxu0 %v4596_v38 }
0x1065   :  { %3591 = vmatpush.msrb.mxu1 %v4600_v40  ;;  %3614 = vmatpush.msra.mxu2 %v4604_v41 }
0x1066   :  { %v3293_v47 = vadd.f32 %v4702_v25, %v3288_v44  ;;  %3546 = vmatpush.msrb.mxu3 %v4591_v42  ;;  %3569 = vmatpush.msra.mxu0 %v4595_v43 }
0x1067   :  { %3592 = vmatpush.msrb.mxu1 %v4599_v45  ;;  %3615 = vmatpush.msra.mxu2 %v4603_v46 }
0x1068   :  { %4559 = vmatmul.msk.f32.gmra.mxu3 %vm107_vm3, %v3293_v47  ;;  %4561 = vmatmul.msk.f32.gmra.mxu0 %vm107_vm3, %v3293_v47 }
0x1069   :  { %4563 = vmatmul.msk.f32.gmra.mxu1 %vm107_vm3, %v3293_v47  ;;  %4565 = vmatmul.msk.f32.gmra.mxu2 %vm107_vm3, %v3293_v47 }
0x106a   :  { %3547 = vmatpush.msrb.mxu3 %v4590_v49  ;;  %3570 = vmatpush.msra.mxu0 %v4594_v37 }
0x106b   :  { %3593 = vmatpush.msrb.mxu1 %v4598_v50  ;;  %3616 = vmatpush.msra.mxu2 %v4602_v51 }
0x1070   :  { %4582 = vmatmul.msk.f32.vlgmr.msra.gmra.mxu3 %vm107_vm3, %v3292_v19  ;;  %4584 = vmatmul.msk.f32.vlgmr.msrb.gmra.mxu0 %vm107_vm3, %v3292_v19 }
0x1071   :  { %4586 = vmatmul.msk.f32.vlgmr.msra.gmra.mxu1 %vm107_vm3, %v3292_v19  ;;  %4588 = vmatmul.msk.f32.vlgmr.msrb.gmra.mxu2 %vm107_vm3, %v3292_v19 }
0x1078   :  { %4583 = vmatmul.msk.f32.gmra.mxu3 %vm107_vm3, %v3293_v47  ;;  %4585 = vmatmul.msk.f32.gmra.mxu0 %vm107_vm3, %v3293_v47 }
0x1079   :  { %4587 = vmatmul.msk.f32.gmra.mxu1 %vm107_vm3, %v3293_v47  ;;  %4589 = vmatmul.msk.f32.gmra.mxu2 %vm107_vm3, %v3293_v47 }
0x1080   :  { %4606 = vmatmul.msk.f32.vlgmr.msrb.gmra.mxu3 %vm107_vm3, %v3292_v19  ;;  %4608 = vmatmul.msk.f32.vlgmr.msra.gmra.mxu0 %vm107_vm3, %v3292_v19 }
0x1081   :  { %4610 = vmatmul.msk.f32.vlgmr.msrb.gmra.mxu1 %vm107_vm3, %v3292_v19  ;;  %4612 = vmatmul.msk.f32.vlgmr.msra.gmra.mxu2 %vm107_vm3, %v3292_v19 }
0x1088   :  { %4607 = vmatmul.msk.f32.gmra.mxu3 %vm107_vm3, %v3293_v47  ;;  %4609 = vmatmul.msk.f32.gmra.mxu0 %vm107_vm3, %v3293_v47 }
0x1089   :  { %4611 = vmatmul.msk.f32.gmra.mxu1 %vm107_vm3, %v3293_v47  ;;  %4613 = vmatmul.msk.f32.gmra.mxu2 %vm107_vm3, %v3293_v47 }
0x10dd   :  { %v3356_v52 = vpop.f32.mrf.mxu0 }
0x10de   :  { %v3379_v53 = vpop.f32.mrf.mxu1 }
0x10e3   :  { %v3333_v54 = vpop.f32.mrf.mxu3 }
0x10e4   :  { %v3402_v55 = vpop.f32.mrf.mxu2 }
0x10e5   :  { %v3359_v56 = vpop.f32.mrf.mxu0 }
0x10e6   :  { %v3382_v57 = vpop.f32.mrf.mxu1 }
0x10eb   :  { %v3336_v58 = vpop.f32.mrf.mxu3 }
0x10ec   :  { %v3405_v3 = vpop.f32.mrf.mxu2 }
0x10ed   :  { %v3464_v59 = vpop.f32.mrf.mxu0 }
0x10ee   :  { %v3487_v60 = vpop.f32.mrf.mxu1 }
0x10f3   :  { %v3441_v48 = vpop.f32.mrf.mxu3 }
0x10f4   :  { %v3510_v61 = vpop.f32.mrf.mxu2 }
0x10f5   :  { %v3467_v62 = vpop.f32.mrf.mxu0 }
0x10f6   :  { %v3490_v1 = vpop.f32.mrf.mxu1  ;;  %4618 = vmatpush.xpose.msk.msrb.mxu0 %vm508_vm11, %v3467_v62 }
0x10f7   :  { %4622 = vmatpush.xpose.msk.msra.mxu1 %vm508_vm11, %v3490_v1 }
0x10fa   :  { %4619 = vmatpush.xpose.msk.msrb.mxu0 %vm508_vm11, %v3464_v59 }
0x10fb   :  { %4623 = vmatpush.xpose.msk.msra.mxu1 %vm508_vm11, %v3487_v60  ;;  %v3444_v5 = vpop.f32.mrf.mxu3 }
0x10fc   :  { %v3513_v6 = vpop.f32.mrf.mxu2  ;;  %4614 = vmatpush.xpose.msk.msra.mxu3 %vm508_vm11, %v3444_v5 }
0x10fd   :  { %4626 = vmatpush.xpose.msk.msrb.mxu2 %vm508_vm11, %v3513_v6  ;;  %v3572_v2 = vpop.f32.mrf.mxu0  ;;  %4620 = vmatmul.msk.f32.vlgmr.msrb.gmra.mxu0 %vm508_vm11, %v3356_v52 }
0x10fe   :  { %v3595_v0 = vpop.f32.mrf.mxu1  ;;  %4624 = vmatmul.msk.f32.vlgmr.msra.gmra.mxu1 %vm508_vm11, %v3379_v53 }
0x1100   :  { %4615 = vmatpush.xpose.msk.msra.mxu3 %vm508_vm11, %v3441_v48 }
0x1101   :  { %4627 = vmatpush.xpose.msk.msrb.mxu2 %vm508_vm11, %v3510_v61 }
0x1103   :  { %v3549_v10 = vpop.f32.mrf.mxu3  ;;  %4616 = vmatmul.msk.f32.vlgmr.msra.gmra.mxu3 %vm508_vm11, %v3333_v54 }
0x1104   :  { %v3618_v11 = vpop.f32.mrf.mxu2  ;;  %4628 = vmatmul.msk.f32.vlgmr.msrb.gmra.mxu2 %vm508_vm11, %v3402_v55 }
0x1105   :  { %v3575_v18 = vpop.f32.mrf.mxu0  ;;  %4621 = vmatmul.msk.f32.gmra.mxu0 %vm508_vm11, %v3359_v56 }
0x1106   :  { %v3598_v14 = vpop.f32.mrf.mxu1  ;;  %4625 = vmatmul.msk.f32.gmra.mxu1 %vm508_vm11, %v3382_v57  ;;  %4633 = vmatpush.msk.msra.mxu0 %vm753_vm12, %v3575_v18 }
0x1107   :  { %4636 = vmatpush.msk.msrb.mxu1 %vm753_vm12, %v3598_v14 }
0x1108   :  { %3916 = vmatpush.msra.mxu0 %v3572_v2 }
0x1109   :  { %3948 = vmatpush.msrb.mxu1 %v3595_v0 }
0x110b   :  { %v3552_v9 = vpop.f32.mrf.mxu3  ;;  %4617 = vmatmul.msk.f32.gmra.mxu3 %vm508_vm11, %v3336_v58 }
0x110c   :  { %v3621_v16 = vpop.f32.mrf.mxu2  ;;  %4629 = vmatmul.msk.f32.gmra.mxu2 %vm508_vm11, %v3405_v3  ;;  %4630 = vmatpush.msk.msrb.mxu3 %vm753_vm12, %v3552_v9 }
0x110d   :  { %4639 = vmatpush.msk.msra.mxu2 %vm753_vm12, %v3621_v16 }
0x110e   :  { %3884 = vmatpush.msrb.mxu3 %v3549_v10 }
0x110f   :  { %3980 = vmatpush.msra.mxu2 %v3618_v11 }
0x117a   :  { %v3688_v8 = vpop.f32.mrf.mxu0 }
0x117b   :  { %v3723_v23 = vpop.f32.mrf.mxu1  ;;  %v3766_v24 = vmul.f32 0.17677669, %v3688_v8 }
0x117c   :  { %v3768_v32 = vmul.f32 0.17677669, %v3723_v23  ;;  %v4642_v23 = vld [vmem:[%s6499_s10 + $0x20] sm:$0xff] }
0x117d   :  { %v3778_v15 = vsel %vm657_vm13, %v3766_v24, -inf  ;;  %4013 = vmatpush.msra.mxu3 %v4642_v23 }
0x117e   :  { %v3784_v36 = vsel %vm657_vm13, %v3768_v32, -inf }
0x1182   :  { %v3691_v28 = vpop.f32.mrf.mxu0 }
0x1183   :  { %v3726_v31 = vpop.f32.mrf.mxu1  ;;  %v3767_v33 = vmul.f32 0.17677669, %v3691_v28 }
0x1184   :  { %v3769_v34 = vmul.f32 0.17677669, %v3726_v31 }
0x1185   :  { %v3781_v35 = vsel %vm661_vm14, %v3767_v33, -inf }
0x1186   :  { %v3653_v17 = vpop.f32.mrf.mxu3  ;;  %v3787_v38 = vsel %vm661_vm14, %v3769_v34, -inf }
0x1187   :  { %v3764_v63 = vmul.f32 0.17677669, %v3653_v17  ;;  %v3758_v13 = vpop.f32.mrf.mxu2 }
0x1188   :  { %v3770_v12 = vmul.f32 0.17677669, %v3758_v13 }
0x1189   :  { %v3772_v21 = vsel %vm657_vm13, %v3764_v63, -inf }
0x118a   :  { %v3790_v22 = vsel %vm657_vm13, %v3770_v12, -inf  ;;  %3773 = vmax.xlane.f32.xlu1 %v3772_v21 }
0x118b   :  { %3791 = vmax.xlane.f32.xlu2 %v3790_v22 }
0x118e   :  { %v3656_v25 = vpop.f32.mrf.mxu3 }
0x118f   :  { %v3765_v7 = vmul.f32 0.17677669, %v3656_v25  ;;  %v3761_v26 = vpop.f32.mrf.mxu2 }
0x1190   :  { %v3771_v27 = vmul.f32 0.17677669, %v3761_v26 }
0x1191   :  { %v3775_v19 = vsel %vm661_vm14, %v3765_v7, -inf }
0x1192   :  { %v3793_v30 = vsel %vm661_vm14, %v3771_v27, -inf  ;;  %3779 = vmax.xlane.f32.xlu1 %v3778_v15  ;;  %3776 = vmax.xlane.f32.xlu0 %v3775_v19 }
0x1193   :  { %3794 = vmax.xlane.f32.xlu2 %v3793_v30 }
0x119a   :  { %3782 = vmax.xlane.f32.xlu1 %v3781_v35  ;;  %3785 = vmax.xlane.f32.xlu0 %v3784_v36 }
0x119b   :  { %3788 = vmax.xlane.f32.xlu2 %v3787_v38 }
0x11fd   :  { %v3774_v39 = vpop.xlane.xlu1 %3773 }
0x11fe   :  { %v3792_v40 = vpop.xlane.xlu2 %3791  ;;  %v3796_v41 = vsub.f32 %v3764_v63, %v3774_v39 }
0x11ff   :  { %v3802_v42 = vsub.f32 %v3770_v12, %v3792_v40 }
0x1200   :  { %v3804_v43 = vmul.f32 1.442695, %v3796_v41 }
0x1201   :  { %v3816_v44 = vmul.f32 1.442695, %v3802_v42 }
0x1202   :  { %4834 = vpow2.f32 %v3804_v43  ;;  %v4645_v43 = vld [vmem:[%s6499_s10 + $0x38] sm:$0xff] }
0x1203   :  { %4836 = vpow2.f32 %v3816_v44  ;;  %4100 = vmatpush.msrb.mxu2 %v4645_v43  ;;  %v4643_v44 = vld [vmem:[%s6499_s10 + $0x28] sm:$0xff] }
0x1204   :  { %4042 = vmatpush.msrb.mxu0 %v4643_v44 }
0x1205   :  { %v3780_v45 = vpop.xlane.xlu1 %3779  ;;  %v3777_v46 = vpop.xlane.xlu0 %3776 }
0x1206   :  { %v3795_v47 = vpop.xlane.xlu2 %3794  ;;  %v3798_v49 = vsub.f32 %v3766_v24, %v3780_v45  ;;  %v3797_v37 = vsub.f32 %v3765_v7, %v3777_v46  ;;  %v4644_v45 = vld [vmem:[%s6499_s10 + $0x30] sm:$0xff] }
0x1207   :  { %v3803_v50 = vsub.f32 %v3771_v27, %v3795_v47  ;;  %4071 = vmatpush.msra.mxu1 %v4644_v45 }
0x1208   :  { %v4835_v51 = vpop.eup %4834  ;;  %v3808_v52 = vmul.f32 1.442695, %v3798_v49  ;;  %v3806_v53 = vmul.f32 1.442695, %v3797_v37 }
0x1209   :  { %v4837_v54 = vpop.eup %4836  ;;  %v3818_v55 = vmul.f32 1.442695, %v3803_v50  ;;  %v3820_v56 = vsel %vm657_vm13, %v4835_v51, 0.0 }
0x120a   :  { %4838 = vpow2.f32 %v3808_v52  ;;  %v3838_v57 = vsel %vm657_vm13, %v4837_v54, 0.0  ;;  %3821 = vadd.xlane.f32.xlu0 %v3820_v56 }
0x120b   :  { %4840 = vpow2.f32 %v3818_v55  ;;  %3839 = vadd.xlane.f32.xlu1 %v3838_v57 }
0x120c   :  { %4842 = vpow2.f32 %v3806_v53 }
0x120d   :  { %v3783_v58 = vpop.xlane.xlu1 %3782  ;;  %v3786_v3 = vpop.xlane.xlu0 %3785 }
0x120e   :  { %v3789_v59 = vpop.xlane.xlu2 %3788  ;;  %v3799_v60 = vsub.f32 %v3767_v33, %v3783_v58  ;;  %v3800_v48 = vsub.f32 %v3768_v32, %v3786_v3 }
0x120f   :  { %v3801_v61 = vsub.f32 %v3769_v34, %v3789_v59 }
0x1210   :  { %v4839_v62 = vpop.eup %4838  ;;  %v3810_v1 = vmul.f32 1.442695, %v3799_v60  ;;  %v3812_v5 = vmul.f32 1.442695, %v3800_v48  ;;  %v4703_v60 = vld [vmem:[%s6500_s11 + $0x1] ss:$0 sm:$0xff] }
0x1211   :  { %v4841_v6 = vpop.eup %4840  ;;  %v3814_v2 = vmul.f32 1.442695, %v3801_v61  ;;  %v3826_v0 = vsel %vm657_vm13, %v4839_v62, 0.0 }
0x1212   :  { %v4843_v10 = vpop.eup %4842  ;;  %4844 = vpow2.f32 %v3810_v1  ;;  %v3841_v11 = vsel %vm661_vm14, %v4841_v6, 0.0  ;;  %3827 = vadd.xlane.f32.xlu0 %v3826_v0 }
0x1213   :  { %4846 = vpow2.f32 %v3814_v2  ;;  %3842 = vadd.xlane.f32.xlu1 %v3841_v11  ;;  %v3823_v18 = vsel %vm661_vm14, %v4843_v10, 0.0 }
0x1214   :  { %4848 = vpow2.f32 %v3812_v5  ;;  %3824 = vadd.xlane.f32.xlu2 %v3823_v18 }
0x1218   :  { %v4845_v14 = vpop.eup %4844 }
0x1219   :  { %v4847_v9 = vpop.eup %4846  ;;  %v3829_v16 = vsel %vm661_vm14, %v4845_v14, 0.0 }
0x121a   :  { %v4849_v17 = vpop.eup %4848  ;;  %v3835_v63 = vsel %vm661_vm14, %v4847_v9, 0.0  ;;  %3830 = vadd.xlane.f32.xlu0 %v3829_v16 }
0x121b   :  { %3836 = vadd.xlane.f32.xlu1 %v3835_v63  ;;  %v3832_v13 = vsel %vm657_vm13, %v4849_v17, 0.0 }
0x121c   :  { %3833 = vadd.xlane.f32.xlu2 %v3832_v13  ;;  %v4660_v13 = vld [vmem:[%s6504_s14 + $0x38] sm:$0xff] }
0x127d   :  { %v3822_v8 = vpop.xlane.xlu0 %3821 }
0x127e   :  { %v3840_v12 = vpop.xlane.xlu1 %3839  ;;  %4850 = vrcp.f32 %v3822_v8  ;;  %v4658_v8 = vld [vmem:[%s6504_s14 + $0x28] sm:$0xff] }
0x127f   :  { %4852 = vrcp.f32 %v3840_v12  ;;  %v4657_v12 = vld [vmem:[%s6504_s14 + $0x20] sm:$0xff] }
0x1284   :  { %v4851_v21 = vpop.eup %4850 }
0x1285   :  { %v4853_v22 = vpop.eup %4852  ;;  %v3852_v24 = vmul.f32 %v4851_v21, %v4835_v51  ;;  %v3828_v25 = vpop.xlane.xlu0 %3827 }
0x1286   :  { %v3858_v7 = vmul.f32 %v4853_v22, %v4837_v54  ;;  %v3843_v26 = vpop.xlane.xlu1 %3842  ;;  %4854 = vrcp.f32 %v3828_v25 }
0x1287   :  { %4856 = vrcp.f32 %v3843_v26  ;;  %v3825_v27 = vpop.xlane.xlu2 %3824  ;;  %4631 = vmatmul.msk.f32.vlgmr.msrb.gmra.mxu3 %vm657_vm13, %v3852_v24 }
0x1288   :  { %4858 = vrcp.f32 %v3825_v27  ;;  %4640 = vmatmul.msk.f32.vlgmr.msra.gmra.mxu2 %vm657_vm13, %v3858_v7  ;;  %4208 = vmatpush.msrb.mxu3 %v4660_v13 }
0x128c   :  { %v4855_v15 = vpop.eup %4854 }
0x128d   :  { %v4857_v19 = vpop.eup %4856  ;;  %v3854_v28 = vmul.f32 %v4855_v15, %v4839_v62  ;;  %v3831_v30 = vpop.xlane.xlu0 %3830 }
0x128e   :  { %v4859_v31 = vpop.eup %4858  ;;  %4860 = vrcp.f32 %v3831_v30  ;;  %v3859_v32 = vmul.f32 %v4857_v19, %v4841_v6  ;;  %v3837_v35 = vpop.xlane.xlu1 %3836  ;;  %v4671_v19 = vld [vmem:[%s6505_s16 + $0x78] sm:$0xff] }
0x128f   :  { %v3834_v33 = vpop.xlane.xlu2 %3833  ;;  %v3853_v34 = vmul.f32 %v4859_v31, %v4843_v10  ;;  %4634 = vmatmul.msk.f32.vlgmr.msra.gmra.mxu0 %vm657_vm13, %v3854_v28  ;;  %v4670_v28 = vld [vmem:[%s6505_s16 + $0x70] sm:$0xff] }
0x1290   :  { %4862 = vrcp.f32 %v3834_v33  ;;  %4641 = vmatmul.msk.f32.gmra.mxu2 %vm657_vm13, %v3859_v32  ;;  %4247 = vmatpush.msra.mxu0 %v4671_v19  ;;  %v4669_v33 = vld [vmem:[%s6505_s16 + $0x68] sm:$0xff] }
0x1291   :  { %4632 = vmatmul.msk.f32.gmra.mxu3 %vm657_vm13, %v3853_v34  ;;  %4864 = vrcp.f32 %v3837_v35  ;;  %v4668_v35 = vld [vmem:[%s6505_s16 + $0x60] sm:$0xff] }
0x1292   :  { %4248 = vmatpush.msra.mxu0 %v4670_v28 }
0x1294   :  { %v4861_v36 = vpop.eup %4860  ;;  %4249 = vmatpush.msra.mxu0 %v4669_v33 }
0x1295   :  { %v3855_v38 = vmul.f32 %v4861_v36, %v4845_v14 }
0x1296   :  { %v4863_v39 = vpop.eup %4862  ;;  %4250 = vmatpush.msra.mxu0 %v4668_v35 }
0x1297   :  { %v3856_v40 = vmul.f32 %v4863_v39, %v4849_v17  ;;  %4635 = vmatmul.msk.f32.gmra.mxu0 %vm657_vm13, %v3855_v38  ;;  %v4865_v41 = vpop.eup %4864  ;;  %v4667_v39 = vld [vmem:[%s6505_s16 + $0x58] sm:$0xff] }
0x1298   :  { %v3857_v42 = vmul.f32 %v4865_v41, %v4847_v9  ;;  %4251 = vmatpush.msra.mxu0 %v4667_v39 }
0x1299   :  { %4637 = vmatmul.msk.f32.vlgmr.msrb.gmra.mxu1 %vm657_vm13, %v3856_v40 }
0x12a1   :  { %4638 = vmatmul.msk.f32.gmra.mxu1 %vm657_vm13, %v3857_v42 }
0x130a   :  { %v3886_v46 = vpop.f32.mrf.mxu3 }
0x130b   :  { %v3982_v47 = vpop.f32.mrf.mxu2  ;;  %4646 = vmatmul.msk.f32.vlgmr.msra.gmra.mxu3 %vm508_vm11, %v3886_v46 }
0x130c   :  { %4652 = vmatmul.msk.f32.vlgmr.msrb.gmra.mxu2 %vm508_vm11, %v3982_v47  ;;  %v3918_v49 = vpop.f32.mrf.mxu0  ;;  %v4704_v47 = vld [vmem:[%s6501_s12 + $0x1] ss:$0 sm:$0xff] }
0x130d   :  { %4648 = vmatmul.msk.f32.vlgmr.msrb.gmra.mxu0 %vm508_vm11, %v3918_v49 }
0x1313   :  { %v3985_v37 = vpop.f32.mrf.mxu2 }
0x1314   :  { %v3889_v50 = vpop.f32.mrf.mxu3  ;;  %4653 = vmatmul.msk.f32.gmra.mxu2 %vm508_vm11, %v3985_v37  ;;  %v3921_v51 = vpop.f32.mrf.mxu0 }
0x1315   :  { %4647 = vmatmul.msk.f32.gmra.mxu3 %vm508_vm11, %v3889_v50  ;;  %4649 = vmatmul.msk.f32.gmra.mxu0 %vm508_vm11, %v3921_v51  ;;  %v4705_v50 = vld [vmem:[%s6502_s13 + $0x1] ss:$0 sm:$0xff] }
0x1316   :  { %v3950_v52 = vpop.f32.mrf.mxu1 }
0x1317   :  { %4650 = vmatmul.msk.f32.vlgmr.msra.gmra.mxu1 %vm508_vm11, %v3950_v52 }
0x131e   :  { %v3953_v53 = vpop.f32.mrf.mxu1 }
0x131f   :  { %4651 = vmatmul.msk.f32.gmra.mxu1 %vm508_vm11, %v3953_v53 }
0x138a   :  { %v4044_v55 = vpop.f32.mrf.mxu0 }
0x138e   :  { %v4015_v54 = vpop.f32.mrf.mxu3 }
0x138f   :  { %v4108_v56 = vadd.f32 %v4044_v55, %v4015_v54  ;;  %v4102_v57 = vpop.f32.mrf.mxu2 }
0x1392   :  { %v4047_v62 = vpop.f32.mrf.mxu0 }
0x1394   :  { %v4073_v58 = vpop.f32.mrf.mxu1 }
0x1395   :  { %v4110_v3 = vadd.f32 %v4108_v56, %v4073_v58 }
0x1397   :  { %v4112_v59 = vadd.f32 %v4110_v3, %v4102_v57  ;;  %v4105_v11 = vpop.f32.mrf.mxu2 }
0x1398   :  { %v4018_v48 = vpop.f32.mrf.mxu3 }
0x1399   :  { %v4114_v61 = vadd.f32 %v4112_v59, %v6132_v20  ;;  %v4109_v5 = vadd.f32 %v4047_v62, %v4018_v48  ;;  %v4666_v48 = vld [vmem:[%s6505_s16 + $0x50] sm:$0xff]  ;;  %v4664_v62 = vld [vmem:[%s6505_s16 + $0x40] sm:$0xff] }
0x139a   :  { %4252 = vmatpush.msra.mxu0 %v4666_v48 }
0x139b   :  { %v6405_v1 = vadd.f32 %v4703_v60, %v4114_v61  ;;  %v4665_v61 = vld [vmem:[%s6505_s16 + $0x48] sm:$0xff] }
0x139c   :  { %v4076_v6 = vpop.f32.mrf.mxu1  ;;  %4253 = vmatpush.msra.mxu0 %v4665_v61 }
0x139d   :  { %v4111_v2 = vadd.f32 %v4109_v5, %v4076_v6  ;;  %v4124_v0 = vsel %vm107_vm3, %v6405_v1, 0.0  ;;  %v4132_v10 = vmul.f32 %v6405_v1, %v6405_v1  ;;  %v4706_v5 = vld [vmem:[%s6503_s15 + $0x1] ss:$0 sm:$0xff] }
0x139e   :  { %4125 = vadd.xlane.f32.xlu2 %v4124_v0  ;;  %4254 = vmatpush.msra.mxu0 %v4664_v62 }
0x139f   :  { %v4113_v18 = vadd.f32 %v4111_v2, %v4105_v11  ;;  %v4134_v14 = vsel %vm107_vm3, %v4132_v10, 0.0 }
0x13a0   :  { %4135 = vadd.xlane.f32.xlu0 %v4134_v14  ;;  %v4707_v14 = vld [vmem:[%s6506_s17 + $0x1] ss:$0 sm:$0xff] }
0x13a1   :  { %v4115_v20 = vadd.f32 %v4113_v18, %v6140_v4  ;;  %v4659_v4 = vld [vmem:[%s6504_s14 + $0x30] sm:$0xff] }
0x13a2   :  { %4209 = vmatpush.msrb.mxu3 %v4659_v4 }
0x13a3   :  { %v6413_v9 = vadd.f32 %v4703_v60, %v4115_v20 }
0x13a4   :  { %4210 = vmatpush.msrb.mxu3 %v4658_v8 }
0x13a5   :  { %v4127_v16 = vsel %vm105_vm2, %v6413_v9, 0.0  ;;  %v4133_v17 = vmul.f32 %v6413_v9, %v6413_v9 }
0x13a6   :  { %4128 = vadd.xlane.f32.xlu1 %v4127_v16  ;;  %4211 = vmatpush.msrb.mxu3 %v4657_v12 }
0x13a7   :  { %v4137_v63 = vsel %vm105_vm2, %v4133_v17, 0.0 }
0x13a8   :  { %4138 = vadd.xlane.f32.xlu2 %v4137_v63 }
0x1411   :  { %v4126_v23 = vpop.xlane.xlu2 %4125 }
0x1412   :  { %v4130_v21 = vmul.f32 %v4126_v23, %v5029_v29 }
0x1413   :  { %v4136_v22 = vpop.xlane.xlu0 %4135 }
0x1414   :  { %v4142_v24 = vmul.f32 %v4130_v21, %v4130_v21  ;;  %v4140_v25 = vmul.f32 %v4136_v22, %v5029_v29  ;;  %v4146_v46 = vsub.f32 %v6405_v1, %v4130_v21 }
0x1416   :  { %v4144_v7 = vsub.f32 %v4140_v25, %v4142_v24 }
0x1418   :  { %v4148_v26 = vadd.f32 1e-05, %v4144_v7 }
0x1419   :  { %v4129_v27 = vpop.xlane.xlu1 %4128 }
0x141a   :  { %4866 = vrsqrt.f32 %v4148_v26  ;;  %v4131_v15 = vmul.f32 %v4129_v27, %v5029_v29  ;;  %vm4156_vm12 = vweird.f32 %v4148_v26 }
0x141b   :  { %v4139_v30 = vpop.xlane.xlu2 %4138 }
0x141c   :  { %v4143_v31 = vmul.f32 %v4131_v15, %v4131_v15  ;;  %v4141_v32 = vmul.f32 %v4139_v30, %v5029_v29  ;;  %v4147_v57 = vsub.f32 %v6413_v9, %v4131_v15 }
0x141e   :  { %v4145_v34 = vsub.f32 %v4141_v32, %v4143_v31 }
0x1420   :  { %v4867_v36 = vpop.eup %4866  ;;  %v4149_v38 = vadd.f32 1e-05, %v4145_v34 }
0x1421   :  { %v4151_v40 = vmul.f32 %v4867_v36, %v4148_v26  ;;  %vm4157_vm11 = vweird.f32 %v4867_v36 }
0x1422   :  { %4868 = vrsqrt.f32 %v4149_v38  ;;  %vm4158_vm13 = vmor %vm4156_vm12, %vm4157_vm11  ;;  %vm4166_vm15 = vweird.f32 %v4149_v38 }
0x1423   :  { %v4152_v29 = vmul.f32 %v4867_v36, %v4151_v40 }
0x1425   :  { %v4153_v41 = vmul.f32 0.5, %v4152_v29 }
0x1427   :  { %v4154_v42 = vsub.f32 1.5, %v4153_v41 }
0x1428   :  { %v4869_v43 = vpop.eup %4868 }
0x1429   :  { %v4155_v44 = vmul.f32 %v4867_v36, %v4154_v42  ;;  %v4161_v45 = vmul.f32 %v4869_v43, %v4149_v38  ;;  %vm4167_vm14 = vweird.f32 %v4869_v43 }
0x142a   :  { %vm4168_vm0 = vmor %vm4166_vm15, %vm4167_vm14 }
0x142b   :  { %v4159_v49 = vsel %vm4158_vm13, %v4867_v36, %v4155_v44  ;;  %v4162_v37 = vmul.f32 %v4869_v43, %v4161_v45 }
0x142c   :  { %v4170_v51 = vmul.f32 %v4159_v49, %v4146_v46 }
0x142d   :  { %v4163_v52 = vmul.f32 0.5, %v4162_v37 }
0x142e   :  { %v4175_v53 = vmul.f32 %v4704_v47, %v4170_v51 }
0x142f   :  { %v4164_v54 = vsub.f32 1.5, %v4163_v52 }
0x1430   :  { %v4180_v55 = vadd.f32 %v4705_v50, %v4175_v53 }
0x1431   :  { %v4165_v56 = vmul.f32 %v4869_v43, %v4164_v54 }
0x1432   :  { %4662 = vmatmul.msk.f32.vlgmr.msrb.gmra.mxu3 %vm107_vm3, %v4180_v55 }
0x1433   :  { %v4169_v58 = vsel %vm4168_vm0, %v4869_v43, %v4165_v56 }
0x1434   :  { %v4171_v3 = vmul.f32 %v4169_v58, %v4147_v57 }
0x1436   :  { %v4176_v59 = vmul.f32 %v4704_v47, %v4171_v3 }
0x1438   :  { %v4181_v60 = vadd.f32 %v4705_v50, %v4176_v59 }
0x143a   :  { %4663 = vmatmul.msk.f32.gmra.mxu3 %vm107_vm3, %v4181_v60 }
0x14b5   :  { %v4213_v6 = vpop.f32.mrf.mxu3 }
0x14b6   :  { %v4214_v2 = vadd.f32 %v4706_v5, %v4213_v6 }
0x14b8   :  { %v4219_v0 = vmax.f32 %v4214_v2, 0.0 }
0x14ba   :  { %4673 = vmatmul.msk.f32.vlgmr.msra.gmra.mxu0 %vm1121_vm7, %v4219_v0 }
0x14bd   :  { %v4216_v10 = vpop.f32.mrf.mxu3 }
0x14be   :  { %v4217_v11 = vadd.f32 %v4706_v5, %v4216_v10 }
0x14c0   :  { %v4220_v18 = vmax.f32 %v4217_v11, 0.0 }
0x14c2   :  { %4674 = vmatmul.msk.f32.gmra.mxu0 %vm1121_vm7, %v4220_v18 }
0x1537   :  { %v4256_v20 = vpop.f32.mrf.mxu0 }
0x1538   :  { %v4257_v16 = vadd.f32 %v4707_v14, %v4256_v20 }
0x153a   :  { %v4262_v17 = vadd.f32 %v4257_v16, %v6405_v1 }
0x153c   :  { %4675 = vst.msk [vmem:[%s6492_s18 + $0x10] sm:$0xff] %vm107_vm3, %v4262_v17 }
0x153f   :  { %v4259_v63 = vpop.f32.mrf.mxu0 }
0x1540   :  { %v4260_v13 = vadd.f32 %v4707_v14, %v4259_v63 }
0x1542   :  { %v4263_v4 = vadd.f32 %v4260_v13, %v6413_v9 }
0x1544   :  { %4676 = vst.msk [vmem:[%s6492_s18 + $0x18] sm:$0x1] %vm105_vm2, %v4263_v4 }

</bundles_post_ra>
